<compile_context>
chip_gen: v7x
topology: tpu7x:2x2x1
jax: 0.10.0
libtpu: 0.0.40
codegen_flags: <defaults>
</compile_context>

<pallas_src>
import functools
import numpy as np
import jax
import jax.numpy as jnp
from jax.experimental import pallas as pl
from jax.experimental.pallas import tpu as pltpu


# ---------------------------------------------------------------------------
# helpers
# ---------------------------------------------------------------------------

def _round_up(x, m):
    return ((x + m - 1) // m) * m


def _pick_batch_tiling(B):
    """Padded batch + batch tile.  Full padded batch resident (>=MXU rows when possible);
    splits into 128-row parallel tiles for large batches (shards across v7x's two TCs)."""
    Bp = max(8, _round_up(B, 8))
    if Bp <= 128:
        return Bp, Bp
    bt = 128
    return _round_up(Bp, bt), bt


def _pick_time_tiling(T):
    TT = T if T <= 16 else 16
    return _round_up(T, TT), TT


# ---------------------------------------------------------------------------
# Pallas kernels
# ---------------------------------------------------------------------------

def bn_stats_kernel(x_ref, mean_ref, rstd_ref, *, n_rows, rt, eps):
    # grid = (phase, row_tiles): phase 0 accumulates the mean, phase 1 accumulates the
    # CENTERED sum of squares (no E[x^2]-mean^2 cancellation).  Rows past n_rows are masked.
    p = pl.program_id(0)
    i = pl.program_id(1)
    nt = pl.num_programs(1)

    ridx = i * rt + jax.lax.broadcasted_iota(jnp.int32, (rt, 1), 0)
    valid = ridx < n_rows
    x = x_ref[...]

    @pl.when(jnp.logical_and(p == 0, i == 0))
    def _():
        mean_ref[...] = jnp.zeros_like(mean_ref)

    @pl.when(p == 0)
    def _():
        mean_ref[...] += jnp.sum(jnp.where(valid, x, 0.0), axis=0, keepdims=True)

    @pl.when(jnp.logical_and(p == 0, i == nt - 1))
    def _():
        mean_ref[...] = mean_ref[...] * (1.0 / n_rows)

    @pl.when(jnp.logical_and(p == 1, i == 0))
    def _():
        rstd_ref[...] = jnp.zeros_like(rstd_ref)

    @pl.when(p == 1)
    def _():
        d = jnp.where(valid, x - mean_ref[...], 0.0)
        rstd_ref[...] += jnp.sum(d * d, axis=0, keepdims=True)

    @pl.when(jnp.logical_and(p == 1, i == nt - 1))
    def _():
        rstd_ref[...] = jax.lax.rsqrt(rstd_ref[...] * (1.0 / n_rows) + eps)


def matmul_bias_kernel(x_ref, w_ref, b_ref, o_ref):
    # Row-tiled (RT, K) @ (K, M) + b on the MXU: bf16 operands, f32 accumulation, lane-dense M.
    o_ref[...] = (jnp.dot(x_ref[...].astype(jnp.bfloat16), w_ref[...],
                          preferred_element_type=jnp.float32) + b_ref[...])


def lstm_layer_kernel(len_ref, x_ref, w_ih_ref, w_hh_ref, b_ref,
                      out_ref, hn_ref, cn_ref,
                      gx_scr, h_scr, c_scr, *, time_tile):
    # grid = (batch_tiles [parallel], time_chunks [arbitrary]).
    # Input projection is FUSED: the chunk's gates_x is produced here with one MXU matmul from
    # the (time_tile, batch_tile, F_in) bf16 input block (no gates_x HBM tensor).
    tc = pl.program_id(1)

    @pl.when(tc == 0)
    def _():
        h_scr[...] = jnp.zeros_like(h_scr)
        c_scr[...] = jnp.zeros_like(c_scr)

    TT, BB, Fin = x_ref.shape
    G4 = w_ih_ref.shape[-1]
    Hp = h_scr.shape[-1]

    # Hoisted, fused input projection for the whole time chunk.
    x_flat = x_ref[...].reshape(TT * BB, Fin)                       # bf16
    gx = jnp.dot(x_flat, w_ih_ref[...],
                 preferred_element_type=jnp.float32) + b_ref[...]   # (TT*BB, 4Hp) f32
    gx_scr[...] = gx.reshape(TT, BB, G4)

    whh = w_hh_ref[...]                      # (Hp, 4Hp) bf16, resident
    lens = len_ref[...]                      # (BB, 1) int32, resident per batch tile
    t0 = tc * time_tile

    def step(i, carry):
        h, c = carry
        gates = gx_scr[i] + jnp.dot(h.astype(jnp.bfloat16), whh,
                                    preferred_element_type=jnp.float32)
        # Hp is a multiple of 128 -> gate slices are 128-lane aligned vreg views.
        ig = jax.nn.sigmoid(gates[:, 0 * Hp:1 * Hp])
        fg = jax.nn.sigmoid(gates[:, 1 * Hp:2 * Hp])
        gg = jnp.tanh(gates[:, 2 * Hp:3 * Hp])
        og = jax.nn.sigmoid(gates[:, 3 * Hp:4 * Hp])
        c_new = fg * c + ig * gg
        h_new = og * jnp.tanh(c_new)
        valid = lens > (t0 + i)                                    # pack_padded_sequence masking
        out_ref[i] = jnp.where(valid, h_new, 0.0).astype(out_ref.dtype)  # pad_packed zeros, bf16
        return (jnp.where(valid, h_new, h), jnp.where(valid, c_new, c))

    h_fin, c_fin = jax.lax.fori_loop(0, time_tile, step,
                                     (h_scr[...], c_scr[...]),
                                     unroll=min(8, time_tile))      # partial unroll: avoid spills
    h_scr[...] = h_fin
    c_scr[...] = c_fin

    @pl.when(tc == pl.num_programs(1) - 1)   # final state written only once
    def _():
        hn_ref[...] = h_fin
        cn_ref[...] = c_fin


# ---------------------------------------------------------------------------
# Wrappers
# ---------------------------------------------------------------------------

def bn_stats(x_flat, eps=1e-5):
    N, F = x_flat.shape
    rt = N if N <= 512 else 512
    nt = pl.cdiv(N, rt)
    kernel = functools.partial(bn_stats_kernel, n_rows=N, rt=rt, eps=eps)
    return pl.pallas_call(
        kernel,
        out_shape=(jax.ShapeDtypeStruct((1, F), jnp.float32),
                   jax.ShapeDtypeStruct((1, F), jnp.float32)),
        grid=(2, nt),
        in_specs=[pl.BlockSpec((rt, F), lambda p, i: (i, 0))],
        out_specs=[pl.BlockSpec((1, F), lambda p, i: (0, 0)),
                   pl.BlockSpec((1, F), lambda p, i: (0, 0))],
        compiler_params=pltpu.CompilerParams(
            dimension_semantics=("arbitrary", "arbitrary")),
    )(x_flat)


def matmul_bias(x, w_bf16, b):
    N, K = x.shape
    M = w_bf16.shape[1]
    rt = N if N <= 512 else 512
    return pl.pallas_call(
        matmul_bias_kernel,
        out_shape=jax.ShapeDtypeStruct((N, M), jnp.float32),
        grid=(pl.cdiv(N, rt),),
        in_specs=[pl.BlockSpec((rt, K), lambda i: (i, 0)),
                  pl.BlockSpec((K, M), lambda i: (0, 0)),       # resident weights
                  pl.BlockSpec((1, M), lambda i: (0, 0))],
        out_specs=pl.BlockSpec((rt, M), lambda i: (i, 0)),
        compiler_params=pltpu.CompilerParams(
            dimension_semantics=("parallel",),
            vmem_limit_bytes=64 * 1024 * 1024),
    )(x, w_bf16, b)


def lstm_layer_forward(x_tm, lens, w_ih, w_hh, b, *, time_tile, batch_tile, hidden_p):
    Tp, Bp, Fin = x_tm.shape
    Hp = hidden_p
    G4 = 4 * Hp
    n_bc = Bp // batch_tile
    n_tc = Tp // time_tile
    kernel = functools.partial(lstm_layer_kernel, time_tile=time_tile)
    out, hn, cn = pl.pallas_call(
        kernel,
        out_shape=(jax.ShapeDtypeStruct((Tp, Bp, Hp), jnp.bfloat16),   # bf16 inter-layer acts
                   jax.ShapeDtypeStruct((Bp, Hp), jnp.float32),
                   jax.ShapeDtypeStruct((Bp, Hp), jnp.float32)),
        grid_spec=pltpu.PrefetchScalarGridSpec(
            num_scalar_prefetch=0,
            grid=(n_bc, n_tc),
            in_specs=[
                pl.BlockSpec((batch_tile, 1), lambda bc, tc: (bc, 0)),                 # lengths
                pl.BlockSpec((time_tile, batch_tile, Fin), lambda bc, tc: (tc, bc, 0)),  # x chunk
                pl.BlockSpec((Fin, G4), lambda bc, tc: (0, 0)),                        # W_ih resident
                pl.BlockSpec((Hp, G4), lambda bc, tc: (0, 0)),                         # W_hh resident
                pl.BlockSpec((1, G4), lambda bc, tc: (0, 0)),                          # bias
            ],
            out_specs=[
                pl.BlockSpec((time_tile, batch_tile, Hp), lambda bc, tc: (tc, bc, 0)),
                pl.BlockSpec((batch_tile, Hp), lambda bc, tc: (bc, 0)),                # h_n
                pl.BlockSpec((batch_tile, Hp), lambda bc, tc: (bc, 0)),                # c_n
            ],
            scratch_shapes=[pltpu.VMEM((time_tile, batch_tile, G4), jnp.float32),      # chunk gates_x
                            pltpu.VMEM((batch_tile, Hp), jnp.float32),                 # h carry
                            pltpu.VMEM((batch_tile, Hp), jnp.float32)],                # c carry
        ),
        compiler_params=pltpu.CompilerParams(
            dimension_semantics=("parallel", "arbitrary"),   # batch parallel, time sequential
            vmem_limit_bytes=64 * 1024 * 1024),              # v5e default 16MiB is too small at real H
    )(lens, x_tm, w_ih, w_hh, b)
    return out, hn, cn


# ---------------------------------------------------------------------------
# Parameter preparation (one-time padding/casting) + forward
# ---------------------------------------------------------------------------

def _pad_gate_cols(w, H, Hp):
    """(rows, 4H) -> (rows, 4Hp): each gate's column block starts at a 128-aligned offset."""
    parts = []
    for g in range(4):
        parts.append(jnp.pad(w[:, g * H:(g + 1) * H], ((0, 0), (0, Hp - H))))
    return jnp.concatenate(parts, axis=1)


def prepare_params(params, input_size, hidden_size, output_size):
    """Pad hidden/output dims to multiples of 128 (lane-dense outputs, aligned gate slices).
    Zero-padded gate columns/rows provably keep padded hidden units at exactly 0."""
    F, H, O = input_size, hidden_size, output_size
    Hp = _round_up(H, 128)
    Op = _round_up(O, 128)
    prep = {"F": F, "H": H, "Hp": Hp, "O": O, "Op": Op,
            "bn_gamma": params["bn_gamma"], "bn_beta": params["bn_beta"], "lstm": []}
    for li, layer in enumerate(params["lstm"]):
        fin = F if li == 0 else H
        fin_p = F if li == 0 else Hp
        w_ih = _pad_gate_cols(layer["w_ih"], H, Hp)
        w_ih = jnp.pad(w_ih, ((0, fin_p - fin), (0, 0)))
        w_hh = jnp.pad(_pad_gate_cols(layer["w_hh"], H, Hp), ((0, Hp - H), (0, 0)))
        b = _pad_gate_cols(layer["b"], H, Hp)
        entry = {"w_hh": w_hh.astype(jnp.bfloat16)}
        if li == 0:
            entry["w_ih_f32"] = w_ih      # kept f32: BN affine is folded in at runtime
            entry["b_f32"] = b
        else:
            entry["w_ih"] = w_ih.astype(jnp.bfloat16)
            entry["b"] = b
        prep["lstm"].append(entry)
    prep["w_out"] = jnp.pad(params["w_out"], ((0, Hp - H), (0, Op - O))).astype(jnp.bfloat16)
    prep["b_out"] = jnp.pad(params["b_out"], ((0, 0), (0, Op - O)))
    return prep


def base_encoder_forward(prep, inputs_btf, input_lengths):
    """Pallas implementation of BaseEncoder.forward. inputs: (B, T, F) float32."""
    B, T, F = inputs_btf.shape
    H, Hp, O, Op = prep["H"], prep["Hp"], prep["O"], prep["Op"]

    Bp, bt = _pick_batch_tiling(B)
    Tp, TT = _pick_time_tiling(T)

    # --- input_bn statistics (training-mode batch stats over all B*T real rows) ---
    mean, rstd = bn_stats(inputs_btf.reshape(B * T, F))

    # --- fold BN affine into the layer-0 input projection (scale -> W rows, shift -> bias) ---
    scale = prep["bn_gamma"] * rstd                     # (1, F)
    shift = prep["bn_beta"] - mean * scale              # (1, F)
    w0_f32 = prep["lstm"][0]["w_ih_f32"]                # (F, 4Hp)
    w_ih0 = (scale.reshape(F, 1) * w0_f32).astype(jnp.bfloat16)
    b0 = prep["lstm"][0]["b_f32"] + jnp.dot(shift, w0_f32)

    # --- layout: pad batch/time, go time-major, bf16 activations ---
    x = jnp.pad(inputs_btf, ((0, Bp - B), (0, Tp - T), (0, 0)))
    x_tm = jnp.transpose(x, (1, 0, 2)).astype(jnp.bfloat16)            # (Tp, Bp, F)
    # TODO(synk): the raw-input and final-logits transposes stay in XLA; they touch the two
    # narrowest (F-wide / O-wide) tensors — all H-wide inter-layer tensors are transpose-free.
    lengths_p = jnp.pad(input_lengths.astype(jnp.int32), (0, Bp - B)).reshape(Bp, 1)

    h_list, c_list = [], []
    layer_in = x_tm
    for li, layer in enumerate(prep["lstm"]):
        if li == 0:
            w_ih, b = w_ih0, b0
        else:
            w_ih, b = layer["w_ih"], layer["b"]
        out, hn, cn = lstm_layer_forward(layer_in, lengths_p, w_ih, layer["w_hh"], b,
                                         time_tile=TT, batch_tile=bt, hidden_p=Hp)
        h_list.append(hn[:B, :H])
        c_list.append(cn[:B, :H])
        layer_in = out                                   # (Tp, Bp, Hp) bf16
        # TODO(synk): inter-layer LSTM dropout (training-mode stochastic op) not applied.

    # --- output_proj on zero-padded outputs (pad_packed + Linear semantics) ---
    logits_flat = matmul_bias(layer_in.reshape(Tp * Bp, Hp), prep["w_out"], prep["b_out"])
    logits = jnp.transpose(logits_flat.reshape(Tp, Bp, Op), (1, 0, 2))[:B, :T, :O]

    # hidden is returned in descending-length (sorted) batch order, as in the PyTorch module
    sort_idx = jnp.argsort(-input_lengths)
    h_n = jnp.stack(h_list, axis=0)[:, sort_idx, :]      # (n_layers, B, H)
    c_n = jnp.stack(c_list, axis=0)[:, sort_idx, :]
    return logits, (h_n, c_n)


# ---------------------------------------------------------------------------
# Pure-JAX reference (f32, HIGHEST precision) for correctness checking
# ---------------------------------------------------------------------------

def reference_forward(params, inputs_btf, input_lengths):
    B, T, F = inputs_btf.shape
    H = params["lstm"][0]["w_hh"].shape[0]
    hp = jax.lax.Precision.HIGHEST

    flat = inputs_btf.reshape(B * T, F)
    mean = flat.mean(0, keepdims=True)
    var = ((flat - mean) ** 2).mean(0, keepdims=True)
    x = ((flat - mean) / jnp.sqrt(var + 1e-5) * params["bn_gamma"] + params["bn_beta"]).reshape(B, T, F)

    h_list, c_list = [], []
    layer_in = x
    for layer in params["lstm"]:
        h = jnp.zeros((B, H), jnp.float32)
        c = jnp.zeros((B, H), jnp.float32)
        outs = []
        for t in range(T):
            xt = layer_in[:, t, :]
            gates = (jnp.dot(xt, layer["w_ih"], precision=hp)
                     + jnp.dot(h, layer["w_hh"], precision=hp) + layer["b"])
            i = jax.nn.sigmoid(gates[:, 0 * H:1 * H])
            f = jax.nn.sigmoid(gates[:, 1 * H:2 * H])
            g = jnp.tanh(gates[:, 2 * H:3 * H])
            o = jax.nn.sigmoid(gates[:, 3 * H:4 * H])
            c_new = f * c + i * g
            h_new = o * jnp.tanh(c_new)
            valid = (input_lengths > t)[:, None]
            h = jnp.where(valid, h_new, h)
            c = jnp.where(valid, c_new, c)
            outs.append(jnp.where(valid, h_new, 0.0))
        layer_in = jnp.stack(outs, axis=1)
        h_list.append(h)
        c_list.append(c)

    logits = jnp.dot(layer_in.reshape(B * T, H), params["w_out"], precision=hp) + params["b_out"]
    logits = logits.reshape(B, T, -1)
    sort_idx = jnp.argsort(-input_lengths)
    h_n = jnp.stack(h_list, axis=0)[:, sort_idx, :]
    c_n = jnp.stack(c_list, axis=0)[:, sort_idx, :]
    return logits, (h_n, c_n)


# ---------------------------------------------------------------------------
# Parameter construction + demo
# ---------------------------------------------------------------------------

def init_params(key, input_size, hidden_size, output_size, n_layers):
    params = {"lstm": []}
    k = 1.0 / np.sqrt(hidden_size)
    keys = jax.random.split(key, 4 * n_layers + 4)
    ki = iter(range(len(keys)))
    for layer in range(n_layers):
        fin = input_size if layer == 0 else hidden_size
        w_ih = jax.random.uniform(keys[next(ki)], (fin, 4 * hidden_size), jnp.float32, -k, k)
        w_hh = jax.random.uniform(keys[next(ki)], (hidden_size, 4 * hidden_size), jnp.float32, -k, k)
        b_ih = jax.random.uniform(keys[next(ki)], (1, 4 * hidden_size), jnp.float32, -k, k)
        b_hh = jax.random.uniform(keys[next(ki)], (1, 4 * hidden_size), jnp.float32, -k, k)
        params["lstm"].append({"w_ih": w_ih, "w_hh": w_hh, "b": b_ih + b_hh})
    params["w_out"] = jax.random.uniform(keys[next(ki)], (hidden_size, output_size), jnp.float32, -k, k)
    params["b_out"] = jax.random.uniform(keys[next(ki)], (1, output_size), jnp.float32, -k, k)
    params["bn_gamma"] = jax.random.uniform(keys[next(ki)], (1, input_size), jnp.float32, 0.5, 1.5)
    params["bn_beta"] = jax.random.uniform(keys[next(ki)], (1, input_size), jnp.float32, -0.5, 0.5)
    return params


if __name__ == "__main__":
    B, T, F = 2, 8, 16          # batch, seq, input_size
    H, O, n_layers = 32, 24, 2  # hidden_size, output_size, num_layers

    key = jax.random.PRNGKey(0)
    pkey, xkey = jax.random.split(key)
    params = init_params(pkey, F, H, O, n_layers)
    prep = prepare_params(params, F, H, O)

    inputs = jax.random.normal(xkey, (B, T, F), jnp.float32)
    input_lengths = jnp.array([5, 8], dtype=jnp.int32)   # max == T; triggers the sort path

    fwd = jax.jit(functools.partial(base_encoder_forward, prep))
    logits, (h_n, c_n) = fwd(inputs, input_lengths)
    jax.block_until_ready((logits, h_n, c_n))

    ref_logits, (ref_h, ref_c) = reference_forward(params, inputs, input_lengths)

    assert logits.shape == (B, T, O)
    assert h_n.shape == (n_layers, B, H) and c_n.shape == (n_layers, B, H)
    # bf16 MXU operands / bf16 inter-layer activations (f32 accumulation) vs f32-HIGHEST reference.
    np.testing.assert_allclose(np.asarray(logits), np.asarray(ref_logits), rtol=2e-2, atol=2e-2)
    np.testing.assert_allclose(np.asarray(h_n), np.asarray(ref_h), rtol=2e-2, atol=2e-2)
    np.testing.assert_allclose(np.asarray(c_n), np.asarray(ref_c), rtol=2e-2, atol=2e-2)

    print("KERNEL_OK")
</pallas_src>

<mosaic_0001>
module attributes {stable_mosaic.version = 11 : i64} {
  func.func @bn_stats_kernel(%arg0: i32, %arg1: i32, %arg2: memref<16x16xf32, #tpu.memory_space<vmem>>, %arg3: memref<1x16xf32, #tpu.memory_space<vmem>>, %arg4: memref<1x16xf32, #tpu.memory_space<vmem>>) attributes {dimension_semantics = [#tpu.dimension_semantics<arbitrary>, #tpu.dimension_semantics<arbitrary>], iteration_bounds = array<i64: 2, 1>, scalar_prefetch = 0 : i64, scratch_operands = 0 : i64, tpu.core_type = #tpu.core_type<tc>, window_params = [{transform_indices = @transform_0, window_bounds = array<i64: 16, 16>}, {pipeline_mode = #tpu.pipeline_mode<synchronous>, transform_indices = @transform_1, window_bounds = array<i64: 1, 16>}, {pipeline_mode = #tpu.pipeline_mode<synchronous>, transform_indices = @transform_2, window_bounds = array<i64: 1, 16>}]} {
    %c16_i32 = arith.constant 16 : i32
    %0 = arith.muli %arg1, %c16_i32 : i32
    %1 = tpu.iota {dimensions = array<i32: 0>} : vector<16x1xi32>
    %2 = vector.broadcast %0 : i32 to vector<16x1xi32>
    %3 = arith.addi %2, %1 : vector<16x1xi32>
    %c16_i32_0 = arith.constant 16 : i32
    %4 = vector.broadcast %c16_i32_0 : i32 to vector<16x1xi32>
    %5 = arith.cmpi slt, %3, %4 : vector<16x1xi32>
    %c0 = arith.constant 0 : index
    %c0_1 = arith.constant 0 : index
    %6 = vector.load %arg2[%c0, %c0_1] : memref<16x16xf32, #tpu.memory_space<vmem>>, vector<16x16xf32>
    %c0_i32 = arith.constant 0 : i32
    %7 = arith.cmpi eq, %arg0, %c0_i32 : i32
    %c0_i32_2 = arith.constant 0 : i32
    %8 = arith.cmpi eq, %arg1, %c0_i32_2 : i32
    %9 = arith.andi %7, %8 : i1
    %10 = arith.extui %9 : i1 to i32
    %c0_i32_3 = arith.constant 0 : i32
    %11 = arith.cmpi ne, %10, %c0_i32_3 : i32
    scf.if %11 {
      %cst = arith.constant 0.000000e+00 : f32
      %33 = vector.broadcast %cst : f32 to vector<1x16xf32>
      %c0_16 = arith.constant 0 : index
      %c0_17 = arith.constant 0 : index
      %34 = vector.load %arg3[%c0_16, %c0_17] : memref<1x16xf32, #tpu.memory_space<vmem>>, vector<1x16xf32>
      tpu.vector_store %arg3[%c0_16, %c0_17], %33 {strides = array<i32>} : memref<1x16xf32, #tpu.memory_space<vmem>>, vector<1x16xf32>,
    } else {
    }
    %c0_i32_4 = arith.constant 0 : i32
    %12 = arith.cmpi eq, %arg0, %c0_i32_4 : i32
    %13 = arith.extui %12 : i1 to i32
    %c0_i32_5 = arith.constant 0 : i32
    %14 = arith.cmpi ne, %13, %c0_i32_5 : i32
    scf.if %14 {
      %c0_16 = arith.constant 0 : index
      %c0_17 = arith.constant 0 : index
      %33 = vector.load %arg3[%c0_16, %c0_17] : memref<1x16xf32, #tpu.memory_space<vmem>>, vector<1x16xf32>
      %cst = arith.constant 0.000000e+00 : f32
      %34 = vector.shape_cast %5 : vector<16x1xi1> to vector<16x1xi1>
      %35 = vector.broadcast %34 : vector<16x1xi1> to vector<16x16xi1>
      %36 = vector.broadcast %cst : f32 to vector<16x16xf32>
      %37 = arith.select %35, %6, %36 : vector<16x16xi1>, vector<16x16xf32>
      %cst_18 = arith.constant dense<0.000000e+00> : vector<16xf32>
      %38 = vector.multi_reduction <add>, %37, %cst_18 [0] : vector<16x16xf32> to vector<16xf32>
      %39 = vector.shape_cast %38 : vector<16xf32> to vector<1x16xf32>
      %40 = arith.addf %33, %39 : vector<1x16xf32>
      %c0_19 = arith.constant 0 : index
      %c0_20 = arith.constant 0 : index
      %41 = vector.load %arg3[%c0_19, %c0_20] : memref<1x16xf32, #tpu.memory_space<vmem>>, vector<1x16xf32>
      tpu.vector_store %arg3[%c0_19, %c0_20], %40 {strides = array<i32>} : memref<1x16xf32, #tpu.memory_space<vmem>>, vector<1x16xf32>,
    } else {
    }
    %c0_i32_6 = arith.constant 0 : i32
    %15 = arith.cmpi eq, %arg0, %c0_i32_6 : i32
    %c0_i32_7 = arith.constant 0 : i32
    %16 = arith.cmpi eq, %arg1, %c0_i32_7 : i32
    %17 = arith.andi %15, %16 : i1
    %18 = arith.extui %17 : i1 to i32
    %c0_i32_8 = arith.constant 0 : i32
    %19 = arith.cmpi ne, %18, %c0_i32_8 : i32
    scf.if %19 {
      %c0_16 = arith.constant 0 : index
      %c0_17 = arith.constant 0 : index
      %33 = vector.load %arg3[%c0_16, %c0_17] : memref<1x16xf32, #tpu.memory_space<vmem>>, vector<1x16xf32>
      %cst = arith.constant 6.250000e-02 : f32
      %34 = vector.broadcast %cst : f32 to vector<1x16xf32>
      %35 = arith.mulf %33, %34 : vector<1x16xf32>
      %c0_18 = arith.constant 0 : index
      %c0_19 = arith.constant 0 : index
      %36 = vector.load %arg3[%c0_18, %c0_19] : memref<1x16xf32, #tpu.memory_space<vmem>>, vector<1x16xf32>
      tpu.vector_store %arg3[%c0_18, %c0_19], %35 {strides = array<i32>} : memref<1x16xf32, #tpu.memory_space<vmem>>, vector<1x16xf32>,
    } else {
    }
    %c1_i32 = arith.constant 1 : i32
    %20 = arith.cmpi eq, %arg0, %c1_i32 : i32
    %c0_i32_9 = arith.constant 0 : i32
    %21 = arith.cmpi eq, %arg1, %c0_i32_9 : i32
    %22 = arith.andi %20, %21 : i1
    %23 = arith.extui %22 : i1 to i32
    %c0_i32_10 = arith.constant 0 : i32
    %24 = arith.cmpi ne, %23, %c0_i32_10 : i32
    scf.if %24 {
      %cst = arith.constant 0.000000e+00 : f32
      %33 = vector.broadcast %cst : f32 to vector<1x16xf32>
      %c0_16 = arith.constant 0 : index
      %c0_17 = arith.constant 0 : index
      %34 = vector.load %arg4[%c0_16, %c0_17] : memref<1x16xf32, #tpu.memory_space<vmem>>, vector<1x16xf32>
      tpu.vector_store %arg4[%c0_16, %c0_17], %33 {strides = array<i32>} : memref<1x16xf32, #tpu.memory_space<vmem>>, vector<1x16xf32>,
    } else {
    }
    %c1_i32_11 = arith.constant 1 : i32
    %25 = arith.cmpi eq, %arg0, %c1_i32_11 : i32
    %26 = arith.extui %25 : i1 to i32
    %c0_i32_12 = arith.constant 0 : i32
    %27 = arith.cmpi ne, %26, %c0_i32_12 : i32
    scf.if %27 {
      %c0_16 = arith.constant 0 : index
      %c0_17 = arith.constant 0 : index
      %33 = vector.load %arg3[%c0_16, %c0_17] : memref<1x16xf32, #tpu.memory_space<vmem>>, vector<1x16xf32>
      %34 = vector.broadcast %33 : vector<1x16xf32> to vector<16x16xf32>
      %35 = arith.subf %6, %34 : vector<16x16xf32>
      %cst = arith.constant 0.000000e+00 : f32
      %36 = vector.shape_cast %5 : vector<16x1xi1> to vector<16x1xi1>
      %37 = vector.broadcast %36 : vector<16x1xi1> to vector<16x16xi1>
      %38 = vector.broadcast %cst : f32 to vector<16x16xf32>
      %39 = arith.select %37, %35, %38 : vector<16x16xi1>, vector<16x16xf32>
      %c0_18 = arith.constant 0 : index
      %c0_19 = arith.constant 0 : index
      %40 = vector.load %arg4[%c0_18, %c0_19] : memref<1x16xf32, #tpu.memory_space<vmem>>, vector<1x16xf32>
      %41 = arith.mulf %39, %39 : vector<16x16xf32>
      %cst_20 = arith.constant dense<0.000000e+00> : vector<16xf32>
      %42 = vector.multi_reduction <add>, %41, %cst_20 [0] : vector<16x16xf32> to vector<16xf32>
      %43 = vector.shape_cast %42 : vector<16xf32> to vector<1x16xf32>
      %44 = arith.addf %40, %43 : vector<1x16xf32>
      %c0_21 = arith.constant 0 : index
      %c0_22 = arith.constant 0 : index
      %45 = vector.load %arg4[%c0_21, %c0_22] : memref<1x16xf32, #tpu.memory_space<vmem>>, vector<1x16xf32>
      tpu.vector_store %arg4[%c0_21, %c0_22], %44 {strides = array<i32>} : memref<1x16xf32, #tpu.memory_space<vmem>>, vector<1x16xf32>,
    } else {
    }
    %c1_i32_13 = arith.constant 1 : i32
    %28 = arith.cmpi eq, %arg0, %c1_i32_13 : i32
    %c0_i32_14 = arith.constant 0 : i32
    %29 = arith.cmpi eq, %arg1, %c0_i32_14 : i32
    %30 = arith.andi %28, %29 : i1
    %31 = arith.extui %30 : i1 to i32
    %c0_i32_15 = arith.constant 0 : i32
    %32 = arith.cmpi ne, %31, %c0_i32_15 : i32
    scf.if %32 {
      %c0_16 = arith.constant 0 : index
      %c0_17 = arith.constant 0 : index
      %33 = vector.load %arg4[%c0_16, %c0_17] : memref<1x16xf32, #tpu.memory_space<vmem>>, vector<1x16xf32>
      %cst = arith.constant 6.250000e-02 : f32
      %34 = vector.broadcast %cst : f32 to vector<1x16xf32>
      %35 = arith.mulf %33, %34 : vector<1x16xf32>
      %cst_18 = arith.constant 9.99999974E-6 : f32
      %36 = vector.broadcast %cst_18 : f32 to vector<1x16xf32>
      %37 = arith.addf %35, %36 : vector<1x16xf32>
      %38 = math.rsqrt %37 : vector<1x16xf32>
      %c0_19 = arith.constant 0 : index
      %c0_20 = arith.constant 0 : index
      %39 = vector.load %arg4[%c0_19, %c0_20] : memref<1x16xf32, #tpu.memory_space<vmem>>, vector<1x16xf32>
      tpu.vector_store %arg4[%c0_19, %c0_20], %38 {strides = array<i32>} : memref<1x16xf32, #tpu.memory_space<vmem>>, vector<1x16xf32>,
    } else {
    }
    return
  }
  func.func @transform_0(%arg0: i32, %arg1: i32) -> (i32, i32) {
    %c0_i32 = arith.constant 0 : i32
    %c0_i32_0 = arith.constant 0 : i32
    return %arg1, %c0_i32 : i32, i32
  }
  func.func @transform_1(%arg0: i32, %arg1: i32) -> (i32, i32) {
    %c0_i32 = arith.constant 0 : i32
    %c0_i32_0 = arith.constant 0 : i32
    %c0_i32_1 = arith.constant 0 : i32
    return %c0_i32, %c0_i32_0 : i32, i32
  }
  func.func @transform_2(%arg0: i32, %arg1: i32) -> (i32, i32) {
    %c0_i32 = arith.constant 0 : i32
    %c0_i32_0 = arith.constant 0 : i32
    %c0_i32_1 = arith.constant 0 : i32
    return %c0_i32, %c0_i32_0 : i32, i32
  }
}

module attributes {stable_mosaic.version = 11 : i64} {
  func.func @lstm_layer_kernel(%arg0: i32, %arg1: i32, %arg2: memref<8x1xi32, #tpu.memory_space<vmem>>, %arg3: memref<8x8x16xbf16, #tpu.memory_space<vmem>>, %arg4: memref<16x512xbf16, #tpu.memory_space<vmem>>, %arg5: memref<128x512xbf16, #tpu.memory_space<vmem>>, %arg6: memref<1x512xf32, #tpu.memory_space<vmem>>, %arg7: memref<8x8x128xbf16, #tpu.memory_space<vmem>>, %arg8: memref<8x128xf32, #tpu.memory_space<vmem>>, %arg9: memref<8x128xf32, #tpu.memory_space<vmem>>, %arg10: memref<8x8x512xf32, #tpu.memory_space<vmem>>, %arg11: memref<8x128xf32, #tpu.memory_space<vmem>>, %arg12: memref<8x128xf32, #tpu.memory_space<vmem>>) attributes {dimension_semantics = [#tpu.dimension_semantics<parallel>, #tpu.dimension_semantics<arbitrary>], iteration_bounds = array<i64: 1, 1>, scalar_prefetch = 0 : i64, scratch_operands = 3 : i64, tpu.core_type = #tpu.core_type<tc>, window_params = [{transform_indices = @transform_0, window_bounds = array<i64: 8, 1>}, {transform_indices = @transform_1, window_bounds = array<i64: 8, 8, 16>}, {pipeline_mode = #tpu.pipeline_mode<synchronous>, transform_indices = @transform_2, window_bounds = array<i64: 16, 512>}, {pipeline_mode = #tpu.pipeline_mode<synchronous>, transform_indices = @transform_3, window_bounds = array<i64: 128, 512>}, {pipeline_mode = #tpu.pipeline_mode<synchronous>, transform_indices = @transform_4, window_bounds = array<i64: 1, 512>}, {transform_indices = @transform_5, window_bounds = array<i64: 8, 8, 128>}, {transform_indices = @transform_6, window_bounds = array<i64: 8, 128>}, {transform_indices = @transform_7, window_bounds = array<i64: 8, 128>}]} {
    %c0_i32 = arith.constant 0 : i32
    %0 = arith.cmpi eq, %arg1, %c0_i32 : i32
    %1 = arith.extui %0 : i1 to i32
    %c0_i32_0 = arith.constant 0 : i32
    %2 = arith.cmpi ne, %1, %c0_i32_0 : i32
    scf.if %2 {
      %cst_98 = arith.constant 0.000000e+00 : f32
      %414 = vector.broadcast %cst_98 : f32 to vector<8x128xf32>
      %c0_99 = arith.constant 0 : index
      %c0_100 = arith.constant 0 : index
      %415 = vector.load %arg11[%c0_99, %c0_100] : memref<8x128xf32, #tpu.memory_space<vmem>>, vector<8x128xf32>
      tpu.vector_store %arg11[%c0_99, %c0_100], %414 {strides = array<i32>} : memref<8x128xf32, #tpu.memory_space<vmem>>, vector<8x128xf32>,
      %cst_101 = arith.constant 0.000000e+00 : f32
      %416 = vector.broadcast %cst_101 : f32 to vector<8x128xf32>
      %c0_102 = arith.constant 0 : index
      %c0_103 = arith.constant 0 : index
      %417 = vector.load %arg12[%c0_102, %c0_103] : memref<8x128xf32, #tpu.memory_space<vmem>>, vector<8x128xf32>
      tpu.vector_store %arg12[%c0_102, %c0_103], %416 {strides = array<i32>} : memref<8x128xf32, #tpu.memory_space<vmem>>, vector<8x128xf32>,
    } else {
    }
    %c0 = arith.constant 0 : index
    %c0_1 = arith.constant 0 : index
    %c0_2 = arith.constant 0 : index
    %3 = vector.load %arg3[%c0, %c0_1, %c0_2] : memref<8x8x16xbf16, #tpu.memory_space<vmem>>, vector<8x8x16xbf16>
    %4 = vector.shape_cast %3 : vector<8x8x16xbf16> to vector<64x16xbf16>
    %c0_3 = arith.constant 0 : index
    %c0_4 = arith.constant 0 : index
    %5 = vector.load %arg4[%c0_3, %c0_4] : memref<16x512xbf16, #tpu.memory_space<vmem>>, vector<16x512xbf16>
    %cst = arith.constant dense<0.000000e+00> : vector<64x512xf32>
    %6 = tpu.matmul %4, %5, %cst {dimension_numbers = #tpu.dot_dimension_numbers<[1], [0], [0], [1], [0, 0, 1, 1], [], []>} : vector<64x16xbf16>, vector<16x512xbf16>, vector<64x512xf32> -> vector<64x512xf32>
    %c0_5 = arith.constant 0 : index
    %c0_6 = arith.constant 0 : index
    %7 = vector.load %arg6[%c0_5, %c0_6] : memref<1x512xf32, #tpu.memory_space<vmem>>, vector<1x512xf32>
    %8 = vector.broadcast %7 : vector<1x512xf32> to vector<64x512xf32>
    %9 = arith.addf %6, %8 : vector<64x512xf32>
    %10 = vector.shape_cast %9 : vector<64x512xf32> to vector<8x8x512xf32>
    %c0_7 = arith.constant 0 : index
    %c0_8 = arith.constant 0 : index
    %c0_9 = arith.constant 0 : index
    %11 = vector.load %arg10[%c0_7, %c0_8, %c0_9] : memref<8x8x512xf32, #tpu.memory_space<vmem>>, vector<8x8x512xf32>
    tpu.vector_store %arg10[%c0_7, %c0_8, %c0_9], %10 {strides = array<i32>} : memref<8x8x512xf32, #tpu.memory_space<vmem>>, vector<8x8x512xf32>,
    %c0_10 = arith.constant 0 : index
    %c0_11 = arith.constant 0 : index
    %12 = vector.load %arg5[%c0_10, %c0_11] : memref<128x512xbf16, #tpu.memory_space<vmem>>, vector<128x512xbf16>
    %c0_12 = arith.constant 0 : index
    %c0_13 = arith.constant 0 : index
    %13 = vector.load %arg2[%c0_12, %c0_13] : memref<8x1xi32, #tpu.memory_space<vmem>>, vector<8x1xi32>
    %c8_i32 = arith.constant 8 : i32
    %14 = arith.muli %arg1, %c8_i32 : i32
    %c0_14 = arith.constant 0 : index
    %c0_15 = arith.constant 0 : index
    %15 = vector.load %arg11[%c0_14, %c0_15] : memref<8x128xf32, #tpu.memory_space<vmem>>, vector<8x128xf32>
    %c0_16 = arith.constant 0 : index
    %c0_17 = arith.constant 0 : index
    %16 = vector.load %arg12[%c0_16, %c0_17] : memref<8x128xf32, #tpu.memory_space<vmem>>, vector<8x128xf32>
    %c0_i32_18 = arith.constant 0 : i32
    %17 = arith.index_cast %c0_i32_18 : i32 to index
    %c0_19 = arith.constant 0 : index
    %c0_20 = arith.constant 0 : index
    %18 = vector.load %arg10[%17, %c0_19, %c0_20] : memref<8x8x512xf32, #tpu.memory_space<vmem>>, vector<1x8x512xf32>
    %19 = vector.shape_cast %18 : vector<1x8x512xf32> to vector<8x512xf32>
    %20 = arith.truncf %15 : vector<8x128xf32> to vector<8x128xbf16>
    %cst_21 = arith.constant dense<0.000000e+00> : vector<8x512xf32>
    %21 = tpu.matmul %20, %12, %cst_21 {dimension_numbers = #tpu.dot_dimension_numbers<[1], [0], [0], [1], [0, 0, 1, 1], [], []>} : vector<8x128xbf16>, vector<128x512xbf16>, vector<8x512xf32> -> vector<8x512xf32>
    %22 = arith.addf %19, %21 : vector<8x512xf32>
    %23 = vector.extract_strided_slice %22 {offsets = [0, 0], sizes = [8, 128], strides = [1, 1]} : vector<8x512xf32> to vector<8x128xf32>
    %24 = arith.negf %23 : vector<8x128xf32>
    %25 = math.exp %24 : vector<8x128xf32>
    %cst_22 = arith.constant 1.000000e+00 : f32
    %26 = vector.broadcast %cst_22 : f32 to vector<8x128xf32>
    %27 = arith.addf %26, %25 : vector<8x128xf32>
    %28 = arith.divf %26, %27 : vector<8x128xf32>
    %29 = vector.extract_strided_slice %22 {offsets = [0, 128], sizes = [8, 128], strides = [1, 1]} : vector<8x512xf32> to vector<8x128xf32>
    %30 = arith.negf %29 : vector<8x128xf32>
    %31 = math.exp %30 : vector<8x128xf32>
    %cst_23 = arith.constant 1.000000e+00 : f32
    %32 = vector.broadcast %cst_23 : f32 to vector<8x128xf32>
    %33 = arith.addf %32, %31 : vector<8x128xf32>
    %34 = arith.divf %32, %33 : vector<8x128xf32>
    %35 = vector.extract_strided_slice %22 {offsets = [0, 256], sizes = [8, 128], strides = [1, 1]} : vector<8x512xf32> to vector<8x128xf32>
    %36 = math.tanh %35 : vector<8x128xf32>
    %37 = vector.extract_strided_slice %22 {offsets = [0, 384], sizes = [8, 128], strides = [1, 1]} : vector<8x512xf32> to vector<8x128xf32>
    %38 = arith.negf %37 : vector<8x128xf32>
    %39 = math.exp %38 : vector<8x128xf32>
    %cst_24 = arith.constant 1.000000e+00 : f32
    %40 = vector.broadcast %cst_24 : f32 to vector<8x128xf32>
    %41 = arith.addf %40, %39 : vector<8x128xf32>
    %42 = arith.divf %40, %41 : vector<8x128xf32>
    %43 = arith.mulf %34, %16 : vector<8x128xf32>
    %44 = arith.mulf %28, %36 : vector<8x128xf32>
    %45 = arith.addf %43, %44 : vector<8x128xf32>
    %46 = math.tanh %45 : vector<8x128xf32>
    %47 = arith.mulf %42, %46 : vector<8x128xf32>
    %48 = arith.addi %14, %c0_i32_18 : i32
    %49 = vector.broadcast %48 : i32 to vector<8x1xi32>
    %50 = arith.cmpi sgt, %13, %49 : vector<8x1xi32>
    %cst_25 = arith.constant 0.000000e+00 : f32
    %51 = vector.shape_cast %50 : vector<8x1xi1> to vector<8x1xi1>
    %52 = vector.broadcast %51 : vector<8x1xi1> to vector<8x128xi1>
    %53 = vector.broadcast %cst_25 : f32 to vector<8x128xf32>
    %54 = arith.select %52, %47, %53 : vector<8x128xi1>, vector<8x128xf32>
    %55 = arith.truncf %54 : vector<8x128xf32> to vector<8x128xbf16>
    %56 = arith.index_cast %c0_i32_18 : i32 to index
    %c0_26 = arith.constant 0 : index
    %c0_27 = arith.constant 0 : index
    %57 = vector.load %arg7[%56, %c0_26, %c0_27] : memref<8x8x128xbf16, #tpu.memory_space<vmem>>, vector<1x8x128xbf16>
    %58 = vector.shape_cast %57 : vector<1x8x128xbf16> to vector<8x128xbf16>
    %59 = vector.shape_cast %55 : vector<8x128xbf16> to vector<1x8x128xbf16>
    tpu.vector_store %arg7[%56, %c0_26, %c0_27], %59 {strides = array<i32>} : memref<8x8x128xbf16, #tpu.memory_space<vmem>>, vector<1x8x128xbf16>,
    %60 = vector.shape_cast %50 : vector<8x1xi1> to vector<8x1xi1>
    %61 = vector.broadcast %60 : vector<8x1xi1> to vector<8x128xi1>
    %62 = arith.select %61, %47, %15 : vector<8x128xi1>, vector<8x128xf32>
    %63 = vector.shape_cast %50 : vector<8x1xi1> to vector<8x1xi1>
    %64 = vector.broadcast %63 : vector<8x1xi1> to vector<8x128xi1>
    %65 = arith.select %64, %45, %16 : vector<8x128xi1>, vector<8x128xf32>
    %c1_i32 = arith.constant 1 : i32
    %66 = arith.index_cast %c1_i32 : i32 to index
    %c0_28 = arith.constant 0 : index
    %c0_29 = arith.constant 0 : index
    %67 = vector.load %arg10[%66, %c0_28, %c0_29] : memref<8x8x512xf32, #tpu.memory_space<vmem>>, vector<1x8x512xf32>
    %68 = vector.shape_cast %67 : vector<1x8x512xf32> to vector<8x512xf32>
    %69 = arith.truncf %62 : vector<8x128xf32> to vector<8x128xbf16>
    %cst_30 = arith.constant dense<0.000000e+00> : vector<8x512xf32>
    %70 = tpu.matmul %69, %12, %cst_30 {dimension_numbers = #tpu.dot_dimension_numbers<[1], [0], [0], [1], [0, 0, 1, 1], [], []>} : vector<8x128xbf16>, vector<128x512xbf16>, vector<8x512xf32> -> vector<8x512xf32>
    %71 = arith.addf %68, %70 : vector<8x512xf32>
    %72 = vector.extract_strided_slice %71 {offsets = [0, 0], sizes = [8, 128], strides = [1, 1]} : vector<8x512xf32> to vector<8x128xf32>
    %73 = arith.negf %72 : vector<8x128xf32>
    %74 = math.exp %73 : vector<8x128xf32>
    %cst_31 = arith.constant 1.000000e+00 : f32
    %75 = vector.broadcast %cst_31 : f32 to vector<8x128xf32>
    %76 = arith.addf %75, %74 : vector<8x128xf32>
    %77 = arith.divf %75, %76 : vector<8x128xf32>
    %78 = vector.extract_strided_slice %71 {offsets = [0, 128], sizes = [8, 128], strides = [1, 1]} : vector<8x512xf32> to vector<8x128xf32>
    %79 = arith.negf %78 : vector<8x128xf32>
    %80 = math.exp %79 : vector<8x128xf32>
    %cst_32 = arith.constant 1.000000e+00 : f32
    %81 = vector.broadcast %cst_32 : f32 to vector<8x128xf32>
    %82 = arith.addf %81, %80 : vector<8x128xf32>
    %83 = arith.divf %81, %82 : vector<8x128xf32>
    %84 = vector.extract_strided_slice %71 {offsets = [0, 256], sizes = [8, 128], strides = [1, 1]} : vector<8x512xf32> to vector<8x128xf32>
    %85 = math.tanh %84 : vector<8x128xf32>
    %86 = vector.extract_strided_slice %71 {offsets = [0, 384], sizes = [8, 128], strides = [1, 1]} : vector<8x512xf32> to vector<8x128xf32>
    %87 = arith.negf %86 : vector<8x128xf32>
    %88 = math.exp %87 : vector<8x128xf32>
    %cst_33 = arith.constant 1.000000e+00 : f32
    %89 = vector.broadcast %cst_33 : f32 to vector<8x128xf32>
    %90 = arith.addf %89, %88 : vector<8x128xf32>
    %91 = arith.divf %89, %90 : vector<8x128xf32>
    %92 = arith.mulf %83, %65 : vector<8x128xf32>
    %93 = arith.mulf %77, %85 : vector<8x128xf32>
    %94 = arith.addf %92, %93 : vector<8x128xf32>
    %95 = math.tanh %94 : vector<8x128xf32>
    %96 = arith.mulf %91, %95 : vector<8x128xf32>
    %97 = arith.addi %14, %c1_i32 : i32
    %98 = vector.broadcast %97 : i32 to vector<8x1xi32>
    %99 = arith.cmpi sgt, %13, %98 : vector<8x1xi32>
    %cst_34 = arith.constant 0.000000e+00 : f32
    %100 = vector.shape_cast %99 : vector<8x1xi1> to vector<8x1xi1>
    %101 = vector.broadcast %100 : vector<8x1xi1> to vector<8x128xi1>
    %102 = vector.broadcast %cst_34 : f32 to vector<8x128xf32>
    %103 = arith.select %101, %96, %102 : vector<8x128xi1>, vector<8x128xf32>
    %104 = arith.truncf %103 : vector<8x128xf32> to vector<8x128xbf16>
    %105 = arith.index_cast %c1_i32 : i32 to index
    %c0_35 = arith.constant 0 : index
    %c0_36 = arith.constant 0 : index
    %106 = vector.load %arg7[%105, %c0_35, %c0_36] : memref<8x8x128xbf16, #tpu.memory_space<vmem>>, vector<1x8x128xbf16>
    %107 = vector.shape_cast %106 : vector<1x8x128xbf16> to vector<8x128xbf16>
    %108 = vector.shape_cast %104 : vector<8x128xbf16> to vector<1x8x128xbf16>
    tpu.vector_store %arg7[%105, %c0_35, %c0_36], %108 {strides = array<i32>} : memref<8x8x128xbf16, #tpu.memory_space<vmem>>, vector<1x8x128xbf16>,
    %109 = vector.shape_cast %99 : vector<8x1xi1> to vector<8x1xi1>
    %110 = vector.broadcast %109 : vector<8x1xi1> to vector<8x128xi1>
    %111 = arith.select %110, %96, %62 : vector<8x128xi1>, vector<8x128xf32>
    %112 = vector.shape_cast %99 : vector<8x1xi1> to vector<8x1xi1>
    %113 = vector.broadcast %112 : vector<8x1xi1> to vector<8x128xi1>
    %114 = arith.select %113, %94, %65 : vector<8x128xi1>, vector<8x128xf32>
    %c2_i32 = arith.constant 2 : i32
    %115 = arith.index_cast %c2_i32 : i32 to index
    %c0_37 = arith.constant 0 : index
    %c0_38 = arith.constant 0 : index
    %116 = vector.load %arg10[%115, %c0_37, %c0_38] : memref<8x8x512xf32, #tpu.memory_space<vmem>>, vector<1x8x512xf32>
    %117 = vector.shape_cast %116 : vector<1x8x512xf32> to vector<8x512xf32>
    %118 = arith.truncf %111 : vector<8x128xf32> to vector<8x128xbf16>
    %cst_39 = arith.constant dense<0.000000e+00> : vector<8x512xf32>
    %119 = tpu.matmul %118, %12, %cst_39 {dimension_numbers = #tpu.dot_dimension_numbers<[1], [0], [0], [1], [0, 0, 1, 1], [], []>} : vector<8x128xbf16>, vector<128x512xbf16>, vector<8x512xf32> -> vector<8x512xf32>
    %120 = arith.addf %117, %119 : vector<8x512xf32>
    %121 = vector.extract_strided_slice %120 {offsets = [0, 0], sizes = [8, 128], strides = [1, 1]} : vector<8x512xf32> to vector<8x128xf32>
    %122 = arith.negf %121 : vector<8x128xf32>
    %123 = math.exp %122 : vector<8x128xf32>
    %cst_40 = arith.constant 1.000000e+00 : f32
    %124 = vector.broadcast %cst_40 : f32 to vector<8x128xf32>
    %125 = arith.addf %124, %123 : vector<8x128xf32>
    %126 = arith.divf %124, %125 : vector<8x128xf32>
    %127 = vector.extract_strided_slice %120 {offsets = [0, 128], sizes = [8, 128], strides = [1, 1]} : vector<8x512xf32> to vector<8x128xf32>
    %128 = arith.negf %127 : vector<8x128xf32>
    %129 = math.exp %128 : vector<8x128xf32>
    %cst_41 = arith.constant 1.000000e+00 : f32
    %130 = vector.broadcast %cst_41 : f32 to vector<8x128xf32>
    %131 = arith.addf %130, %129 : vector<8x128xf32>
    %132 = arith.divf %130, %131 : vector<8x128xf32>
    %133 = vector.extract_strided_slice %120 {offsets = [0, 256], sizes = [8, 128], strides = [1, 1]} : vector<8x512xf32> to vector<8x128xf32>
    %134 = math.tanh %133 : vector<8x128xf32>
    %135 = vector.extract_strided_slice %120 {offsets = [0, 384], sizes = [8, 128], strides = [1, 1]} : vector<8x512xf32> to vector<8x128xf32>
    %136 = arith.negf %135 : vector<8x128xf32>
    %137 = math.exp %136 : vector<8x128xf32>
    %cst_42 = arith.constant 1.000000e+00 : f32
    %138 = vector.broadcast %cst_42 : f32 to vector<8x128xf32>
    %139 = arith.addf %138, %137 : vector<8x128xf32>
    %140 = arith.divf %138, %139 : vector<8x128xf32>
    %141 = arith.mulf %132, %114 : vector<8x128xf32>
    %142 = arith.mulf %126, %134 : vector<8x128xf32>
    %143 = arith.addf %141, %142 : vector<8x128xf32>
    %144 = math.tanh %143 : vector<8x128xf32>
    %145 = arith.mulf %140, %144 : vector<8x128xf32>
    %146 = arith.addi %14, %c2_i32 : i32
    %147 = vector.broadcast %146 : i32 to vector<8x1xi32>
    %148 = arith.cmpi sgt, %13, %147 : vector<8x1xi32>
    %cst_43 = arith.constant 0.000000e+00 : f32
    %149 = vector.shape_cast %148 : vector<8x1xi1> to vector<8x1xi1>
    %150 = vector.broadcast %149 : vector<8x1xi1> to vector<8x128xi1>
    %151 = vector.broadcast %cst_43 : f32 to vector<8x128xf32>
    %152 = arith.select %150, %145, %151 : vector<8x128xi1>, vector<8x128xf32>
    %153 = arith.truncf %152 : vector<8x128xf32> to vector<8x128xbf16>
    %154 = arith.index_cast %c2_i32 : i32 to index
    %c0_44 = arith.constant 0 : index
    %c0_45 = arith.constant 0 : index
    %155 = vector.load %arg7[%154, %c0_44, %c0_45] : memref<8x8x128xbf16, #tpu.memory_space<vmem>>, vector<1x8x128xbf16>
    %156 = vector.shape_cast %155 : vector<1x8x128xbf16> to vector<8x128xbf16>
    %157 = vector.shape_cast %153 : vector<8x128xbf16> to vector<1x8x128xbf16>
    tpu.vector_store %arg7[%154, %c0_44, %c0_45], %157 {strides = array<i32>} : memref<8x8x128xbf16, #tpu.memory_space<vmem>>, vector<1x8x128xbf16>,
    %158 = vector.shape_cast %148 : vector<8x1xi1> to vector<8x1xi1>
    %159 = vector.broadcast %158 : vector<8x1xi1> to vector<8x128xi1>
    %160 = arith.select %159, %145, %111 : vector<8x128xi1>, vector<8x128xf32>
    %161 = vector.shape_cast %148 : vector<8x1xi1> to vector<8x1xi1>
    %162 = vector.broadcast %161 : vector<8x1xi1> to vector<8x128xi1>
    %163 = arith.select %162, %143, %114 : vector<8x128xi1>, vector<8x128xf32>
    %c3_i32 = arith.constant 3 : i32
    %164 = arith.index_cast %c3_i32 : i32 to index
    %c0_46 = arith.constant 0 : index
    %c0_47 = arith.constant 0 : index
    %165 = vector.load %arg10[%164, %c0_46, %c0_47] : memref<8x8x512xf32, #tpu.memory_space<vmem>>, vector<1x8x512xf32>
    %166 = vector.shape_cast %165 : vector<1x8x512xf32> to vector<8x512xf32>
    %167 = arith.truncf %160 : vector<8x128xf32> to vector<8x128xbf16>
    %cst_48 = arith.constant dense<0.000000e+00> : vector<8x512xf32>
    %168 = tpu.matmul %167, %12, %cst_48 {dimension_numbers = #tpu.dot_dimension_numbers<[1], [0], [0], [1], [0, 0, 1, 1], [], []>} : vector<8x128xbf16>, vector<128x512xbf16>, vector<8x512xf32> -> vector<8x512xf32>
    %169 = arith.addf %166, %168 : vector<8x512xf32>
    %170 = vector.extract_strided_slice %169 {offsets = [0, 0], sizes = [8, 128], strides = [1, 1]} : vector<8x512xf32> to vector<8x128xf32>
    %171 = arith.negf %170 : vector<8x128xf32>
    %172 = math.exp %171 : vector<8x128xf32>
    %cst_49 = arith.constant 1.000000e+00 : f32
    %173 = vector.broadcast %cst_49 : f32 to vector<8x128xf32>
    %174 = arith.addf %173, %172 : vector<8x128xf32>
    %175 = arith.divf %173, %174 : vector<8x128xf32>
    %176 = vector.extract_strided_slice %169 {offsets = [0, 128], sizes = [8, 128], strides = [1, 1]} : vector<8x512xf32> to vector<8x128xf32>
    %177 = arith.negf %176 : vector<8x128xf32>
    %178 = math.exp %177 : vector<8x128xf32>
    %cst_50 = arith.constant 1.000000e+00 : f32
    %179 = vector.broadcast %cst_50 : f32 to vector<8x128xf32>
    %180 = arith.addf %179, %178 : vector<8x128xf32>
    %181 = arith.divf %179, %180 : vector<8x128xf32>
    %182 = vector.extract_strided_slice %169 {offsets = [0, 256], sizes = [8, 128], strides = [1, 1]} : vector<8x512xf32> to vector<8x128xf32>
    %183 = math.tanh %182 : vector<8x128xf32>
    %184 = vector.extract_strided_slice %169 {offsets = [0, 384], sizes = [8, 128], strides = [1, 1]} : vector<8x512xf32> to vector<8x128xf32>
    %185 = arith.negf %184 : vector<8x128xf32>
    %186 = math.exp %185 : vector<8x128xf32>
    %cst_51 = arith.constant 1.000000e+00 : f32
    %187 = vector.broadcast %cst_51 : f32 to vector<8x128xf32>
    %188 = arith.addf %187, %186 : vector<8x128xf32>
    %189 = arith.divf %187, %188 : vector<8x128xf32>
    %190 = arith.mulf %181, %163 : vector<8x128xf32>
    %191 = arith.mulf %175, %183 : vector<8x128xf32>
    %192 = arith.addf %190, %191 : vector<8x128xf32>
    %193 = math.tanh %192 : vector<8x128xf32>
    %194 = arith.mulf %189, %193 : vector<8x128xf32>
    %195 = arith.addi %14, %c3_i32 : i32
    %196 = vector.broadcast %195 : i32 to vector<8x1xi32>
    %197 = arith.cmpi sgt, %13, %196 : vector<8x1xi32>
    %cst_52 = arith.constant 0.000000e+00 : f32
    %198 = vector.shape_cast %197 : vector<8x1xi1> to vector<8x1xi1>
    %199 = vector.broadcast %198 : vector<8x1xi1> to vector<8x128xi1>
    %200 = vector.broadcast %cst_52 : f32 to vector<8x128xf32>
    %201 = arith.select %199, %194, %200 : vector<8x128xi1>, vector<8x128xf32>
    %202 = arith.truncf %201 : vector<8x128xf32> to vector<8x128xbf16>
    %203 = arith.index_cast %c3_i32 : i32 to index
    %c0_53 = arith.constant 0 : index
    %c0_54 = arith.constant 0 : index
    %204 = vector.load %arg7[%203, %c0_53, %c0_54] : memref<8x8x128xbf16, #tpu.memory_space<vmem>>, vector<1x8x128xbf16>
    %205 = vector.shape_cast %204 : vector<1x8x128xbf16> to vector<8x128xbf16>
    %206 = vector.shape_cast %202 : vector<8x128xbf16> to vector<1x8x128xbf16>
    tpu.vector_store %arg7[%203, %c0_53, %c0_54], %206 {strides = array<i32>} : memref<8x8x128xbf16, #tpu.memory_space<vmem>>, vector<1x8x128xbf16>,
    %207 = vector.shape_cast %197 : vector<8x1xi1> to vector<8x1xi1>
    %208 = vector.broadcast %207 : vector<8x1xi1> to vector<8x128xi1>
    %209 = arith.select %208, %194, %160 : vector<8x128xi1>, vector<8x128xf32>
    %210 = vector.shape_cast %197 : vector<8x1xi1> to vector<8x1xi1>
    %211 = vector.broadcast %210 : vector<8x1xi1> to vector<8x128xi1>
    %212 = arith.select %211, %192, %163 : vector<8x128xi1>, vector<8x128xf32>
    %c4_i32 = arith.constant 4 : i32
    %213 = arith.index_cast %c4_i32 : i32 to index
    %c0_55 = arith.constant 0 : index
    %c0_56 = arith.constant 0 : index
    %214 = vector.load %arg10[%213, %c0_55, %c0_56] : memref<8x8x512xf32, #tpu.memory_space<vmem>>, vector<1x8x512xf32>
    %215 = vector.shape_cast %214 : vector<1x8x512xf32> to vector<8x512xf32>
    %216 = arith.truncf %209 : vector<8x128xf32> to vector<8x128xbf16>
    %cst_57 = arith.constant dense<0.000000e+00> : vector<8x512xf32>
    %217 = tpu.matmul %216, %12, %cst_57 {dimension_numbers = #tpu.dot_dimension_numbers<[1], [0], [0], [1], [0, 0, 1, 1], [], []>} : vector<8x128xbf16>, vector<128x512xbf16>, vector<8x512xf32> -> vector<8x512xf32>
    %218 = arith.addf %215, %217 : vector<8x512xf32>
    %219 = vector.extract_strided_slice %218 {offsets = [0, 0], sizes = [8, 128], strides = [1, 1]} : vector<8x512xf32> to vector<8x128xf32>
    %220 = arith.negf %219 : vector<8x128xf32>
    %221 = math.exp %220 : vector<8x128xf32>
    %cst_58 = arith.constant 1.000000e+00 : f32
    %222 = vector.broadcast %cst_58 : f32 to vector<8x128xf32>
    %223 = arith.addf %222, %221 : vector<8x128xf32>
    %224 = arith.divf %222, %223 : vector<8x128xf32>
    %225 = vector.extract_strided_slice %218 {offsets = [0, 128], sizes = [8, 128], strides = [1, 1]} : vector<8x512xf32> to vector<8x128xf32>
    %226 = arith.negf %225 : vector<8x128xf32>
    %227 = math.exp %226 : vector<8x128xf32>
    %cst_59 = arith.constant 1.000000e+00 : f32
    %228 = vector.broadcast %cst_59 : f32 to vector<8x128xf32>
    %229 = arith.addf %228, %227 : vector<8x128xf32>
    %230 = arith.divf %228, %229 : vector<8x128xf32>
    %231 = vector.extract_strided_slice %218 {offsets = [0, 256], sizes = [8, 128], strides = [1, 1]} : vector<8x512xf32> to vector<8x128xf32>
    %232 = math.tanh %231 : vector<8x128xf32>
    %233 = vector.extract_strided_slice %218 {offsets = [0, 384], sizes = [8, 128], strides = [1, 1]} : vector<8x512xf32> to vector<8x128xf32>
    %234 = arith.negf %233 : vector<8x128xf32>
    %235 = math.exp %234 : vector<8x128xf32>
    %cst_60 = arith.constant 1.000000e+00 : f32
    %236 = vector.broadcast %cst_60 : f32 to vector<8x128xf32>
    %237 = arith.addf %236, %235 : vector<8x128xf32>
    %238 = arith.divf %236, %237 : vector<8x128xf32>
    %239 = arith.mulf %230, %212 : vector<8x128xf32>
    %240 = arith.mulf %224, %232 : vector<8x128xf32>
    %241 = arith.addf %239, %240 : vector<8x128xf32>
    %242 = math.tanh %241 : vector<8x128xf32>
    %243 = arith.mulf %238, %242 : vector<8x128xf32>
    %244 = arith.addi %14, %c4_i32 : i32
    %245 = vector.broadcast %244 : i32 to vector<8x1xi32>
    %246 = arith.cmpi sgt, %13, %245 : vector<8x1xi32>
    %cst_61 = arith.constant 0.000000e+00 : f32
    %247 = vector.shape_cast %246 : vector<8x1xi1> to vector<8x1xi1>
    %248 = vector.broadcast %247 : vector<8x1xi1> to vector<8x128xi1>
    %249 = vector.broadcast %cst_61 : f32 to vector<8x128xf32>
    %250 = arith.select %248, %243, %249 : vector<8x128xi1>, vector<8x128xf32>
    %251 = arith.truncf %250 : vector<8x128xf32> to vector<8x128xbf16>
    %252 = arith.index_cast %c4_i32 : i32 to index
    %c0_62 = arith.constant 0 : index
    %c0_63 = arith.constant 0 : index
    %253 = vector.load %arg7[%252, %c0_62, %c0_63] : memref<8x8x128xbf16, #tpu.memory_space<vmem>>, vector<1x8x128xbf16>
    %254 = vector.shape_cast %253 : vector<1x8x128xbf16> to vector<8x128xbf16>
    %255 = vector.shape_cast %251 : vector<8x128xbf16> to vector<1x8x128xbf16>
    tpu.vector_store %arg7[%252, %c0_62, %c0_63], %255 {strides = array<i32>} : memref<8x8x128xbf16, #tpu.memory_space<vmem>>, vector<1x8x128xbf16>,
    %256 = vector.shape_cast %246 : vector<8x1xi1> to vector<8x1xi1>
    %257 = vector.broadcast %256 : vector<8x1xi1> to vector<8x128xi1>
    %258 = arith.select %257, %243, %209 : vector<8x128xi1>, vector<8x128xf32>
    %259 = vector.shape_cast %246 : vector<8x1xi1> to vector<8x1xi1>
    %260 = vector.broadcast %259 : vector<8x1xi1> to vector<8x128xi1>
    %261 = arith.select %260, %241, %212 : vector<8x128xi1>, vector<8x128xf32>
    %c5_i32 = arith.constant 5 : i32
    %262 = arith.index_cast %c5_i32 : i32 to index
    %c0_64 = arith.constant 0 : index
    %c0_65 = arith.constant 0 : index
    %263 = vector.load %arg10[%262, %c0_64, %c0_65] : memref<8x8x512xf32, #tpu.memory_space<vmem>>, vector<1x8x512xf32>
    %264 = vector.shape_cast %263 : vector<1x8x512xf32> to vector<8x512xf32>
    %265 = arith.truncf %258 : vector<8x128xf32> to vector<8x128xbf16>
    %cst_66 = arith.constant dense<0.000000e+00> : vector<8x512xf32>
    %266 = tpu.matmul %265, %12, %cst_66 {dimension_numbers = #tpu.dot_dimension_numbers<[1], [0], [0], [1], [0, 0, 1, 1], [], []>} : vector<8x128xbf16>, vector<128x512xbf16>, vector<8x512xf32> -> vector<8x512xf32>
    %267 = arith.addf %264, %266 : vector<8x512xf32>
    %268 = vector.extract_strided_slice %267 {offsets = [0, 0], sizes = [8, 128], strides = [1, 1]} : vector<8x512xf32> to vector<8x128xf32>
    %269 = arith.negf %268 : vector<8x128xf32>
    %270 = math.exp %269 : vector<8x128xf32>
    %cst_67 = arith.constant 1.000000e+00 : f32
    %271 = vector.broadcast %cst_67 : f32 to vector<8x128xf32>
    %272 = arith.addf %271, %270 : vector<8x128xf32>
    %273 = arith.divf %271, %272 : vector<8x128xf32>
    %274 = vector.extract_strided_slice %267 {offsets = [0, 128], sizes = [8, 128], strides = [1, 1]} : vector<8x512xf32> to vector<8x128xf32>
    %275 = arith.negf %274 : vector<8x128xf32>
    %276 = math.exp %275 : vector<8x128xf32>
    %cst_68 = arith.constant 1.000000e+00 : f32
    %277 = vector.broadcast %cst_68 : f32 to vector<8x128xf32>
    %278 = arith.addf %277, %276 : vector<8x128xf32>
    %279 = arith.divf %277, %278 : vector<8x128xf32>
    %280 = vector.extract_strided_slice %267 {offsets = [0, 256], sizes = [8, 128], strides = [1, 1]} : vector<8x512xf32> to vector<8x128xf32>
    %281 = math.tanh %280 : vector<8x128xf32>
    %282 = vector.extract_strided_slice %267 {offsets = [0, 384], sizes = [8, 128], strides = [1, 1]} : vector<8x512xf32> to vector<8x128xf32>
    %283 = arith.negf %282 : vector<8x128xf32>
    %284 = math.exp %283 : vector<8x128xf32>
    %cst_69 = arith.constant 1.000000e+00 : f32
    %285 = vector.broadcast %cst_69 : f32 to vector<8x128xf32>
    %286 = arith.addf %285, %284 : vector<8x128xf32>
    %287 = arith.divf %285, %286 : vector<8x128xf32>
    %288 = arith.mulf %279, %261 : vector<8x128xf32>
    %289 = arith.mulf %273, %281 : vector<8x128xf32>
    %290 = arith.addf %288, %289 : vector<8x128xf32>
    %291 = math.tanh %290 : vector<8x128xf32>
    %292 = arith.mulf %287, %291 : vector<8x128xf32>
    %293 = arith.addi %14, %c5_i32 : i32
    %294 = vector.broadcast %293 : i32 to vector<8x1xi32>
    %295 = arith.cmpi sgt, %13, %294 : vector<8x1xi32>
    %cst_70 = arith.constant 0.000000e+00 : f32
    %296 = vector.shape_cast %295 : vector<8x1xi1> to vector<8x1xi1>
    %297 = vector.broadcast %296 : vector<8x1xi1> to vector<8x128xi1>
    %298 = vector.broadcast %cst_70 : f32 to vector<8x128xf32>
    %299 = arith.select %297, %292, %298 : vector<8x128xi1>, vector<8x128xf32>
    %300 = arith.truncf %299 : vector<8x128xf32> to vector<8x128xbf16>
    %301 = arith.index_cast %c5_i32 : i32 to index
    %c0_71 = arith.constant 0 : index
    %c0_72 = arith.constant 0 : index
    %302 = vector.load %arg7[%301, %c0_71, %c0_72] : memref<8x8x128xbf16, #tpu.memory_space<vmem>>, vector<1x8x128xbf16>
    %303 = vector.shape_cast %302 : vector<1x8x128xbf16> to vector<8x128xbf16>
    %304 = vector.shape_cast %300 : vector<8x128xbf16> to vector<1x8x128xbf16>
    tpu.vector_store %arg7[%301, %c0_71, %c0_72], %304 {strides = array<i32>} : memref<8x8x128xbf16, #tpu.memory_space<vmem>>, vector<1x8x128xbf16>,
    %305 = vector.shape_cast %295 : vector<8x1xi1> to vector<8x1xi1>
    %306 = vector.broadcast %305 : vector<8x1xi1> to vector<8x128xi1>
    %307 = arith.select %306, %292, %258 : vector<8x128xi1>, vector<8x128xf32>
    %308 = vector.shape_cast %295 : vector<8x1xi1> to vector<8x1xi1>
    %309 = vector.broadcast %308 : vector<8x1xi1> to vector<8x128xi1>
    %310 = arith.select %309, %290, %261 : vector<8x128xi1>, vector<8x128xf32>
    %c6_i32 = arith.constant 6 : i32
    %311 = arith.index_cast %c6_i32 : i32 to index
    %c0_73 = arith.constant 0 : index
    %c0_74 = arith.constant 0 : index
    %312 = vector.load %arg10[%311, %c0_73, %c0_74] : memref<8x8x512xf32, #tpu.memory_space<vmem>>, vector<1x8x512xf32>
    %313 = vector.shape_cast %312 : vector<1x8x512xf32> to vector<8x512xf32>
    %314 = arith.truncf %307 : vector<8x128xf32> to vector<8x128xbf16>
    %cst_75 = arith.constant dense<0.000000e+00> : vector<8x512xf32>
    %315 = tpu.matmul %314, %12, %cst_75 {dimension_numbers = #tpu.dot_dimension_numbers<[1], [0], [0], [1], [0, 0, 1, 1], [], []>} : vector<8x128xbf16>, vector<128x512xbf16>, vector<8x512xf32> -> vector<8x512xf32>
    %316 = arith.addf %313, %315 : vector<8x512xf32>
    %317 = vector.extract_strided_slice %316 {offsets = [0, 0], sizes = [8, 128], strides = [1, 1]} : vector<8x512xf32> to vector<8x128xf32>
    %318 = arith.negf %317 : vector<8x128xf32>
    %319 = math.exp %318 : vector<8x128xf32>
    %cst_76 = arith.constant 1.000000e+00 : f32
    %320 = vector.broadcast %cst_76 : f32 to vector<8x128xf32>
    %321 = arith.addf %320, %319 : vector<8x128xf32>
    %322 = arith.divf %320, %321 : vector<8x128xf32>
    %323 = vector.extract_strided_slice %316 {offsets = [0, 128], sizes = [8, 128], strides = [1, 1]} : vector<8x512xf32> to vector<8x128xf32>
    %324 = arith.negf %323 : vector<8x128xf32>
    %325 = math.exp %324 : vector<8x128xf32>
    %cst_77 = arith.constant 1.000000e+00 : f32
    %326 = vector.broadcast %cst_77 : f32 to vector<8x128xf32>
    %327 = arith.addf %326, %325 : vector<8x128xf32>
    %328 = arith.divf %326, %327 : vector<8x128xf32>
    %329 = vector.extract_strided_slice %316 {offsets = [0, 256], sizes = [8, 128], strides = [1, 1]} : vector<8x512xf32> to vector<8x128xf32>
    %330 = math.tanh %329 : vector<8x128xf32>
    %331 = vector.extract_strided_slice %316 {offsets = [0, 384], sizes = [8, 128], strides = [1, 1]} : vector<8x512xf32> to vector<8x128xf32>
    %332 = arith.negf %331 : vector<8x128xf32>
    %333 = math.exp %332 : vector<8x128xf32>
    %cst_78 = arith.constant 1.000000e+00 : f32
    %334 = vector.broadcast %cst_78 : f32 to vector<8x128xf32>
    %335 = arith.addf %334, %333 : vector<8x128xf32>
    %336 = arith.divf %334, %335 : vector<8x128xf32>
    %337 = arith.mulf %328, %310 : vector<8x128xf32>
    %338 = arith.mulf %322, %330 : vector<8x128xf32>
    %339 = arith.addf %337, %338 : vector<8x128xf32>
    %340 = math.tanh %339 : vector<8x128xf32>
    %341 = arith.mulf %336, %340 : vector<8x128xf32>
    %342 = arith.addi %14, %c6_i32 : i32
    %343 = vector.broadcast %342 : i32 to vector<8x1xi32>
    %344 = arith.cmpi sgt, %13, %343 : vector<8x1xi32>
    %cst_79 = arith.constant 0.000000e+00 : f32
    %345 = vector.shape_cast %344 : vector<8x1xi1> to vector<8x1xi1>
    %346 = vector.broadcast %345 : vector<8x1xi1> to vector<8x128xi1>
    %347 = vector.broadcast %cst_79 : f32 to vector<8x128xf32>
    %348 = arith.select %346, %341, %347 : vector<8x128xi1>, vector<8x128xf32>
    %349 = arith.truncf %348 : vector<8x128xf32> to vector<8x128xbf16>
    %350 = arith.index_cast %c6_i32 : i32 to index
    %c0_80 = arith.constant 0 : index
    %c0_81 = arith.constant 0 : index
    %351 = vector.load %arg7[%350, %c0_80, %c0_81] : memref<8x8x128xbf16, #tpu.memory_space<vmem>>, vector<1x8x128xbf16>
    %352 = vector.shape_cast %351 : vector<1x8x128xbf16> to vector<8x128xbf16>
    %353 = vector.shape_cast %349 : vector<8x128xbf16> to vector<1x8x128xbf16>
    tpu.vector_store %arg7[%350, %c0_80, %c0_81], %353 {strides = array<i32>} : memref<8x8x128xbf16, #tpu.memory_space<vmem>>, vector<1x8x128xbf16>,
    %354 = vector.shape_cast %344 : vector<8x1xi1> to vector<8x1xi1>
    %355 = vector.broadcast %354 : vector<8x1xi1> to vector<8x128xi1>
    %356 = arith.select %355, %341, %307 : vector<8x128xi1>, vector<8x128xf32>
    %357 = vector.shape_cast %344 : vector<8x1xi1> to vector<8x1xi1>
    %358 = vector.broadcast %357 : vector<8x1xi1> to vector<8x128xi1>
    %359 = arith.select %358, %339, %310 : vector<8x128xi1>, vector<8x128xf32>
    %c7_i32 = arith.constant 7 : i32
    %360 = arith.index_cast %c7_i32 : i32 to index
    %c0_82 = arith.constant 0 : index
    %c0_83 = arith.constant 0 : index
    %361 = vector.load %arg10[%360, %c0_82, %c0_83] : memref<8x8x512xf32, #tpu.memory_space<vmem>>, vector<1x8x512xf32>
    %362 = vector.shape_cast %361 : vector<1x8x512xf32> to vector<8x512xf32>
    %363 = arith.truncf %356 : vector<8x128xf32> to vector<8x128xbf16>
    %cst_84 = arith.constant dense<0.000000e+00> : vector<8x512xf32>
    %364 = tpu.matmul %363, %12, %cst_84 {dimension_numbers = #tpu.dot_dimension_numbers<[1], [0], [0], [1], [0, 0, 1, 1], [], []>} : vector<8x128xbf16>, vector<128x512xbf16>, vector<8x512xf32> -> vector<8x512xf32>
    %365 = arith.addf %362, %364 : vector<8x512xf32>
    %366 = vector.extract_strided_slice %365 {offsets = [0, 0], sizes = [8, 128], strides = [1, 1]} : vector<8x512xf32> to vector<8x128xf32>
    %367 = arith.negf %366 : vector<8x128xf32>
    %368 = math.exp %367 : vector<8x128xf32>
    %cst_85 = arith.constant 1.000000e+00 : f32
    %369 = vector.broadcast %cst_85 : f32 to vector<8x128xf32>
    %370 = arith.addf %369, %368 : vector<8x128xf32>
    %371 = arith.divf %369, %370 : vector<8x128xf32>
    %372 = vector.extract_strided_slice %365 {offsets = [0, 128], sizes = [8, 128], strides = [1, 1]} : vector<8x512xf32> to vector<8x128xf32>
    %373 = arith.negf %372 : vector<8x128xf32>
    %374 = math.exp %373 : vector<8x128xf32>
    %cst_86 = arith.constant 1.000000e+00 : f32
    %375 = vector.broadcast %cst_86 : f32 to vector<8x128xf32>
    %376 = arith.addf %375, %374 : vector<8x128xf32>
    %377 = arith.divf %375, %376 : vector<8x128xf32>
    %378 = vector.extract_strided_slice %365 {offsets = [0, 256], sizes = [8, 128], strides = [1, 1]} : vector<8x512xf32> to vector<8x128xf32>
    %379 = math.tanh %378 : vector<8x128xf32>
    %380 = vector.extract_strided_slice %365 {offsets = [0, 384], sizes = [8, 128], strides = [1, 1]} : vector<8x512xf32> to vector<8x128xf32>
    %381 = arith.negf %380 : vector<8x128xf32>
    %382 = math.exp %381 : vector<8x128xf32>
    %cst_87 = arith.constant 1.000000e+00 : f32
    %383 = vector.broadcast %cst_87 : f32 to vector<8x128xf32>
    %384 = arith.addf %383, %382 : vector<8x128xf32>
    %385 = arith.divf %383, %384 : vector<8x128xf32>
    %386 = arith.mulf %377, %359 : vector<8x128xf32>
    %387 = arith.mulf %371, %379 : vector<8x128xf32>
    %388 = arith.addf %386, %387 : vector<8x128xf32>
    %389 = math.tanh %388 : vector<8x128xf32>
    %390 = arith.mulf %385, %389 : vector<8x128xf32>
    %391 = arith.addi %14, %c7_i32 : i32
    %392 = vector.broadcast %391 : i32 to vector<8x1xi32>
    %393 = arith.cmpi sgt, %13, %392 : vector<8x1xi32>
    %cst_88 = arith.constant 0.000000e+00 : f32
    %394 = vector.shape_cast %393 : vector<8x1xi1> to vector<8x1xi1>
    %395 = vector.broadcast %394 : vector<8x1xi1> to vector<8x128xi1>
    %396 = vector.broadcast %cst_88 : f32 to vector<8x128xf32>
    %397 = arith.select %395, %390, %396 : vector<8x128xi1>, vector<8x128xf32>
    %398 = arith.truncf %397 : vector<8x128xf32> to vector<8x128xbf16>
    %399 = arith.index_cast %c7_i32 : i32 to index
    %c0_89 = arith.constant 0 : index
    %c0_90 = arith.constant 0 : index
    %400 = vector.load %arg7[%399, %c0_89, %c0_90] : memref<8x8x128xbf16, #tpu.memory_space<vmem>>, vector<1x8x128xbf16>
    %401 = vector.shape_cast %400 : vector<1x8x128xbf16> to vector<8x128xbf16>
    %402 = vector.shape_cast %398 : vector<8x128xbf16> to vector<1x8x128xbf16>
    tpu.vector_store %arg7[%399, %c0_89, %c0_90], %402 {strides = array<i32>} : memref<8x8x128xbf16, #tpu.memory_space<vmem>>, vector<1x8x128xbf16>,
    %403 = vector.shape_cast %393 : vector<8x1xi1> to vector<8x1xi1>
    %404 = vector.broadcast %403 : vector<8x1xi1> to vector<8x128xi1>
    %405 = arith.select %404, %390, %356 : vector<8x128xi1>, vector<8x128xf32>
    %406 = vector.shape_cast %393 : vector<8x1xi1> to vector<8x1xi1>
    %407 = vector.broadcast %406 : vector<8x1xi1> to vector<8x128xi1>
    %408 = arith.select %407, %388, %359 : vector<8x128xi1>, vector<8x128xf32>
    %c8_i32_91 = arith.constant 8 : i32
    %c0_92 = arith.constant 0 : index
    %c0_93 = arith.constant 0 : index
    %409 = vector.load %arg11[%c0_92, %c0_93] : memref<8x128xf32, #tpu.memory_space<vmem>>, vector<8x128xf32>
    tpu.vector_store %arg11[%c0_92, %c0_93], %405 {strides = array<i32>} : memref<8x128xf32, #tpu.memory_space<vmem>>, vector<8x128xf32>,
    %c0_94 = arith.constant 0 : index
    %c0_95 = arith.constant 0 : index
    %410 = vector.load %arg12[%c0_94, %c0_95] : memref<8x128xf32, #tpu.memory_space<vmem>>, vector<8x128xf32>
    tpu.vector_store %arg12[%c0_94, %c0_95], %408 {strides = array<i32>} : memref<8x128xf32, #tpu.memory_space<vmem>>, vector<8x128xf32>,
    %c0_i32_96 = arith.constant 0 : i32
    %411 = arith.cmpi eq, %arg1, %c0_i32_96 : i32
    %412 = arith.extui %411 : i1 to i32
    %c0_i32_97 = arith.constant 0 : i32
    %413 = arith.cmpi ne, %412, %c0_i32_97 : i32
    scf.if %413 {
      %c0_98 = arith.constant 0 : index
      %c0_99 = arith.constant 0 : index
      %414 = vector.load %arg8[%c0_98, %c0_99] : memref<8x128xf32, #tpu.memory_space<vmem>>, vector<8x128xf32>
      tpu.vector_store %arg8[%c0_98, %c0_99], %405 {strides = array<i32>} : memref<8x128xf32, #tpu.memory_space<vmem>>, vector<8x128xf32>,
      %c0_100 = arith.constant 0 : index
      %c0_101 = arith.constant 0 : index
      %415 = vector.load %arg9[%c0_100, %c0_101] : memref<8x128xf32, #tpu.memory_space<vmem>>, vector<8x128xf32>
      tpu.vector_store %arg9[%c0_100, %c0_101], %408 {strides = array<i32>} : memref<8x128xf32, #tpu.memory_space<vmem>>, vector<8x128xf32>,
    } else {
    }
    return
  }
  func.func @transform_0(%arg0: i32, %arg1: i32) -> (i32, i32) {
    %c0_i32 = arith.constant 0 : i32
    %c0_i32_0 = arith.constant 0 : i32
    return %arg0, %c0_i32 : i32, i32
  }
  func.func @transform_1(%arg0: i32, %arg1: i32) -> (i32, i32, i32) {
    %c0_i32 = arith.constant 0 : i32
    %c0_i32_0 = arith.constant 0 : i32
    return %arg1, %arg0, %c0_i32 : i32, i32, i32
  }
  func.func @transform_2(%arg0: i32, %arg1: i32) -> (i32, i32) {
    %c0_i32 = arith.constant 0 : i32
    %c0_i32_0 = arith.constant 0 : i32
    %c0_i32_1 = arith.constant 0 : i32
    return %c0_i32, %c0_i32_0 : i32, i32
  }
  func.func @transform_3(%arg0: i32, %arg1: i32) -> (i32, i32) {
    %c0_i32 = arith.constant 0 : i32
    %c0_i32_0 = arith.constant 0 : i32
    %c0_i32_1 = arith.constant 0 : i32
    return %c0_i32, %c0_i32_0 : i32, i32
  }
  func.func @transform_4(%arg0: i32, %arg1: i32) -> (i32, i32) {
    %c0_i32 = arith.constant 0 : i32
    %c0_i32_0 = arith.constant 0 : i32
    %c0_i32_1 = arith.constant 0 : i32
    return %c0_i32, %c0_i32_0 : i32, i32
  }
  func.func @transform_5(%arg0: i32, %arg1: i32) -> (i32, i32, i32) {
    %c0_i32 = arith.constant 0 : i32
    %c0_i32_0 = arith.constant 0 : i32
    return %arg1, %arg0, %c0_i32 : i32, i32, i32
  }
  func.func @transform_6(%arg0: i32, %arg1: i32) -> (i32, i32) {
    %c0_i32 = arith.constant 0 : i32
    %c0_i32_0 = arith.constant 0 : i32
    return %arg0, %c0_i32 : i32, i32
  }
  func.func @transform_7(%arg0: i32, %arg1: i32) -> (i32, i32) {
    %c0_i32 = arith.constant 0 : i32
    %c0_i32_0 = arith.constant 0 : i32
    return %arg0, %c0_i32 : i32, i32
  }
}

module attributes {stable_mosaic.version = 11 : i64} {
  func.func @lstm_layer_kernel(%arg0: i32, %arg1: i32, %arg2: memref<8x1xi32, #tpu.memory_space<vmem>>, %arg3: memref<8x8x128xbf16, #tpu.memory_space<vmem>>, %arg4: memref<128x512xbf16, #tpu.memory_space<vmem>>, %arg5: memref<128x512xbf16, #tpu.memory_space<vmem>>, %arg6: memref<1x512xf32, #tpu.memory_space<vmem>>, %arg7: memref<8x8x128xbf16, #tpu.memory_space<vmem>>, %arg8: memref<8x128xf32, #tpu.memory_space<vmem>>, %arg9: memref<8x128xf32, #tpu.memory_space<vmem>>, %arg10: memref<8x8x512xf32, #tpu.memory_space<vmem>>, %arg11: memref<8x128xf32, #tpu.memory_space<vmem>>, %arg12: memref<8x128xf32, #tpu.memory_space<vmem>>) attributes {dimension_semantics = [#tpu.dimension_semantics<parallel>, #tpu.dimension_semantics<arbitrary>], iteration_bounds = array<i64: 1, 1>, scalar_prefetch = 0 : i64, scratch_operands = 3 : i64, tpu.core_type = #tpu.core_type<tc>, window_params = [{transform_indices = @transform_0, window_bounds = array<i64: 8, 1>}, {transform_indices = @transform_1, window_bounds = array<i64: 8, 8, 128>}, {pipeline_mode = #tpu.pipeline_mode<synchronous>, transform_indices = @transform_2, window_bounds = array<i64: 128, 512>}, {pipeline_mode = #tpu.pipeline_mode<synchronous>, transform_indices = @transform_3, window_bounds = array<i64: 128, 512>}, {pipeline_mode = #tpu.pipeline_mode<synchronous>, transform_indices = @transform_4, window_bounds = array<i64: 1, 512>}, {transform_indices = @transform_5, window_bounds = array<i64: 8, 8, 128>}, {transform_indices = @transform_6, window_bounds = array<i64: 8, 128>}, {transform_indices = @transform_7, window_bounds = array<i64: 8, 128>}]} {
    %c0_i32 = arith.constant 0 : i32
    %0 = arith.cmpi eq, %arg1, %c0_i32 : i32
    %1 = arith.extui %0 : i1 to i32
    %c0_i32_0 = arith.constant 0 : i32
    %2 = arith.cmpi ne, %1, %c0_i32_0 : i32
    scf.if %2 {
      %cst_98 = arith.constant 0.000000e+00 : f32
      %414 = vector.broadcast %cst_98 : f32 to vector<8x128xf32>
      %c0_99 = arith.constant 0 : index
      %c0_100 = arith.constant 0 : index
      %415 = vector.load %arg11[%c0_99, %c0_100] : memref<8x128xf32, #tpu.memory_space<vmem>>, vector<8x128xf32>
      tpu.vector_store %arg11[%c0_99, %c0_100], %414 {strides = array<i32>} : memref<8x128xf32, #tpu.memory_space<vmem>>, vector<8x128xf32>,
      %cst_101 = arith.constant 0.000000e+00 : f32
      %416 = vector.broadcast %cst_101 : f32 to vector<8x128xf32>
      %c0_102 = arith.constant 0 : index
      %c0_103 = arith.constant 0 : index
      %417 = vector.load %arg12[%c0_102, %c0_103] : memref<8x128xf32, #tpu.memory_space<vmem>>, vector<8x128xf32>
      tpu.vector_store %arg12[%c0_102, %c0_103], %416 {strides = array<i32>} : memref<8x128xf32, #tpu.memory_space<vmem>>, vector<8x128xf32>,
    } else {
    }
    %c0 = arith.constant 0 : index
    %c0_1 = arith.constant 0 : index
    %c0_2 = arith.constant 0 : index
    %3 = vector.load %arg3[%c0, %c0_1, %c0_2] : memref<8x8x128xbf16, #tpu.memory_space<vmem>>, vector<8x8x128xbf16>
    %4 = vector.shape_cast %3 : vector<8x8x128xbf16> to vector<64x128xbf16>
    %c0_3 = arith.constant 0 : index
    %c0_4 = arith.constant 0 : index
    %5 = vector.load %arg4[%c0_3, %c0_4] : memref<128x512xbf16, #tpu.memory_space<vmem>>, vector<128x512xbf16>
    %cst = arith.constant dense<0.000000e+00> : vector<64x512xf32>
    %6 = tpu.matmul %4, %5, %cst {dimension_numbers = #tpu.dot_dimension_numbers<[1], [0], [0], [1], [0, 0, 1, 1], [], []>} : vector<64x128xbf16>, vector<128x512xbf16>, vector<64x512xf32> -> vector<64x512xf32>
    %c0_5 = arith.constant 0 : index
    %c0_6 = arith.constant 0 : index
    %7 = vector.load %arg6[%c0_5, %c0_6] : memref<1x512xf32, #tpu.memory_space<vmem>>, vector<1x512xf32>
    %8 = vector.broadcast %7 : vector<1x512xf32> to vector<64x512xf32>
    %9 = arith.addf %6, %8 : vector<64x512xf32>
    %10 = vector.shape_cast %9 : vector<64x512xf32> to vector<8x8x512xf32>
    %c0_7 = arith.constant 0 : index
    %c0_8 = arith.constant 0 : index
    %c0_9 = arith.constant 0 : index
    %11 = vector.load %arg10[%c0_7, %c0_8, %c0_9] : memref<8x8x512xf32, #tpu.memory_space<vmem>>, vector<8x8x512xf32>
    tpu.vector_store %arg10[%c0_7, %c0_8, %c0_9], %10 {strides = array<i32>} : memref<8x8x512xf32, #tpu.memory_space<vmem>>, vector<8x8x512xf32>,
    %c0_10 = arith.constant 0 : index
    %c0_11 = arith.constant 0 : index
    %12 = vector.load %arg5[%c0_10, %c0_11] : memref<128x512xbf16, #tpu.memory_space<vmem>>, vector<128x512xbf16>
    %c0_12 = arith.constant 0 : index
    %c0_13 = arith.constant 0 : index
    %13 = vector.load %arg2[%c0_12, %c0_13] : memref<8x1xi32, #tpu.memory_space<vmem>>, vector<8x1xi32>
    %c8_i32 = arith.constant 8 : i32
    %14 = arith.muli %arg1, %c8_i32 : i32
    %c0_14 = arith.constant 0 : index
    %c0_15 = arith.constant 0 : index
    %15 = vector.load %arg11[%c0_14, %c0_15] : memref<8x128xf32, #tpu.memory_space<vmem>>, vector<8x128xf32>
    %c0_16 = arith.constant 0 : index
    %c0_17 = arith.constant 0 : index
    %16 = vector.load %arg12[%c0_16, %c0_17] : memref<8x128xf32, #tpu.memory_space<vmem>>, vector<8x128xf32>
    %c0_i32_18 = arith.constant 0 : i32
    %17 = arith.index_cast %c0_i32_18 : i32 to index
    %c0_19 = arith.constant 0 : index
    %c0_20 = arith.constant 0 : index
    %18 = vector.load %arg10[%17, %c0_19, %c0_20] : memref<8x8x512xf32, #tpu.memory_space<vmem>>, vector<1x8x512xf32>
    %19 = vector.shape_cast %18 : vector<1x8x512xf32> to vector<8x512xf32>
    %20 = arith.truncf %15 : vector<8x128xf32> to vector<8x128xbf16>
    %cst_21 = arith.constant dense<0.000000e+00> : vector<8x512xf32>
    %21 = tpu.matmul %20, %12, %cst_21 {dimension_numbers = #tpu.dot_dimension_numbers<[1], [0], [0], [1], [0, 0, 1, 1], [], []>} : vector<8x128xbf16>, vector<128x512xbf16>, vector<8x512xf32> -> vector<8x512xf32>
    %22 = arith.addf %19, %21 : vector<8x512xf32>
    %23 = vector.extract_strided_slice %22 {offsets = [0, 0], sizes = [8, 128], strides = [1, 1]} : vector<8x512xf32> to vector<8x128xf32>
    %24 = arith.negf %23 : vector<8x128xf32>
    %25 = math.exp %24 : vector<8x128xf32>
    %cst_22 = arith.constant 1.000000e+00 : f32
    %26 = vector.broadcast %cst_22 : f32 to vector<8x128xf32>
    %27 = arith.addf %26, %25 : vector<8x128xf32>
    %28 = arith.divf %26, %27 : vector<8x128xf32>
    %29 = vector.extract_strided_slice %22 {offsets = [0, 128], sizes = [8, 128], strides = [1, 1]} : vector<8x512xf32> to vector<8x128xf32>
    %30 = arith.negf %29 : vector<8x128xf32>
    %31 = math.exp %30 : vector<8x128xf32>
    %cst_23 = arith.constant 1.000000e+00 : f32
    %32 = vector.broadcast %cst_23 : f32 to vector<8x128xf32>
    %33 = arith.addf %32, %31 : vector<8x128xf32>
    %34 = arith.divf %32, %33 : vector<8x128xf32>
    %35 = vector.extract_strided_slice %22 {offsets = [0, 256], sizes = [8, 128], strides = [1, 1]} : vector<8x512xf32> to vector<8x128xf32>
    %36 = math.tanh %35 : vector<8x128xf32>
    %37 = vector.extract_strided_slice %22 {offsets = [0, 384], sizes = [8, 128], strides = [1, 1]} : vector<8x512xf32> to vector<8x128xf32>
    %38 = arith.negf %37 : vector<8x128xf32>
    %39 = math.exp %38 : vector<8x128xf32>
    %cst_24 = arith.constant 1.000000e+00 : f32
    %40 = vector.broadcast %cst_24 : f32 to vector<8x128xf32>
    %41 = arith.addf %40, %39 : vector<8x128xf32>
    %42 = arith.divf %40, %41 : vector<8x128xf32>
    %43 = arith.mulf %34, %16 : vector<8x128xf32>
    %44 = arith.mulf %28, %36 : vector<8x128xf32>
    %45 = arith.addf %43, %44 : vector<8x128xf32>
    %46 = math.tanh %45 : vector<8x128xf32>
    %47 = arith.mulf %42, %46 : vector<8x128xf32>
    %48 = arith.addi %14, %c0_i32_18 : i32
    %49 = vector.broadcast %48 : i32 to vector<8x1xi32>
    %50 = arith.cmpi sgt, %13, %49 : vector<8x1xi32>
    %cst_25 = arith.constant 0.000000e+00 : f32
    %51 = vector.shape_cast %50 : vector<8x1xi1> to vector<8x1xi1>
    %52 = vector.broadcast %51 : vector<8x1xi1> to vector<8x128xi1>
    %53 = vector.broadcast %cst_25 : f32 to vector<8x128xf32>
    %54 = arith.select %52, %47, %53 : vector<8x128xi1>, vector<8x128xf32>
    %55 = arith.truncf %54 : vector<8x128xf32> to vector<8x128xbf16>
    %56 = arith.index_cast %c0_i32_18 : i32 to index
    %c0_26 = arith.constant 0 : index
    %c0_27 = arith.constant 0 : index
    %57 = vector.load %arg7[%56, %c0_26, %c0_27] : memref<8x8x128xbf16, #tpu.memory_space<vmem>>, vector<1x8x128xbf16>
    %58 = vector.shape_cast %57 : vector<1x8x128xbf16> to vector<8x128xbf16>
    %59 = vector.shape_cast %55 : vector<8x128xbf16> to vector<1x8x128xbf16>
    tpu.vector_store %arg7[%56, %c0_26, %c0_27], %59 {strides = array<i32>} : memref<8x8x128xbf16, #tpu.memory_space<vmem>>, vector<1x8x128xbf16>,
    %60 = vector.shape_cast %50 : vector<8x1xi1> to vector<8x1xi1>
    %61 = vector.broadcast %60 : vector<8x1xi1> to vector<8x128xi1>
    %62 = arith.select %61, %47, %15 : vector<8x128xi1>, vector<8x128xf32>
    %63 = vector.shape_cast %50 : vector<8x1xi1> to vector<8x1xi1>
    %64 = vector.broadcast %63 : vector<8x1xi1> to vector<8x128xi1>
    %65 = arith.select %64, %45, %16 : vector<8x128xi1>, vector<8x128xf32>
    %c1_i32 = arith.constant 1 : i32
    %66 = arith.index_cast %c1_i32 : i32 to index
    %c0_28 = arith.constant 0 : index
    %c0_29 = arith.constant 0 : index
    %67 = vector.load %arg10[%66, %c0_28, %c0_29] : memref<8x8x512xf32, #tpu.memory_space<vmem>>, vector<1x8x512xf32>
    %68 = vector.shape_cast %67 : vector<1x8x512xf32> to vector<8x512xf32>
    %69 = arith.truncf %62 : vector<8x128xf32> to vector<8x128xbf16>
    %cst_30 = arith.constant dense<0.000000e+00> : vector<8x512xf32>
    %70 = tpu.matmul %69, %12, %cst_30 {dimension_numbers = #tpu.dot_dimension_numbers<[1], [0], [0], [1], [0, 0, 1, 1], [], []>} : vector<8x128xbf16>, vector<128x512xbf16>, vector<8x512xf32> -> vector<8x512xf32>
    %71 = arith.addf %68, %70 : vector<8x512xf32>
    %72 = vector.extract_strided_slice %71 {offsets = [0, 0], sizes = [8, 128], strides = [1, 1]} : vector<8x512xf32> to vector<8x128xf32>
    %73 = arith.negf %72 : vector<8x128xf32>
    %74 = math.exp %73 : vector<8x128xf32>
    %cst_31 = arith.constant 1.000000e+00 : f32
    %75 = vector.broadcast %cst_31 : f32 to vector<8x128xf32>
    %76 = arith.addf %75, %74 : vector<8x128xf32>
    %77 = arith.divf %75, %76 : vector<8x128xf32>
    %78 = vector.extract_strided_slice %71 {offsets = [0, 128], sizes = [8, 128], strides = [1, 1]} : vector<8x512xf32> to vector<8x128xf32>
    %79 = arith.negf %78 : vector<8x128xf32>
    %80 = math.exp %79 : vector<8x128xf32>
    %cst_32 = arith.constant 1.000000e+00 : f32
    %81 = vector.broadcast %cst_32 : f32 to vector<8x128xf32>
    %82 = arith.addf %81, %80 : vector<8x128xf32>
    %83 = arith.divf %81, %82 : vector<8x128xf32>
    %84 = vector.extract_strided_slice %71 {offsets = [0, 256], sizes = [8, 128], strides = [1, 1]} : vector<8x512xf32> to vector<8x128xf32>
    %85 = math.tanh %84 : vector<8x128xf32>
    %86 = vector.extract_strided_slice %71 {offsets = [0, 384], sizes = [8, 128], strides = [1, 1]} : vector<8x512xf32> to vector<8x128xf32>
    %87 = arith.negf %86 : vector<8x128xf32>
    %88 = math.exp %87 : vector<8x128xf32>
    %cst_33 = arith.constant 1.000000e+00 : f32
    %89 = vector.broadcast %cst_33 : f32 to vector<8x128xf32>
    %90 = arith.addf %89, %88 : vector<8x128xf32>
    %91 = arith.divf %89, %90 : vector<8x128xf32>
    %92 = arith.mulf %83, %65 : vector<8x128xf32>
    %93 = arith.mulf %77, %85 : vector<8x128xf32>
    %94 = arith.addf %92, %93 : vector<8x128xf32>
    %95 = math.tanh %94 : vector<8x128xf32>
    %96 = arith.mulf %91, %95 : vector<8x128xf32>
    %97 = arith.addi %14, %c1_i32 : i32
    %98 = vector.broadcast %97 : i32 to vector<8x1xi32>
    %99 = arith.cmpi sgt, %13, %98 : vector<8x1xi32>
    %cst_34 = arith.constant 0.000000e+00 : f32
    %100 = vector.shape_cast %99 : vector<8x1xi1> to vector<8x1xi1>
    %101 = vector.broadcast %100 : vector<8x1xi1> to vector<8x128xi1>
    %102 = vector.broadcast %cst_34 : f32 to vector<8x128xf32>
    %103 = arith.select %101, %96, %102 : vector<8x128xi1>, vector<8x128xf32>
    %104 = arith.truncf %103 : vector<8x128xf32> to vector<8x128xbf16>
    %105 = arith.index_cast %c1_i32 : i32 to index
    %c0_35 = arith.constant 0 : index
    %c0_36 = arith.constant 0 : index
    %106 = vector.load %arg7[%105, %c0_35, %c0_36] : memref<8x8x128xbf16, #tpu.memory_space<vmem>>, vector<1x8x128xbf16>
    %107 = vector.shape_cast %106 : vector<1x8x128xbf16> to vector<8x128xbf16>
    %108 = vector.shape_cast %104 : vector<8x128xbf16> to vector<1x8x128xbf16>
    tpu.vector_store %arg7[%105, %c0_35, %c0_36], %108 {strides = array<i32>} : memref<8x8x128xbf16, #tpu.memory_space<vmem>>, vector<1x8x128xbf16>,
    %109 = vector.shape_cast %99 : vector<8x1xi1> to vector<8x1xi1>
    %110 = vector.broadcast %109 : vector<8x1xi1> to vector<8x128xi1>
    %111 = arith.select %110, %96, %62 : vector<8x128xi1>, vector<8x128xf32>
    %112 = vector.shape_cast %99 : vector<8x1xi1> to vector<8x1xi1>
    %113 = vector.broadcast %112 : vector<8x1xi1> to vector<8x128xi1>
    %114 = arith.select %113, %94, %65 : vector<8x128xi1>, vector<8x128xf32>
    %c2_i32 = arith.constant 2 : i32
    %115 = arith.index_cast %c2_i32 : i32 to index
    %c0_37 = arith.constant 0 : index
    %c0_38 = arith.constant 0 : index
    %116 = vector.load %arg10[%115, %c0_37, %c0_38] : memref<8x8x512xf32, #tpu.memory_space<vmem>>, vector<1x8x512xf32>
    %117 = vector.shape_cast %116 : vector<1x8x512xf32> to vector<8x512xf32>
    %118 = arith.truncf %111 : vector<8x128xf32> to vector<8x128xbf16>
    %cst_39 = arith.constant dense<0.000000e+00> : vector<8x512xf32>
    %119 = tpu.matmul %118, %12, %cst_39 {dimension_numbers = #tpu.dot_dimension_numbers<[1], [0], [0], [1], [0, 0, 1, 1], [], []>} : vector<8x128xbf16>, vector<128x512xbf16>, vector<8x512xf32> -> vector<8x512xf32>
    %120 = arith.addf %117, %119 : vector<8x512xf32>
    %121 = vector.extract_strided_slice %120 {offsets = [0, 0], sizes = [8, 128], strides = [1, 1]} : vector<8x512xf32> to vector<8x128xf32>
    %122 = arith.negf %121 : vector<8x128xf32>
    %123 = math.exp %122 : vector<8x128xf32>
    %cst_40 = arith.constant 1.000000e+00 : f32
    %124 = vector.broadcast %cst_40 : f32 to vector<8x128xf32>
    %125 = arith.addf %124, %123 : vector<8x128xf32>
    %126 = arith.divf %124, %125 : vector<8x128xf32>
    %127 = vector.extract_strided_slice %120 {offsets = [0, 128], sizes = [8, 128], strides = [1, 1]} : vector<8x512xf32> to vector<8x128xf32>
    %128 = arith.negf %127 : vector<8x128xf32>
    %129 = math.exp %128 : vector<8x128xf32>
    %cst_41 = arith.constant 1.000000e+00 : f32
    %130 = vector.broadcast %cst_41 : f32 to vector<8x128xf32>
    %131 = arith.addf %130, %129 : vector<8x128xf32>
    %132 = arith.divf %130, %131 : vector<8x128xf32>
    %133 = vector.extract_strided_slice %120 {offsets = [0, 256], sizes = [8, 128], strides = [1, 1]} : vector<8x512xf32> to vector<8x128xf32>
    %134 = math.tanh %133 : vector<8x128xf32>
    %135 = vector.extract_strided_slice %120 {offsets = [0, 384], sizes = [8, 128], strides = [1, 1]} : vector<8x512xf32> to vector<8x128xf32>
    %136 = arith.negf %135 : vector<8x128xf32>
    %137 = math.exp %136 : vector<8x128xf32>
    %cst_42 = arith.constant 1.000000e+00 : f32
    %138 = vector.broadcast %cst_42 : f32 to vector<8x128xf32>
    %139 = arith.addf %138, %137 : vector<8x128xf32>
    %140 = arith.divf %138, %139 : vector<8x128xf32>
    %141 = arith.mulf %132, %114 : vector<8x128xf32>
    %142 = arith.mulf %126, %134 : vector<8x128xf32>
    %143 = arith.addf %141, %142 : vector<8x128xf32>
    %144 = math.tanh %143 : vector<8x128xf32>
    %145 = arith.mulf %140, %144 : vector<8x128xf32>
    %146 = arith.addi %14, %c2_i32 : i32
    %147 = vector.broadcast %146 : i32 to vector<8x1xi32>
    %148 = arith.cmpi sgt, %13, %147 : vector<8x1xi32>
    %cst_43 = arith.constant 0.000000e+00 : f32
    %149 = vector.shape_cast %148 : vector<8x1xi1> to vector<8x1xi1>
    %150 = vector.broadcast %149 : vector<8x1xi1> to vector<8x128xi1>
    %151 = vector.broadcast %cst_43 : f32 to vector<8x128xf32>
    %152 = arith.select %150, %145, %151 : vector<8x128xi1>, vector<8x128xf32>
    %153 = arith.truncf %152 : vector<8x128xf32> to vector<8x128xbf16>
    %154 = arith.index_cast %c2_i32 : i32 to index
    %c0_44 = arith.constant 0 : index
    %c0_45 = arith.constant 0 : index
    %155 = vector.load %arg7[%154, %c0_44, %c0_45] : memref<8x8x128xbf16, #tpu.memory_space<vmem>>, vector<1x8x128xbf16>
    %156 = vector.shape_cast %155 : vector<1x8x128xbf16> to vector<8x128xbf16>
    %157 = vector.shape_cast %153 : vector<8x128xbf16> to vector<1x8x128xbf16>
    tpu.vector_store %arg7[%154, %c0_44, %c0_45], %157 {strides = array<i32>} : memref<8x8x128xbf16, #tpu.memory_space<vmem>>, vector<1x8x128xbf16>,
    %158 = vector.shape_cast %148 : vector<8x1xi1> to vector<8x1xi1>
    %159 = vector.broadcast %158 : vector<8x1xi1> to vector<8x128xi1>
    %160 = arith.select %159, %145, %111 : vector<8x128xi1>, vector<8x128xf32>
    %161 = vector.shape_cast %148 : vector<8x1xi1> to vector<8x1xi1>
    %162 = vector.broadcast %161 : vector<8x1xi1> to vector<8x128xi1>
    %163 = arith.select %162, %143, %114 : vector<8x128xi1>, vector<8x128xf32>
    %c3_i32 = arith.constant 3 : i32
    %164 = arith.index_cast %c3_i32 : i32 to index
    %c0_46 = arith.constant 0 : index
    %c0_47 = arith.constant 0 : index
    %165 = vector.load %arg10[%164, %c0_46, %c0_47] : memref<8x8x512xf32, #tpu.memory_space<vmem>>, vector<1x8x512xf32>
    %166 = vector.shape_cast %165 : vector<1x8x512xf32> to vector<8x512xf32>
    %167 = arith.truncf %160 : vector<8x128xf32> to vector<8x128xbf16>
    %cst_48 = arith.constant dense<0.000000e+00> : vector<8x512xf32>
    %168 = tpu.matmul %167, %12, %cst_48 {dimension_numbers = #tpu.dot_dimension_numbers<[1], [0], [0], [1], [0, 0, 1, 1], [], []>} : vector<8x128xbf16>, vector<128x512xbf16>, vector<8x512xf32> -> vector<8x512xf32>
    %169 = arith.addf %166, %168 : vector<8x512xf32>
    %170 = vector.extract_strided_slice %169 {offsets = [0, 0], sizes = [8, 128], strides = [1, 1]} : vector<8x512xf32> to vector<8x128xf32>
    %171 = arith.negf %170 : vector<8x128xf32>
    %172 = math.exp %171 : vector<8x128xf32>
    %cst_49 = arith.constant 1.000000e+00 : f32
    %173 = vector.broadcast %cst_49 : f32 to vector<8x128xf32>
    %174 = arith.addf %173, %172 : vector<8x128xf32>
    %175 = arith.divf %173, %174 : vector<8x128xf32>
    %176 = vector.extract_strided_slice %169 {offsets = [0, 128], sizes = [8, 128], strides = [1, 1]} : vector<8x512xf32> to vector<8x128xf32>
    %177 = arith.negf %176 : vector<8x128xf32>
    %178 = math.exp %177 : vector<8x128xf32>
    %cst_50 = arith.constant 1.000000e+00 : f32
    %179 = vector.broadcast %cst_50 : f32 to vector<8x128xf32>
    %180 = arith.addf %179, %178 : vector<8x128xf32>
    %181 = arith.divf %179, %180 : vector<8x128xf32>
    %182 = vector.extract_strided_slice %169 {offsets = [0, 256], sizes = [8, 128], strides = [1, 1]} : vector<8x512xf32> to vector<8x128xf32>
    %183 = math.tanh %182 : vector<8x128xf32>
    %184 = vector.extract_strided_slice %169 {offsets = [0, 384], sizes = [8, 128], strides = [1, 1]} : vector<8x512xf32> to vector<8x128xf32>
    %185 = arith.negf %184 : vector<8x128xf32>
    %186 = math.exp %185 : vector<8x128xf32>
    %cst_51 = arith.constant 1.000000e+00 : f32
    %187 = vector.broadcast %cst_51 : f32 to vector<8x128xf32>
    %188 = arith.addf %187, %186 : vector<8x128xf32>
    %189 = arith.divf %187, %188 : vector<8x128xf32>
    %190 = arith.mulf %181, %163 : vector<8x128xf32>
    %191 = arith.mulf %175, %183 : vector<8x128xf32>
    %192 = arith.addf %190, %191 : vector<8x128xf32>
    %193 = math.tanh %192 : vector<8x128xf32>
    %194 = arith.mulf %189, %193 : vector<8x128xf32>
    %195 = arith.addi %14, %c3_i32 : i32
    %196 = vector.broadcast %195 : i32 to vector<8x1xi32>
    %197 = arith.cmpi sgt, %13, %196 : vector<8x1xi32>
    %cst_52 = arith.constant 0.000000e+00 : f32
    %198 = vector.shape_cast %197 : vector<8x1xi1> to vector<8x1xi1>
    %199 = vector.broadcast %198 : vector<8x1xi1> to vector<8x128xi1>
    %200 = vector.broadcast %cst_52 : f32 to vector<8x128xf32>
    %201 = arith.select %199, %194, %200 : vector<8x128xi1>, vector<8x128xf32>
    %202 = arith.truncf %201 : vector<8x128xf32> to vector<8x128xbf16>
    %203 = arith.index_cast %c3_i32 : i32 to index
    %c0_53 = arith.constant 0 : index
    %c0_54 = arith.constant 0 : index
    %204 = vector.load %arg7[%203, %c0_53, %c0_54] : memref<8x8x128xbf16, #tpu.memory_space<vmem>>, vector<1x8x128xbf16>
    %205 = vector.shape_cast %204 : vector<1x8x128xbf16> to vector<8x128xbf16>
    %206 = vector.shape_cast %202 : vector<8x128xbf16> to vector<1x8x128xbf16>
    tpu.vector_store %arg7[%203, %c0_53, %c0_54], %206 {strides = array<i32>} : memref<8x8x128xbf16, #tpu.memory_space<vmem>>, vector<1x8x128xbf16>,
    %207 = vector.shape_cast %197 : vector<8x1xi1> to vector<8x1xi1>
    %208 = vector.broadcast %207 : vector<8x1xi1> to vector<8x128xi1>
    %209 = arith.select %208, %194, %160 : vector<8x128xi1>, vector<8x128xf32>
    %210 = vector.shape_cast %197 : vector<8x1xi1> to vector<8x1xi1>
    %211 = vector.broadcast %210 : vector<8x1xi1> to vector<8x128xi1>
    %212 = arith.select %211, %192, %163 : vector<8x128xi1>, vector<8x128xf32>
    %c4_i32 = arith.constant 4 : i32
    %213 = arith.index_cast %c4_i32 : i32 to index
    %c0_55 = arith.constant 0 : index
    %c0_56 = arith.constant 0 : index
    %214 = vector.load %arg10[%213, %c0_55, %c0_56] : memref<8x8x512xf32, #tpu.memory_space<vmem>>, vector<1x8x512xf32>
    %215 = vector.shape_cast %214 : vector<1x8x512xf32> to vector<8x512xf32>
    %216 = arith.truncf %209 : vector<8x128xf32> to vector<8x128xbf16>
    %cst_57 = arith.constant dense<0.000000e+00> : vector<8x512xf32>
    %217 = tpu.matmul %216, %12, %cst_57 {dimension_numbers = #tpu.dot_dimension_numbers<[1], [0], [0], [1], [0, 0, 1, 1], [], []>} : vector<8x128xbf16>, vector<128x512xbf16>, vector<8x512xf32> -> vector<8x512xf32>
    %218 = arith.addf %215, %217 : vector<8x512xf32>
    %219 = vector.extract_strided_slice %218 {offsets = [0, 0], sizes = [8, 128], strides = [1, 1]} : vector<8x512xf32> to vector<8x128xf32>
    %220 = arith.negf %219 : vector<8x128xf32>
    %221 = math.exp %220 : vector<8x128xf32>
    %cst_58 = arith.constant 1.000000e+00 : f32
    %222 = vector.broadcast %cst_58 : f32 to vector<8x128xf32>
    %223 = arith.addf %222, %221 : vector<8x128xf32>
    %224 = arith.divf %222, %223 : vector<8x128xf32>
    %225 = vector.extract_strided_slice %218 {offsets = [0, 128], sizes = [8, 128], strides = [1, 1]} : vector<8x512xf32> to vector<8x128xf32>
    %226 = arith.negf %225 : vector<8x128xf32>
    %227 = math.exp %226 : vector<8x128xf32>
    %cst_59 = arith.constant 1.000000e+00 : f32
    %228 = vector.broadcast %cst_59 : f32 to vector<8x128xf32>
    %229 = arith.addf %228, %227 : vector<8x128xf32>
    %230 = arith.divf %228, %229 : vector<8x128xf32>
    %231 = vector.extract_strided_slice %218 {offsets = [0, 256], sizes = [8, 128], strides = [1, 1]} : vector<8x512xf32> to vector<8x128xf32>
    %232 = math.tanh %231 : vector<8x128xf32>
    %233 = vector.extract_strided_slice %218 {offsets = [0, 384], sizes = [8, 128], strides = [1, 1]} : vector<8x512xf32> to vector<8x128xf32>
    %234 = arith.negf %233 : vector<8x128xf32>
    %235 = math.exp %234 : vector<8x128xf32>
    %cst_60 = arith.constant 1.000000e+00 : f32
    %236 = vector.broadcast %cst_60 : f32 to vector<8x128xf32>
    %237 = arith.addf %236, %235 : vector<8x128xf32>
    %238 = arith.divf %236, %237 : vector<8x128xf32>
    %239 = arith.mulf %230, %212 : vector<8x128xf32>
    %240 = arith.mulf %224, %232 : vector<8x128xf32>
    %241 = arith.addf %239, %240 : vector<8x128xf32>
    %242 = math.tanh %241 : vector<8x128xf32>
    %243 = arith.mulf %238, %242 : vector<8x128xf32>
    %244 = arith.addi %14, %c4_i32 : i32
    %245 = vector.broadcast %244 : i32 to vector<8x1xi32>
    %246 = arith.cmpi sgt, %13, %245 : vector<8x1xi32>
    %cst_61 = arith.constant 0.000000e+00 : f32
    %247 = vector.shape_cast %246 : vector<8x1xi1> to vector<8x1xi1>
    %248 = vector.broadcast %247 : vector<8x1xi1> to vector<8x128xi1>
    %249 = vector.broadcast %cst_61 : f32 to vector<8x128xf32>
    %250 = arith.select %248, %243, %249 : vector<8x128xi1>, vector<8x128xf32>
    %251 = arith.truncf %250 : vector<8x128xf32> to vector<8x128xbf16>
    %252 = arith.index_cast %c4_i32 : i32 to index
    %c0_62 = arith.constant 0 : index
    %c0_63 = arith.constant 0 : index
    %253 = vector.load %arg7[%252, %c0_62, %c0_63] : memref<8x8x128xbf16, #tpu.memory_space<vmem>>, vector<1x8x128xbf16>
    %254 = vector.shape_cast %253 : vector<1x8x128xbf16> to vector<8x128xbf16>
    %255 = vector.shape_cast %251 : vector<8x128xbf16> to vector<1x8x128xbf16>
    tpu.vector_store %arg7[%252, %c0_62, %c0_63], %255 {strides = array<i32>} : memref<8x8x128xbf16, #tpu.memory_space<vmem>>, vector<1x8x128xbf16>,
    %256 = vector.shape_cast %246 : vector<8x1xi1> to vector<8x1xi1>
    %257 = vector.broadcast %256 : vector<8x1xi1> to vector<8x128xi1>
    %258 = arith.select %257, %243, %209 : vector<8x128xi1>, vector<8x128xf32>
    %259 = vector.shape_cast %246 : vector<8x1xi1> to vector<8x1xi1>
    %260 = vector.broadcast %259 : vector<8x1xi1> to vector<8x128xi1>
    %261 = arith.select %260, %241, %212 : vector<8x128xi1>, vector<8x128xf32>
    %c5_i32 = arith.constant 5 : i32
    %262 = arith.index_cast %c5_i32 : i32 to index
    %c0_64 = arith.constant 0 : index
    %c0_65 = arith.constant 0 : index
    %263 = vector.load %arg10[%262, %c0_64, %c0_65] : memref<8x8x512xf32, #tpu.memory_space<vmem>>, vector<1x8x512xf32>
    %264 = vector.shape_cast %263 : vector<1x8x512xf32> to vector<8x512xf32>
    %265 = arith.truncf %258 : vector<8x128xf32> to vector<8x128xbf16>
    %cst_66 = arith.constant dense<0.000000e+00> : vector<8x512xf32>
    %266 = tpu.matmul %265, %12, %cst_66 {dimension_numbers = #tpu.dot_dimension_numbers<[1], [0], [0], [1], [0, 0, 1, 1], [], []>} : vector<8x128xbf16>, vector<128x512xbf16>, vector<8x512xf32> -> vector<8x512xf32>
    %267 = arith.addf %264, %266 : vector<8x512xf32>
    %268 = vector.extract_strided_slice %267 {offsets = [0, 0], sizes = [8, 128], strides = [1, 1]} : vector<8x512xf32> to vector<8x128xf32>
    %269 = arith.negf %268 : vector<8x128xf32>
    %270 = math.exp %269 : vector<8x128xf32>
    %cst_67 = arith.constant 1.000000e+00 : f32
    %271 = vector.broadcast %cst_67 : f32 to vector<8x128xf32>
    %272 = arith.addf %271, %270 : vector<8x128xf32>
    %273 = arith.divf %271, %272 : vector<8x128xf32>
    %274 = vector.extract_strided_slice %267 {offsets = [0, 128], sizes = [8, 128], strides = [1, 1]} : vector<8x512xf32> to vector<8x128xf32>
    %275 = arith.negf %274 : vector<8x128xf32>
    %276 = math.exp %275 : vector<8x128xf32>
    %cst_68 = arith.constant 1.000000e+00 : f32
    %277 = vector.broadcast %cst_68 : f32 to vector<8x128xf32>
    %278 = arith.addf %277, %276 : vector<8x128xf32>
    %279 = arith.divf %277, %278 : vector<8x128xf32>
    %280 = vector.extract_strided_slice %267 {offsets = [0, 256], sizes = [8, 128], strides = [1, 1]} : vector<8x512xf32> to vector<8x128xf32>
    %281 = math.tanh %280 : vector<8x128xf32>
    %282 = vector.extract_strided_slice %267 {offsets = [0, 384], sizes = [8, 128], strides = [1, 1]} : vector<8x512xf32> to vector<8x128xf32>
    %283 = arith.negf %282 : vector<8x128xf32>
    %284 = math.exp %283 : vector<8x128xf32>
    %cst_69 = arith.constant 1.000000e+00 : f32
    %285 = vector.broadcast %cst_69 : f32 to vector<8x128xf32>
    %286 = arith.addf %285, %284 : vector<8x128xf32>
    %287 = arith.divf %285, %286 : vector<8x128xf32>
    %288 = arith.mulf %279, %261 : vector<8x128xf32>
    %289 = arith.mulf %273, %281 : vector<8x128xf32>
    %290 = arith.addf %288, %289 : vector<8x128xf32>
    %291 = math.tanh %290 : vector<8x128xf32>
    %292 = arith.mulf %287, %291 : vector<8x128xf32>
    %293 = arith.addi %14, %c5_i32 : i32
    %294 = vector.broadcast %293 : i32 to vector<8x1xi32>
    %295 = arith.cmpi sgt, %13, %294 : vector<8x1xi32>
    %cst_70 = arith.constant 0.000000e+00 : f32
    %296 = vector.shape_cast %295 : vector<8x1xi1> to vector<8x1xi1>
    %297 = vector.broadcast %296 : vector<8x1xi1> to vector<8x128xi1>
    %298 = vector.broadcast %cst_70 : f32 to vector<8x128xf32>
    %299 = arith.select %297, %292, %298 : vector<8x128xi1>, vector<8x128xf32>
    %300 = arith.truncf %299 : vector<8x128xf32> to vector<8x128xbf16>
    %301 = arith.index_cast %c5_i32 : i32 to index
    %c0_71 = arith.constant 0 : index
    %c0_72 = arith.constant 0 : index
    %302 = vector.load %arg7[%301, %c0_71, %c0_72] : memref<8x8x128xbf16, #tpu.memory_space<vmem>>, vector<1x8x128xbf16>
    %303 = vector.shape_cast %302 : vector<1x8x128xbf16> to vector<8x128xbf16>
    %304 = vector.shape_cast %300 : vector<8x128xbf16> to vector<1x8x128xbf16>
    tpu.vector_store %arg7[%301, %c0_71, %c0_72], %304 {strides = array<i32>} : memref<8x8x128xbf16, #tpu.memory_space<vmem>>, vector<1x8x128xbf16>,
    %305 = vector.shape_cast %295 : vector<8x1xi1> to vector<8x1xi1>
    %306 = vector.broadcast %305 : vector<8x1xi1> to vector<8x128xi1>
    %307 = arith.select %306, %292, %258 : vector<8x128xi1>, vector<8x128xf32>
    %308 = vector.shape_cast %295 : vector<8x1xi1> to vector<8x1xi1>
    %309 = vector.broadcast %308 : vector<8x1xi1> to vector<8x128xi1>
    %310 = arith.select %309, %290, %261 : vector<8x128xi1>, vector<8x128xf32>
    %c6_i32 = arith.constant 6 : i32
    %311 = arith.index_cast %c6_i32 : i32 to index
    %c0_73 = arith.constant 0 : index
    %c0_74 = arith.constant 0 : index
    %312 = vector.load %arg10[%311, %c0_73, %c0_74] : memref<8x8x512xf32, #tpu.memory_space<vmem>>, vector<1x8x512xf32>
    %313 = vector.shape_cast %312 : vector<1x8x512xf32> to vector<8x512xf32>
    %314 = arith.truncf %307 : vector<8x128xf32> to vector<8x128xbf16>
    %cst_75 = arith.constant dense<0.000000e+00> : vector<8x512xf32>
    %315 = tpu.matmul %314, %12, %cst_75 {dimension_numbers = #tpu.dot_dimension_numbers<[1], [0], [0], [1], [0, 0, 1, 1], [], []>} : vector<8x128xbf16>, vector<128x512xbf16>, vector<8x512xf32> -> vector<8x512xf32>
    %316 = arith.addf %313, %315 : vector<8x512xf32>
    %317 = vector.extract_strided_slice %316 {offsets = [0, 0], sizes = [8, 128], strides = [1, 1]} : vector<8x512xf32> to vector<8x128xf32>
    %318 = arith.negf %317 : vector<8x128xf32>
    %319 = math.exp %318 : vector<8x128xf32>
    %cst_76 = arith.constant 1.000000e+00 : f32
    %320 = vector.broadcast %cst_76 : f32 to vector<8x128xf32>
    %321 = arith.addf %320, %319 : vector<8x128xf32>
    %322 = arith.divf %320, %321 : vector<8x128xf32>
    %323 = vector.extract_strided_slice %316 {offsets = [0, 128], sizes = [8, 128], strides = [1, 1]} : vector<8x512xf32> to vector<8x128xf32>
    %324 = arith.negf %323 : vector<8x128xf32>
    %325 = math.exp %324 : vector<8x128xf32>
    %cst_77 = arith.constant 1.000000e+00 : f32
    %326 = vector.broadcast %cst_77 : f32 to vector<8x128xf32>
    %327 = arith.addf %326, %325 : vector<8x128xf32>
    %328 = arith.divf %326, %327 : vector<8x128xf32>
    %329 = vector.extract_strided_slice %316 {offsets = [0, 256], sizes = [8, 128], strides = [1, 1]} : vector<8x512xf32> to vector<8x128xf32>
    %330 = math.tanh %329 : vector<8x128xf32>
    %331 = vector.extract_strided_slice %316 {offsets = [0, 384], sizes = [8, 128], strides = [1, 1]} : vector<8x512xf32> to vector<8x128xf32>
    %332 = arith.negf %331 : vector<8x128xf32>
    %333 = math.exp %332 : vector<8x128xf32>
    %cst_78 = arith.constant 1.000000e+00 : f32
    %334 = vector.broadcast %cst_78 : f32 to vector<8x128xf32>
    %335 = arith.addf %334, %333 : vector<8x128xf32>
    %336 = arith.divf %334, %335 : vector<8x128xf32>
    %337 = arith.mulf %328, %310 : vector<8x128xf32>
    %338 = arith.mulf %322, %330 : vector<8x128xf32>
    %339 = arith.addf %337, %338 : vector<8x128xf32>
    %340 = math.tanh %339 : vector<8x128xf32>
    %341 = arith.mulf %336, %340 : vector<8x128xf32>
    %342 = arith.addi %14, %c6_i32 : i32
    %343 = vector.broadcast %342 : i32 to vector<8x1xi32>
    %344 = arith.cmpi sgt, %13, %343 : vector<8x1xi32>
    %cst_79 = arith.constant 0.000000e+00 : f32
    %345 = vector.shape_cast %344 : vector<8x1xi1> to vector<8x1xi1>
    %346 = vector.broadcast %345 : vector<8x1xi1> to vector<8x128xi1>
    %347 = vector.broadcast %cst_79 : f32 to vector<8x128xf32>
    %348 = arith.select %346, %341, %347 : vector<8x128xi1>, vector<8x128xf32>
    %349 = arith.truncf %348 : vector<8x128xf32> to vector<8x128xbf16>
    %350 = arith.index_cast %c6_i32 : i32 to index
    %c0_80 = arith.constant 0 : index
    %c0_81 = arith.constant 0 : index
    %351 = vector.load %arg7[%350, %c0_80, %c0_81] : memref<8x8x128xbf16, #tpu.memory_space<vmem>>, vector<1x8x128xbf16>
    %352 = vector.shape_cast %351 : vector<1x8x128xbf16> to vector<8x128xbf16>
    %353 = vector.shape_cast %349 : vector<8x128xbf16> to vector<1x8x128xbf16>
    tpu.vector_store %arg7[%350, %c0_80, %c0_81], %353 {strides = array<i32>} : memref<8x8x128xbf16, #tpu.memory_space<vmem>>, vector<1x8x128xbf16>,
    %354 = vector.shape_cast %344 : vector<8x1xi1> to vector<8x1xi1>
    %355 = vector.broadcast %354 : vector<8x1xi1> to vector<8x128xi1>
    %356 = arith.select %355, %341, %307 : vector<8x128xi1>, vector<8x128xf32>
    %357 = vector.shape_cast %344 : vector<8x1xi1> to vector<8x1xi1>
    %358 = vector.broadcast %357 : vector<8x1xi1> to vector<8x128xi1>
    %359 = arith.select %358, %339, %310 : vector<8x128xi1>, vector<8x128xf32>
    %c7_i32 = arith.constant 7 : i32
    %360 = arith.index_cast %c7_i32 : i32 to index
    %c0_82 = arith.constant 0 : index
    %c0_83 = arith.constant 0 : index
    %361 = vector.load %arg10[%360, %c0_82, %c0_83] : memref<8x8x512xf32, #tpu.memory_space<vmem>>, vector<1x8x512xf32>
    %362 = vector.shape_cast %361 : vector<1x8x512xf32> to vector<8x512xf32>
    %363 = arith.truncf %356 : vector<8x128xf32> to vector<8x128xbf16>
    %cst_84 = arith.constant dense<0.000000e+00> : vector<8x512xf32>
    %364 = tpu.matmul %363, %12, %cst_84 {dimension_numbers = #tpu.dot_dimension_numbers<[1], [0], [0], [1], [0, 0, 1, 1], [], []>} : vector<8x128xbf16>, vector<128x512xbf16>, vector<8x512xf32> -> vector<8x512xf32>
    %365 = arith.addf %362, %364 : vector<8x512xf32>
    %366 = vector.extract_strided_slice %365 {offsets = [0, 0], sizes = [8, 128], strides = [1, 1]} : vector<8x512xf32> to vector<8x128xf32>
    %367 = arith.negf %366 : vector<8x128xf32>
    %368 = math.exp %367 : vector<8x128xf32>
    %cst_85 = arith.constant 1.000000e+00 : f32
    %369 = vector.broadcast %cst_85 : f32 to vector<8x128xf32>
    %370 = arith.addf %369, %368 : vector<8x128xf32>
    %371 = arith.divf %369, %370 : vector<8x128xf32>
    %372 = vector.extract_strided_slice %365 {offsets = [0, 128], sizes = [8, 128], strides = [1, 1]} : vector<8x512xf32> to vector<8x128xf32>
    %373 = arith.negf %372 : vector<8x128xf32>
    %374 = math.exp %373 : vector<8x128xf32>
    %cst_86 = arith.constant 1.000000e+00 : f32
    %375 = vector.broadcast %cst_86 : f32 to vector<8x128xf32>
    %376 = arith.addf %375, %374 : vector<8x128xf32>
    %377 = arith.divf %375, %376 : vector<8x128xf32>
    %378 = vector.extract_strided_slice %365 {offsets = [0, 256], sizes = [8, 128], strides = [1, 1]} : vector<8x512xf32> to vector<8x128xf32>
    %379 = math.tanh %378 : vector<8x128xf32>
    %380 = vector.extract_strided_slice %365 {offsets = [0, 384], sizes = [8, 128], strides = [1, 1]} : vector<8x512xf32> to vector<8x128xf32>
    %381 = arith.negf %380 : vector<8x128xf32>
    %382 = math.exp %381 : vector<8x128xf32>
    %cst_87 = arith.constant 1.000000e+00 : f32
    %383 = vector.broadcast %cst_87 : f32 to vector<8x128xf32>
    %384 = arith.addf %383, %382 : vector<8x128xf32>
    %385 = arith.divf %383, %384 : vector<8x128xf32>
    %386 = arith.mulf %377, %359 : vector<8x128xf32>
    %387 = arith.mulf %371, %379 : vector<8x128xf32>
    %388 = arith.addf %386, %387 : vector<8x128xf32>
    %389 = math.tanh %388 : vector<8x128xf32>
    %390 = arith.mulf %385, %389 : vector<8x128xf32>
    %391 = arith.addi %14, %c7_i32 : i32
    %392 = vector.broadcast %391 : i32 to vector<8x1xi32>
    %393 = arith.cmpi sgt, %13, %392 : vector<8x1xi32>
    %cst_88 = arith.constant 0.000000e+00 : f32
    %394 = vector.shape_cast %393 : vector<8x1xi1> to vector<8x1xi1>
    %395 = vector.broadcast %394 : vector<8x1xi1> to vector<8x128xi1>
    %396 = vector.broadcast %cst_88 : f32 to vector<8x128xf32>
    %397 = arith.select %395, %390, %396 : vector<8x128xi1>, vector<8x128xf32>
    %398 = arith.truncf %397 : vector<8x128xf32> to vector<8x128xbf16>
    %399 = arith.index_cast %c7_i32 : i32 to index
    %c0_89 = arith.constant 0 : index
    %c0_90 = arith.constant 0 : index
    %400 = vector.load %arg7[%399, %c0_89, %c0_90] : memref<8x8x128xbf16, #tpu.memory_space<vmem>>, vector<1x8x128xbf16>
    %401 = vector.shape_cast %400 : vector<1x8x128xbf16> to vector<8x128xbf16>
    %402 = vector.shape_cast %398 : vector<8x128xbf16> to vector<1x8x128xbf16>
    tpu.vector_store %arg7[%399, %c0_89, %c0_90], %402 {strides = array<i32>} : memref<8x8x128xbf16, #tpu.memory_space<vmem>>, vector<1x8x128xbf16>,
    %403 = vector.shape_cast %393 : vector<8x1xi1> to vector<8x1xi1>
    %404 = vector.broadcast %403 : vector<8x1xi1> to vector<8x128xi1>
    %405 = arith.select %404, %390, %356 : vector<8x128xi1>, vector<8x128xf32>
    %406 = vector.shape_cast %393 : vector<8x1xi1> to vector<8x1xi1>
    %407 = vector.broadcast %406 : vector<8x1xi1> to vector<8x128xi1>
    %408 = arith.select %407, %388, %359 : vector<8x128xi1>, vector<8x128xf32>
    %c8_i32_91 = arith.constant 8 : i32
    %c0_92 = arith.constant 0 : index
    %c0_93 = arith.constant 0 : index
    %409 = vector.load %arg11[%c0_92, %c0_93] : memref<8x128xf32, #tpu.memory_space<vmem>>, vector<8x128xf32>
    tpu.vector_store %arg11[%c0_92, %c0_93], %405 {strides = array<i32>} : memref<8x128xf32, #tpu.memory_space<vmem>>, vector<8x128xf32>,
    %c0_94 = arith.constant 0 : index
    %c0_95 = arith.constant 0 : index
    %410 = vector.load %arg12[%c0_94, %c0_95] : memref<8x128xf32, #tpu.memory_space<vmem>>, vector<8x128xf32>
    tpu.vector_store %arg12[%c0_94, %c0_95], %408 {strides = array<i32>} : memref<8x128xf32, #tpu.memory_space<vmem>>, vector<8x128xf32>,
    %c0_i32_96 = arith.constant 0 : i32
    %411 = arith.cmpi eq, %arg1, %c0_i32_96 : i32
    %412 = arith.extui %411 : i1 to i32
    %c0_i32_97 = arith.constant 0 : i32
    %413 = arith.cmpi ne, %412, %c0_i32_97 : i32
    scf.if %413 {
      %c0_98 = arith.constant 0 : index
      %c0_99 = arith.constant 0 : index
      %414 = vector.load %arg8[%c0_98, %c0_99] : memref<8x128xf32, #tpu.memory_space<vmem>>, vector<8x128xf32>
      tpu.vector_store %arg8[%c0_98, %c0_99], %405 {strides = array<i32>} : memref<8x128xf32, #tpu.memory_space<vmem>>, vector<8x128xf32>,
      %c0_100 = arith.constant 0 : index
      %c0_101 = arith.constant 0 : index
      %415 = vector.load %arg9[%c0_100, %c0_101] : memref<8x128xf32, #tpu.memory_space<vmem>>, vector<8x128xf32>
      tpu.vector_store %arg9[%c0_100, %c0_101], %408 {strides = array<i32>} : memref<8x128xf32, #tpu.memory_space<vmem>>, vector<8x128xf32>,
    } else {
    }
    return
  }
  func.func @transform_0(%arg0: i32, %arg1: i32) -> (i32, i32) {
    %c0_i32 = arith.constant 0 : i32
    %c0_i32_0 = arith.constant 0 : i32
    return %arg0, %c0_i32 : i32, i32
  }
  func.func @transform_1(%arg0: i32, %arg1: i32) -> (i32, i32, i32) {
    %c0_i32 = arith.constant 0 : i32
    %c0_i32_0 = arith.constant 0 : i32
    return %arg1, %arg0, %c0_i32 : i32, i32, i32
  }
  func.func @transform_2(%arg0: i32, %arg1: i32) -> (i32, i32) {
    %c0_i32 = arith.constant 0 : i32
    %c0_i32_0 = arith.constant 0 : i32
    %c0_i32_1 = arith.constant 0 : i32
    return %c0_i32, %c0_i32_0 : i32, i32
  }
  func.func @transform_3(%arg0: i32, %arg1: i32) -> (i32, i32) {
    %c0_i32 = arith.constant 0 : i32
    %c0_i32_0 = arith.constant 0 : i32
    %c0_i32_1 = arith.constant 0 : i32
    return %c0_i32, %c0_i32_0 : i32, i32
  }
  func.func @transform_4(%arg0: i32, %arg1: i32) -> (i32, i32) {
    %c0_i32 = arith.constant 0 : i32
    %c0_i32_0 = arith.constant 0 : i32
    %c0_i32_1 = arith.constant 0 : i32
    return %c0_i32, %c0_i32_0 : i32, i32
  }
  func.func @transform_5(%arg0: i32, %arg1: i32) -> (i32, i32, i32) {
    %c0_i32 = arith.constant 0 : i32
    %c0_i32_0 = arith.constant 0 : i32
    return %arg1, %arg0, %c0_i32 : i32, i32, i32
  }
  func.func @transform_6(%arg0: i32, %arg1: i32) -> (i32, i32) {
    %c0_i32 = arith.constant 0 : i32
    %c0_i32_0 = arith.constant 0 : i32
    return %arg0, %c0_i32 : i32, i32
  }
  func.func @transform_7(%arg0: i32, %arg1: i32) -> (i32, i32) {
    %c0_i32 = arith.constant 0 : i32
    %c0_i32_0 = arith.constant 0 : i32
    return %arg0, %c0_i32 : i32, i32
  }
}

module attributes {stable_mosaic.version = 11 : i64} {
  func.func @matmul_bias_kernel(%arg0: i32, %arg1: memref<64x128xbf16, #tpu.memory_space<vmem>>, %arg2: memref<128x128xbf16, #tpu.memory_space<vmem>>, %arg3: memref<1x128xf32, #tpu.memory_space<vmem>>, %arg4: memref<64x128xf32, #tpu.memory_space<vmem>>) attributes {dimension_semantics = [#tpu.dimension_semantics<parallel>], iteration_bounds = array<i64: 1>, scalar_prefetch = 0 : i64, scratch_operands = 0 : i64, tpu.core_type = #tpu.core_type<tc>, window_params = [{transform_indices = @transform_0, window_bounds = array<i64: 64, 128>}, {pipeline_mode = #tpu.pipeline_mode<synchronous>, transform_indices = @transform_1, window_bounds = array<i64: 128, 128>}, {pipeline_mode = #tpu.pipeline_mode<synchronous>, transform_indices = @transform_2, window_bounds = array<i64: 1, 128>}, {transform_indices = @transform_3, window_bounds = array<i64: 64, 128>}]} {
    %c0 = arith.constant 0 : index
    %c0_0 = arith.constant 0 : index
    %0 = vector.load %arg1[%c0, %c0_0] : memref<64x128xbf16, #tpu.memory_space<vmem>>, vector<64x128xbf16>
    %c0_1 = arith.constant 0 : index
    %c0_2 = arith.constant 0 : index
    %1 = vector.load %arg2[%c0_1, %c0_2] : memref<128x128xbf16, #tpu.memory_space<vmem>>, vector<128x128xbf16>
    %cst = arith.constant dense<0.000000e+00> : vector<64x128xf32>
    %2 = tpu.matmul %0, %1, %cst {dimension_numbers = #tpu.dot_dimension_numbers<[1], [0], [0], [1], [0, 0, 1, 1], [], []>} : vector<64x128xbf16>, vector<128x128xbf16>, vector<64x128xf32> -> vector<64x128xf32>
    %c0_3 = arith.constant 0 : index
    %c0_4 = arith.constant 0 : index
    %3 = vector.load %arg3[%c0_3, %c0_4] : memref<1x128xf32, #tpu.memory_space<vmem>>, vector<1x128xf32>
    %4 = vector.broadcast %3 : vector<1x128xf32> to vector<64x128xf32>
    %5 = arith.addf %2, %4 : vector<64x128xf32>
    %c0_5 = arith.constant 0 : index
    %c0_6 = arith.constant 0 : index
    %6 = vector.load %arg4[%c0_5, %c0_6] : memref<64x128xf32, #tpu.memory_space<vmem>>, vector<64x128xf32>
    tpu.vector_store %arg4[%c0_5, %c0_6], %5 {strides = array<i32>} : memref<64x128xf32, #tpu.memory_space<vmem>>, vector<64x128xf32>,
    return
  }
  func.func @transform_0(%arg0: i32) -> (i32, i32) {
    %c0_i32 = arith.constant 0 : i32
    %c0_i32_0 = arith.constant 0 : i32
    return %arg0, %c0_i32 : i32, i32
  }
  func.func @transform_1(%arg0: i32) -> (i32, i32) {
    %c0_i32 = arith.constant 0 : i32
    %c0_i32_0 = arith.constant 0 : i32
    %c0_i32_1 = arith.constant 0 : i32
    return %c0_i32, %c0_i32_0 : i32, i32
  }
  func.func @transform_2(%arg0: i32) -> (i32, i32) {
    %c0_i32 = arith.constant 0 : i32
    %c0_i32_0 = arith.constant 0 : i32
    %c0_i32_1 = arith.constant 0 : i32
    return %c0_i32, %c0_i32_0 : i32, i32
  }
  func.func @transform_3(%arg0: i32) -> (i32, i32) {
    %c0_i32 = arith.constant 0 : i32
    %c0_i32_0 = arith.constant 0 : i32
    return %arg0, %c0_i32 : i32, i32
  }
}

</mosaic_0001>

<bundles_post_ra>
// kernel: neg.1
= control target key start
LH: loop header
LB: loop body
LE: loop exit
PB: predicated region body
PF: predicated region fallthrough
CT: control target
= control target key end

     0   :  { %2 = vsyncpa [#allocation1], 0  ;;  %s44_s6 = smov [#allocation0]   ;;  %s70_s0 = inlined_call_operand.hbm [shape: s32[2], index: 0, kind: input, shape index: {}]   ;;  %s71_s1 = inlined_call_operand.vmem [shape: s32[2], index: 1, kind: output, shape index: {}]  }
   0x1   :  { %s7_s7 = sshll.u32 %s44_s6, 4  ;;  %s20_s10 = scalar_lea.hbm %s70_s0, 16  ;;  %s8_s7 = int_to_ptr.vmem [resolvable:$true] %s7_s7 }
   0x2   :  { %p21_p0 = scmp.ne.s32.totalorder %s70_s0, %s20_s10  ;;  %p24_p1 = scmp.lt.u32.totalorder %s20_s10, %s70_s0 }
   0x4   :  { %p26_p2 = pnand %p24_p1, %p21_p0 }
   0x6   :  { %29 = shalt.err (!%p26_p2)
}
   0x7   :  { %s30_s15 = scalar_lea.vmem %s8_s7, 16  ;;  %s34_s16 = scalar_lea.vmem %s8_s7, 32 }
   0x8   :  { %p31_p3 = scmp.ne.s32.totalorder %s8_s7, %s30_s15  ;;  %p35_p4 = scmp.lt.s32.totalorder %s8_s7, %s8_s7 }
   0x9   :  { %p36_p5 = scmp.lt.s32.totalorder %s34_s16, %s30_s15 }
   0xb   :  { %p37_p6 = por %p36_p5, %p35_p4 }
   0xd   :  { %p38_p7 = pnand %p37_p6, %p31_p3 }
   0xf   :  { %41 = shalt.err (!%p38_p7)
}
  0x10   :  { %10 = dma.hbm_to_vmem [thread:$0]  %s70_s0, 16, %s8_s7, [#allocation1]  }
  0x11   :  { %42 = dma.done.wait [#allocation1], 16  }
  0x12   :  { %43 = vsyncadd [#allocation1], 4294967280  ;;  %v12_v0 = vld [vmem:[#allocation0] sm:$0x1] }
  0x13   :  { %v15_v1 = vsub.s32 0, %v12_v0 }
  0x15   :  { %17 = vst [vmem:[%s71_s1] sm:$0x1] %v15_v1 }
  0x16   :  { %18 = vsyncpa [#allocation1], 1 }

// kernel: base_encoder_forward.4
= control target key start
LH: loop header
LB: loop body
LE: loop exit
PB: predicated region body
PF: predicated region fallthrough
CT: control target
= control target key end

     0   :  { %8 = vsyncpa [#allocation3], 0  ;;  %s416_s9 = smov 0   ;;  %s418_s10 = smov 0   ;;  %s529_s0 = inlined_call_operand.hbm [shape: f32[16,16], index: 0, kind: input, shape index: {}]   ;;  %s530_s1 = inlined_call_operand.vmem [shape: f32[1,16], index: 1, kind: output, shape index: {0}]   ;;  %s531_s2 = inlined_call_operand.vmem [shape: f32[1,16], index: 2, kind: output, shape index: {1}]  }
   0x1   :  { %s420_s11 = smov 0  }
   0x2 LB: > { %s285_s12 = sadd.s32 4294967295, %s394_s11   ;;  %s26_s13 = sadd.s32 1, %s390_s10  ;;  %s394_s11 = sphi %s420_s11, %s14_s11   ;;  %s390_s10 = sphi %s418_s10, %s541_s10   ;;  %s386_s9 = sphi %s416_s9, %s540_s9  }
   0x3   : > { %p28_p0 = scmp.ge.s32.totalorder %s26_s13, 2  ;;  %p286_p1 = scmp.ge.s32.totalorder %s394_s11, 1 }
   0x4   : > { %p99_p2 = scmp.lt.s32.totalorder %s394_s11, 3  ;;  %p441_p4 = scmp.eq.s32.totalorder %s285_s12, 0 }
   0x5   : > { %s543_s13 = smov (%p28_p0, %s26_s13), 0  ;;  %s396_s16 = smov [#allocation2]  }
   0x6   : > { %p437_p3 = pnand %p286_p1, %p99_p2  ;;  %s114_s17 = sshll.u32 %s396_s16, 4  ;;  %s115_s17 = int_to_ptr.vmem [resolvable:$true] %s114_s17 }
   0x7   : > { %s536_s15 = scalar_select %p441_p4, 1, 0 }
   0x8   : > { %s535_s14 = scalar_select %p437_p3, 1, 0 }
   0x9   : > { %p303_p5 = pneg %p437_p3  ;;  %s340_s21 = scalar_lea.hbm %s529_s0, 256 }
   0xa   : > { %p341_p7 = scmp.ne.s32.totalorder %s529_s0, %s340_s21  ;;  %p347_p11 = scmp.lt.u32.totalorder %s340_s21, %s529_s0 }
   0xb   : > { %p449_p6 = pnand %p441_p4, %p303_p5 }
   0xd   : > { %p342_p8 = pneg %p449_p6 }
   0xf   : > { %p343_p9 = pnand %p342_p8, %p341_p7 }
  0x11   : > { %p344_p10 = pneg %p343_p9 }
  0x13   : > { %p349_p12 = pnand %p347_p11, %p344_p10 }
  0x15   : > { %352 = shalt.err (!%p349_p12)
}
  0x16   : > { %s353_s26 = scalar_lea.vmem %s115_s17, 256  ;;  %p361_p2 = scmp.lt.s32.totalorder %s115_s17, %s115_s17 }
  0x17   : > { %p354_p13 = scmp.ne.s32.totalorder %s115_s17, %s353_s26  ;;  %p362_p5 = scmp.lt.s32.totalorder %s353_s26, %s353_s26 }
  0x19   : > { %p356_p0 = pnand %p354_p13, %p342_p8  ;;  %p363_p4 = por %p362_p5, %p361_p2 }
  0x1b   : > { %p357_p1 = pneg %p356_p0 }
  0x1d   : > { %p364_p3 = pnand %p363_p4, %p357_p1 }
  0x1f   : > { %367 = shalt.err (!%p364_p3)
}
  0x20   : > { %s397_s27 = smov 128   ;;  %s398_s28 = smov 8  }
  0x21   : > { %306 = dma.hbm_to_vmem [thread:$0]  (!%p449_p6), %s529_s0, 256, %s115_s17, [#allocation3], %s397_s27, %s397_s27, %s398_s28  }
  0x22   : > { %p538_p7 = scmp.ne.s32.totalorder %s535_s14, 0 }
  0x23   : > { %p539_p9 = scmp.ne.s32.totalorder (!%p538_p7), %s536_s15, 0 }
  0x24   : > { %130 = sbr.rel (%p538_p7) target bundleno = 139 (0x8b), region = 24 }
  0x2b   : > { %381 = dma.done.wait (%p539_p9), [#allocation3], 256  }
  0x2c   : > { %383 = vsyncadd (%p539_p9), [#allocation3], 4294967040  ;;  %p154_p4 = scmp.eq.s32.totalorder %s386_s9, 0  ;;  %v152_v0 = vld [vmem:[#allocation2] sm:$0xff]  ;;  %v153_v1 = vld [vmem:[#allocation2 + $0x8] sm:$0xff] }
  0x2d   : > { %vm160_vm0 = vcmask (%p154_p4), 122880   ;;  %v399_v2 = vmov (%p154_p4), 0.0  }
  0x2e   : > { %159 = sbr.rel (!%p154_p4) target bundleno = 53 (0x35), region = 32  ;;  %161 = vst.msk [vmem:[%s530_s1] sm:$0x1] (%p154_p4), %vm160_vm0, %v399_v2 }
  0x35 PF: > { %p291_p3 = scmp.ne.s32.totalorder %s386_s9, 0 }
  0x36   : > { %vm172_vm1 = vcmask (!%p291_p3), 130048   ;;  %v165_v11 = vld [vmem:[%s530_s1] sm:$0x1] (!%p291_p3)  ;;  %vm183_vm2 = vcmask (!%p291_p3), 122880  }
  0x37   : > { %164 = sbr.rel (%p291_p3) target bundleno = 73 (0x49), region = 36  ;;  %v173_v3 = vsel (!%p291_p3), %vm172_vm1, %v152_v0, 0.0  ;;  %v174_v4 = vsel (!%p291_p3), %vm172_vm1, %v153_v1, 0.0 }
  0x38   : > { %v175_v5 = vadd.f32 (!%p291_p3), %v174_v4, %v173_v3 }
  0x3a   : > { %v176_v6 = vrot.slane (!%p291_p3), %v175_v5, 4 }
  0x3c   : > { %v177_v7 = vadd.f32 (!%p291_p3), %v176_v6, %v175_v5 }
  0x3e   : > { %v178_v8 = vrot.slane %v177_v7, 2 }
  0x40   : > { %v179_v9 = vadd.f32 %v178_v8, %v177_v7 }
  0x42   : > { %v180_v10 = vrot.slane %v179_v9, 1 }
  0x44   : > { %v181_v12 = vadd.f32 %v180_v10, %v179_v9 }
  0x46   : > { %v182_v13 = vadd.f32 %v181_v12, %v165_v11 }
  0x48   : > { %184 = vst.msk [vmem:[%s530_s1] sm:$0x1] %vm183_vm2, %v182_v13 }
  0x49 PF: > { %186 = sbr.rel (!%p154_p4) target bundleno = 83 (0x53), region = 40  ;;  %vm189_vm3 = vcmask (%p154_p4), 122880  }
  0x4f   : > { %v187_v14 = vld [vmem:[%s530_s1] sm:$0x1] (%p154_p4) }
  0x50   : > { %v188_v15 = vmul.f32 0.0625, %v187_v14 }
  0x52   : > { %190 = vst.msk [vmem:[%s530_s1] sm:$0x1] %vm189_vm3, %v188_v15 }
  0x53 PF: > { %p191_p6 = scmp.eq.s32.totalorder %s386_s9, 1 }
  0x54   : > { %vm196_vm4 = vcmask (%p191_p6), 122880   ;;  %v400_v16 = vmov (%p191_p6), 0.0  }
  0x55   : > { %195 = sbr.rel (!%p191_p6) target bundleno = 92 (0x5c), region = 44  ;;  %197 = vst.msk [vmem:[%s531_s2] sm:$0x1] (%p191_p6), %vm196_vm4, %v400_v16 }
  0x5c PF: > { %p293_p8 = scmp.ne.s32.totalorder %s386_s9, 1 }
  0x5d   : > { %v294_v17 = vld [vmem:[%s530_s1] ss:$0 sm:$0xff] (!%p293_p8)  ;;  %vm219_vm5 = vcmask (!%p293_p8), 130048   ;;  %vm230_vm6 = vcmask (!%p293_p8), 122880  }
  0x5e   : > { %200 = sbr.rel (%p293_p8) target bundleno = 116 (0x74), region = 48  ;;  %v208_v18 = vsub.f32 (!%p293_p8), %v152_v0, %v294_v17  ;;  %v209_v19 = vsub.f32 (!%p293_p8), %v153_v1, %v294_v17  ;;  %v216_v30 = vld [vmem:[%s531_s2] sm:$0x1] (!%p293_p8) }
  0x60   : > { %v217_v20 = vmul.f32 (!%p293_p8), %v208_v18, %v208_v18  ;;  %v218_v21 = vmul.f32 (!%p293_p8), %v209_v19, %v209_v19 }
  0x62   : > { %v220_v22 = vsel (!%p293_p8), %vm219_vm5, %v217_v20, 0.0  ;;  %v221_v23 = vsel (!%p293_p8), %vm219_vm5, %v218_v21, 0.0 }
  0x63   : > { %v222_v24 = vadd.f32 (!%p293_p8), %v221_v23, %v220_v22 }
  0x65   : > { %v223_v25 = vrot.slane %v222_v24, 4 }
  0x67   : > { %v224_v26 = vadd.f32 %v223_v25, %v222_v24 }
  0x69   : > { %v225_v27 = vrot.slane %v224_v26, 2 }
  0x6b   : > { %v226_v28 = vadd.f32 %v225_v27, %v224_v26 }
  0x6d   : > { %v227_v29 = vrot.slane %v226_v28, 1 }
  0x6f   : > { %v228_v31 = vadd.f32 %v227_v29, %v226_v28 }
  0x71   : > { %v229_v32 = vadd.f32 %v228_v31, %v216_v30 }
  0x73   : > { %231 = vst.msk [vmem:[%s531_s2] sm:$0x1] %vm230_vm6, %v229_v32 }
  0x74 PF: > { %233 = sbr.rel (!%p191_p6) target bundleno = 139 (0x8b), region = 52  ;;  %vm238_vm7 = vcmask (%p191_p6), 122880  }
  0x7a   : > { %v234_v33 = vld [vmem:[%s531_s2] sm:$0x1] (%p191_p6) }
  0x7b   : > { %v235_v34 = vmul.f32 0.0625, %v234_v33 }
  0x7d   : > { %v236_v35 = vadd.f32 1e-05, %v235_v34 }
  0x7f   : > { %338 = vrsqrt.f32 %v236_v35 }
  0x89   : > { %v339_v36 = vpop.eup %338 }
  0x8a   : > { %239 = vst.msk [vmem:[%s531_s2] sm:$0x1] %vm238_vm7, %v339_v36 }
  0x8b PF: > { %s14_s11 = sadd.s32 1, %s394_s11   ;;  %s540_s9 = smov %s390_s10 }
  0x8c   : > { %p11_p10 = scmp.ge.s32.totalorder %s14_s11, 4   ;;  %s541_s10 = smov %s543_s13 }
  0x8e   :  { %13 = sbr.rel (!%p11_p10) target bundleno = 2 (0x2), region = 85 }
  0x95   :  { %257 = vsyncpa [#allocation3], 1 }
  0x96   :  { %259 = vsyncpa [#allocation3 + $0x1], 1 }

// kernel: base_encoder_forward.7
= control target key start
LH: loop header
LB: loop body
LE: loop exit
PB: predicated region body
PF: predicated region fallthrough
CT: control target
= control target key end

     0   :  { %8 = vsyncpa [#allocation3], 0  ;;  %s511_s0 = inlined_call_operand.hbm [shape: bf16[64,128], index: 0, kind: input, shape index: {}]   ;;  %s512_s1 = inlined_call_operand.hbm [shape: bf16[128,128], index: 1, kind: input, shape index: {}]   ;;  %s513_s2 = inlined_call_operand.hbm [shape: f32[1,128], index: 2, kind: input, shape index: {}]   ;;  %s514_s3 = inlined_call_operand.hbm [shape: f32[64,128], index: 3, kind: output, shape index: {}]  }
   0x1   :  { %9 = vsyncpa [#allocation6], 0 }
   0x2   :  { %10 = vsyncpa [#allocation4], 0  ;;  %s428_s12 = smov [#allocation5]   ;;  %s429_s14 = smov [#allocation2]  }
   0x3   :  { %s28_s13 = sshll.u32 %s428_s12, 4  ;;  %s16_s15 = sshll.u32 %s429_s14, 4  ;;  %s29_s13 = int_to_ptr.vmem [resolvable:$true] %s28_s13  ;;  %s456_s15 = int_to_ptr.vmem [resolvable:$true] %s16_s15 }
   0x4   :  { %s334_s18 = scalar_lea.hbm %s512_s1, 1024 }
   0x5   :  { %p335_p0 = scmp.ne.s32.totalorder %s512_s1, %s334_s18  ;;  %p338_p1 = scmp.lt.u32.totalorder %s334_s18, %s512_s1 }
   0x7   :  { %p340_p2 = pnand %p338_p1, %p335_p0 }
   0x9   :  { %343 = shalt.err (!%p340_p2)
}
   0xa   :  { %s344_s23 = scalar_lea.vmem %s29_s13, 1024  ;;  %p349_p4 = scmp.lt.s32.totalorder %s29_s13, %s29_s13 }
   0xb   :  { %p345_p3 = scmp.ne.s32.totalorder %s29_s13, %s344_s23  ;;  %p350_p5 = scmp.lt.s32.totalorder %s344_s23, %s344_s23 }
   0xd   :  { %p351_p6 = por %p350_p5, %p349_p4 }
   0xf   :  { %p352_p7 = pnand %p351_p6, %p345_p3 }
  0x11   :  { %355 = shalt.err (!%p352_p7)
}
  0x12   :  { %s430_s24 = smov 64   ;;  %s431_s25 = smov 4  }
  0x13   :  { %34 = dma.hbm_to_vmem [thread:$0]  %s512_s1, 1024, %s29_s13, [#allocation6], %s430_s24, %s430_s24, %s431_s25  }
  0x14   :  { %s356_s30 = scalar_lea.hbm %s511_s0, 512 }
  0x15   :  { %p357_p8 = scmp.ne.s32.totalorder %s511_s0, %s356_s30  ;;  %p360_p9 = scmp.lt.u32.totalorder %s356_s30, %s511_s0 }
  0x17   :  { %p362_p10 = pnand %p360_p9, %p357_p8 }
  0x19   :  { %365 = shalt.err (!%p362_p10)
}
  0x1a   :  { %s366_s8 = scalar_lea.vmem %s456_s15, 512  ;;  %p371_p12 = scmp.lt.s32.totalorder %s456_s15, %s456_s15 }
  0x1b   :  { %p367_p11 = scmp.ne.s32.totalorder %s456_s15, %s366_s8  ;;  %p372_p13 = scmp.lt.s32.totalorder %s366_s8, %s366_s8 }
  0x1d   :  { %p373_p0 = por %p372_p13, %p371_p12 }
  0x1f   :  { %p374_p1 = pnand %p373_p0, %p367_p11 }
  0x21   :  { %377 = shalt.err (!%p374_p1)
}
  0x22   :  { %22 = dma.hbm_to_vmem [thread:$0]  %s511_s0, 512, %s456_s15, [#allocation3], %s430_s24, %s430_s24, %s431_s25  }
  0x23   :  { %s432_s10 = smov [#allocation7]   ;;  %s378_s14 = scalar_lea.hbm %s513_s2, 16 }
  0x24   :  { %s41_s11 = sshll.u32 %s432_s10, 4  ;;  %p379_p2 = scmp.ne.s32.totalorder %s513_s2, %s378_s14  ;;  %s42_s11 = int_to_ptr.vmem [resolvable:$true] %s41_s11 }
  0x25   :  { %p382_p3 = scmp.lt.u32.totalorder %s378_s14, %s513_s2 }
  0x27   :  { %p384_p4 = pnand %p382_p3, %p379_p2 }
  0x29   :  { %387 = shalt.err (!%p384_p4)
}
  0x2a   :  { %s388_s20 = scalar_lea.vmem %s42_s11, 16  ;;  %s392_s0 = scalar_lea.vmem %s42_s11, 32 }
  0x2b   :  { %p389_p5 = scmp.ne.s32.totalorder %s42_s11, %s388_s20  ;;  %p393_p6 = scmp.lt.s32.totalorder %s42_s11, %s42_s11 }
  0x2c   :  { %p394_p7 = scmp.lt.s32.totalorder %s392_s0, %s388_s20 }
  0x2e   :  { %p395_p8 = por %p394_p7, %p393_p6 }
  0x30   :  { %p396_p9 = pnand %p395_p8, %p389_p5 }
  0x32   :  { %399 = shalt.err (!%p396_p9)
}
  0x33   :  { %44 = dma.hbm_to_vmem [thread:$0]  %s513_s2, 16, %s42_s11, [#allocation6]  }
  0x34   :  { %422 = dma.done.wait [#allocation3], 512  }
  0x35   :  { %423 = vsyncadd [#allocation3], 4294966784 }
  0x36   :  { %424 = dma.done.wait [#allocation6], 1040  }
  0x37   :  { %425 = vsyncadd [#allocation6], 4294966256  ;;  %v322_v0 = vld [vmem:[#allocation5] sm:$0xff]   ;;  %v323_v1 = vld [vmem:[#allocation5 + $0x8] sm:$0xff]   ;;  %s433_s2 = smov [#allocation8]  }
  0x38   :  { %274 = vmatprep.subr.bf16.mxu0 %v322_v0  ;;  %298 = vmatprep.subr.bf16.mxu1 %v322_v0  ;;  %v324_v2 = vld [vmem:[#allocation5 + $0x10] sm:$0xff]   ;;  %v325_v3 = vld [vmem:[#allocation5 + $0x18] sm:$0xff]   ;;  %v330_v4 = vld [vmem:[#allocation2] sm:$0xff]   ;;  %s236_s22 = sshll.u32 %s433_s2, 4  ;;  %s237_s22 = int_to_ptr.vmem [resolvable:$true] %s236_s22 }
  0x39   :  { %275 = vmatpush3.bf16.msra.mxu0 %v322_v0  ;;  %306 = vmatpush3.bf16.msra.mxu1 %v322_v0  ;;  %v331_v5 = vld [vmem:[#allocation2 + $0x10] sm:$0xff]   ;;  %v326_v6 = vld [vmem:[#allocation5 + $0x20] sm:$0xff]   ;;  %v327_v7 = vld [vmem:[#allocation5 + $0x28] sm:$0xff]   ;;  %s400_s23 = scalar_lea.vmem %s237_s22, 1024  ;;  %p405_p11 = scmp.lt.s32.totalorder %s237_s22, %s237_s22 }
  0x3a   :  { %276 = vmatprep.subr.bf16.mxu0 %v323_v1  ;;  %299 = vmatprep.subr.bf16.mxu1 %v323_v1  ;;  %v328_v8 = vld [vmem:[#allocation5 + $0x30] sm:$0xff]   ;;  %v329_v9 = vld [vmem:[#allocation5 + $0x38] sm:$0xff]   ;;  %v332_v10 = vld [vmem:[#allocation2 + $0x8] sm:$0xff]   ;;  %p401_p10 = scmp.ne.s32.totalorder %s237_s22, %s400_s23  ;;  %p406_p12 = scmp.lt.s32.totalorder %s400_s23, %s400_s23 }
  0x3b   :  { %290 = vmatprep.mubr.bf16.mxu0 %v330_v4  ;;  %294 = vmatprep.mubr.bf16.mxu1 %v331_v5  ;;  %v333_v11 = vld [vmem:[#allocation2 + $0x18] sm:$0xff]   ;;  %v249_v12 = vld [vmem:[#allocation7] ss:$0 sm:$0xff] }
  0x3c   :  { %p407_p13 = por %p406_p12, %p405_p11 }
  0x3d   :  { %277 = vmatpush3.bf16.msra.mxu0 %v323_v1  ;;  %307 = vmatpush3.bf16.msra.mxu1 %v323_v1 }
  0x3e   :  { %278 = vmatprep.subr.bf16.mxu0 %v324_v2  ;;  %300 = vmatprep.subr.bf16.mxu1 %v324_v2  ;;  %p408_p0 = pnand %p407_p13, %p401_p10 }
  0x41   :  { %279 = vmatpush3.bf16.msra.mxu0 %v324_v2  ;;  %308 = vmatpush3.bf16.msra.mxu1 %v324_v2 }
  0x42   :  { %280 = vmatprep.subr.bf16.mxu0 %v325_v3  ;;  %301 = vmatprep.subr.bf16.mxu1 %v325_v3 }
  0x45   :  { %281 = vmatpush3.bf16.msra.mxu0 %v325_v3  ;;  %309 = vmatpush3.bf16.msra.mxu1 %v325_v3 }
  0x46   :  { %282 = vmatprep.subr.bf16.mxu0 %v326_v6  ;;  %302 = vmatprep.subr.bf16.mxu1 %v326_v6 }
  0x49   :  { %283 = vmatpush3.bf16.msra.mxu0 %v326_v6  ;;  %310 = vmatpush3.bf16.msra.mxu1 %v326_v6 }
  0x4a   :  { %284 = vmatprep.subr.bf16.mxu0 %v327_v7  ;;  %303 = vmatprep.subr.bf16.mxu1 %v327_v7 }
  0x4d   :  { %285 = vmatpush3.bf16.msra.mxu0 %v327_v7  ;;  %311 = vmatpush3.bf16.msra.mxu1 %v327_v7 }
  0x4e   :  { %286 = vmatprep.subr.bf16.mxu0 %v328_v8  ;;  %304 = vmatprep.subr.bf16.mxu1 %v328_v8 }
  0x51   :  { %287 = vmatpush3.bf16.msra.mxu0 %v328_v8  ;;  %312 = vmatpush3.bf16.msra.mxu1 %v328_v8 }
  0x52   :  { %288 = vmatprep.subr.bf16.mxu0 %v329_v9  ;;  %305 = vmatprep.subr.bf16.mxu1 %v329_v9 }
  0x55   :  { %289 = vmatpush3.bf16.msra.mxu0 %v329_v9  ;;  %313 = vmatpush3.bf16.msra.mxu1 %v329_v9 }
  0x58   :  { %291 = vmatmul.mubr.bf16.vlgmr.msra.gmra.mrb[0].mxu0 %v332_v10  ;;  %295 = vmatmul.mubr.bf16.vlgmr.msra.gmra.mrb[0].mxu1 %v333_v11 }
 0x12b   :  { %v292_v13 = vpop.f32.mrb[0].mxu0  ;;  %v296_v14 = vpop.f32.mrb[0].mxu1 }
 0x12c   :  { %v201_v15 = vadd.f32 %v292_v13, %v249_v12  ;;  %v217_v16 = vadd.f32 %v296_v14, %v249_v12  ;;  %v192_v17 = vpop.f32.mrb[1].mxu0  ;;  %v208_v18 = vpop.f32.mrb[1].mxu1 }
 0x12d   :  { %v193_v19 = vadd.f32 %v249_v12, %v192_v17  ;;  %v209_v20 = vadd.f32 %v249_v12, %v208_v18  ;;  %v293_v21 = vpop.f32.mrb[2].mxu0  ;;  %v297_v22 = vpop.f32.mrb[2].mxu1 }
 0x12e   :  { %225 = vst [vmem:[#allocation8 + $0x10] sm:$0xff] %v201_v15  ;;  %229 = vst [vmem:[#allocation8 + $0x30] sm:$0xff] %v217_v16  ;;  %v204_v23 = vadd.f32 %v293_v21, %v249_v12  ;;  %v220_v24 = vadd.f32 %v297_v22, %v249_v12  ;;  %v195_v25 = vpop.f32.mrb[3].mxu0  ;;  %v211_v26 = vpop.f32.mrb[3].mxu1 }
 0x12f   :  { %223 = vst [vmem:[#allocation8] sm:$0xff] %v193_v19  ;;  %227 = vst [vmem:[#allocation8 + $0x20] sm:$0xff] %v209_v20  ;;  %v196_v27 = vadd.f32 %v249_v12, %v195_v25  ;;  %v212_v28 = vadd.f32 %v249_v12, %v211_v26 }
 0x130   :  { %226 = vst [vmem:[#allocation8 + $0x18] sm:$0xff] %v204_v23  ;;  %230 = vst [vmem:[#allocation8 + $0x38] sm:$0xff] %v220_v24 }
 0x131   :  { %224 = vst [vmem:[#allocation8 + $0x8] sm:$0xff] %v196_v27  ;;  %228 = vst [vmem:[#allocation8 + $0x28] sm:$0xff] %v212_v28 }
 0x132   :  { %411 = shalt.err (!%p408_p0)
}
 0x133   :  { %s412_s26 = scalar_lea.hbm %s514_s3, 1024 }
 0x134   :  { %p413_p1 = scmp.ne.s32.totalorder %s514_s3, %s412_s26  ;;  %p416_p2 = scmp.lt.u32.totalorder %s412_s26, %s514_s3 }
 0x136   :  { %p418_p3 = pnand %p416_p2, %p413_p1 }
 0x138   :  { %421 = shalt.err (!%p418_p3)
}
 0x139   :  { %s434_s4 = smov 128   ;;  %s435_s5 = smov 8  }
 0x13a   :  { %242 = dma.vmem_to_hbm [thread:$0]  %s237_s22, 1024, %s514_s3, [#allocation4], %s434_s4, %s434_s4, %s435_s5  }
 0x13b   :  { %426 = dma.done.wait [#allocation4], 1024  }
 0x13c   :  { %427 = vsyncadd [#allocation4], 4294966272 }
 0x13d   :  { %246 = vsyncpa [#allocation3], 1 }
 0x13e   :  { %247 = vsyncpa [#allocation6], 1 }
 0x13f   :  { %248 = vsyncpa [#allocation4], 1 }

// kernel: base_encoder_forward.6
= control target key start
LH: loop header
LB: loop body
LE: loop exit
PB: predicated region body
PF: predicated region fallthrough
CT: control target
= control target key end

     0   :  { %13 = vsyncpa [#allocation6], 0  ;;  %s3147_s0 = inlined_call_operand.hbm [shape: s32[8,1], index: 0, kind: input, shape index: {}]   ;;  %s3148_s1 = inlined_call_operand.hbm [shape: bf16[8,8,128], index: 1, kind: input, shape index: {}]   ;;  %s3149_s2 = inlined_call_operand.hbm [shape: bf16[128,512], index: 2, kind: input, shape index: {}]   ;;  %s3150_s3 = inlined_call_operand.hbm [shape: bf16[128,512], index: 3, kind: input, shape index: {}]   ;;  %s3151_s4 = inlined_call_operand.hbm [shape: f32[1,512], index: 4, kind: input, shape index: {}]   ;;  %s3152_s5 = inlined_call_operand.hbm [shape: bf16[8,8,128], index: 5, kind: output, shape index: {0}]   ;;  %s3153_s6 = inlined_call_operand.hbm [shape: f32[8,128], index: 6, kind: output, shape index: {1}]   ;;  %s3154_s7 = inlined_call_operand.hbm [shape: f32[8,128], index: 7, kind: output, shape index: {2}]  }
   0x1   :  { %14 = vsyncpa [#allocation9], 0 }
   0x2   :  { %15 = vsyncpa [#allocation12], 0 }
   0x3   :  { %16 = vsyncpa [#allocation7], 0 }
   0x4   :  { %17 = vsyncpa [#allocation16], 0  ;;  %s2366_s24 = smov [#allocation8]   ;;  %s2180_s28 = scalar_lea.hbm %s3148_s1, 512 }
   0x5   :  { %s33_s25 = sshll.u32 %s2366_s24, 4  ;;  %p2181_p0 = scmp.ne.s32.totalorder %s3148_s1, %s2180_s28  ;;  %s34_s25 = int_to_ptr.vmem [resolvable:$true] %s33_s25 }
   0x6   :  { %p2184_p1 = scmp.lt.u32.totalorder %s2180_s28, %s3148_s1 }
   0x8   :  { %p2186_p2 = pnand %p2184_p1, %p2181_p0 }
   0xa   :  { %2189 = shalt.err (!%p2186_p2)
}
   0xb   :  { %s2190_s10 = scalar_lea.vmem %s34_s25, 512  ;;  %p2195_p4 = scmp.lt.s32.totalorder %s34_s25, %s34_s25 }
   0xc   :  { %p2191_p3 = scmp.ne.s32.totalorder %s34_s25, %s2190_s10  ;;  %p2196_p5 = scmp.lt.s32.totalorder %s2190_s10, %s2190_s10 }
   0xe   :  { %p2197_p6 = por %p2196_p5, %p2195_p4 }
  0x10   :  { %p2198_p7 = pnand %p2197_p6, %p2191_p3 }
  0x12   :  { %2201 = shalt.err (!%p2198_p7)
}
  0x13   :  { %s2367_s11 = smov 64   ;;  %s2368_s12 = smov 4  }
  0x14   :  { %39 = dma.hbm_to_vmem [thread:$0]  %s3148_s1, 512, %s34_s25, [#allocation9], %s2367_s11, %s2367_s11, %s2368_s12  }
  0x15   :  { %s2369_s15 = smov [#allocation11]   ;;  %s2370_s17 = smov [#allocation5]  }
  0x16   :  { %s57_s16 = sshll.u32 %s2369_s15, 4  ;;  %s24_s18 = sshll.u32 %s2370_s17, 4  ;;  %s58_s16 = int_to_ptr.vmem [resolvable:$true] %s57_s16  ;;  %s25_s18 = int_to_ptr.vmem [resolvable:$true] %s24_s18 }
  0x17   :  { %s2202_s21 = scalar_lea.hbm %s3150_s3, 4096 }
  0x18   :  { %p2203_p8 = scmp.ne.s32.totalorder %s3150_s3, %s2202_s21  ;;  %p2206_p9 = scmp.lt.u32.totalorder %s2202_s21, %s3150_s3 }
  0x1a   :  { %p2208_p10 = pnand %p2206_p9, %p2203_p8 }
  0x1c   :  { %2211 = shalt.err (!%p2208_p10)
}
  0x1d   :  { %s2212_s1 = scalar_lea.vmem %s58_s16, 4096  ;;  %p2217_p12 = scmp.lt.s32.totalorder %s58_s16, %s58_s16 }
  0x1e   :  { %p2213_p11 = scmp.ne.s32.totalorder %s58_s16, %s2212_s1  ;;  %p2218_p13 = scmp.lt.s32.totalorder %s2212_s1, %s2212_s1 }
  0x20   :  { %p2219_p0 = por %p2218_p13, %p2217_p12 }
  0x22   :  { %p2220_p1 = pnand %p2219_p0, %p2213_p11 }
  0x24   :  { %2223 = shalt.err (!%p2220_p1)
}
  0x25   :  { %s2371_s25 = smov 256   ;;  %s2372_s27 = smov 16  }
  0x26   :  { %63 = dma.hbm_to_vmem [thread:$0]  %s3150_s3, 4096, %s58_s16, [#allocation12], %s2371_s25, %s2371_s25, %s2372_s27  }
  0x27   :  { %s2224_s9 = scalar_lea.hbm %s3147_s0, 128 }
  0x28   :  { %p2225_p2 = scmp.ne.s32.totalorder %s3147_s0, %s2224_s9  ;;  %p2228_p3 = scmp.lt.u32.totalorder %s2224_s9, %s3147_s0 }
  0x2a   :  { %p2230_p4 = pnand %p2228_p3, %p2225_p2 }
  0x2c   :  { %2233 = shalt.err (!%p2230_p4)
}
  0x2d   :  { %s2234_s17 = scalar_lea.vmem %s25_s18, 128  ;;  %p2239_p6 = scmp.lt.s32.totalorder %s25_s18, %s25_s18 }
  0x2e   :  { %p2235_p5 = scmp.ne.s32.totalorder %s25_s18, %s2234_s17  ;;  %p2240_p7 = scmp.lt.s32.totalorder %s2234_s17, %s2234_s17 }
  0x30   :  { %p2241_p8 = por %p2240_p7, %p2239_p6 }
  0x32   :  { %p2242_p9 = pnand %p2241_p8, %p2235_p5 }
  0x34   :  { %2245 = shalt.err (!%p2242_p9)
}
  0x35   :  { %27 = dma.hbm_to_vmem [thread:$0]  %s3147_s0, 128, %s25_s18, [#allocation6]  }
  0x36   :  { %s2373_s19 = smov [#allocation10]   ;;  %s2374_s21 = smov [#allocation13]  }
  0x37   :  { %s45_s20 = sshll.u32 %s2373_s19, 4  ;;  %s70_s22 = sshll.u32 %s2374_s21, 4  ;;  %s46_s20 = int_to_ptr.vmem [resolvable:$true] %s45_s20  ;;  %s71_s22 = int_to_ptr.vmem [resolvable:$true] %s70_s22 }
  0x38   :  { %s2246_s26 = scalar_lea.hbm %s3149_s2, 4096 }
  0x39   :  { %p2247_p10 = scmp.ne.s32.totalorder %s3149_s2, %s2246_s26  ;;  %p2250_p11 = scmp.lt.u32.totalorder %s2246_s26, %s3149_s2 }
  0x3b   :  { %p2252_p12 = pnand %p2250_p11, %p2247_p10 }
  0x3d   :  { %2255 = shalt.err (!%p2252_p12)
}
  0x3e   :  { %s2256_s0 = scalar_lea.vmem %s46_s20, 4096  ;;  %p2261_p0 = scmp.lt.s32.totalorder %s46_s20, %s46_s20 }
  0x3f   :  { %p2257_p13 = scmp.ne.s32.totalorder %s46_s20, %s2256_s0  ;;  %p2262_p1 = scmp.lt.s32.totalorder %s2256_s0, %s2256_s0 }
  0x41   :  { %p2263_p2 = por %p2262_p1, %p2261_p0 }
  0x43   :  { %p2264_p3 = pnand %p2263_p2, %p2257_p13 }
  0x45   :  { %2267 = shalt.err (!%p2264_p3)
}
  0x46   :  { %51 = dma.hbm_to_vmem [thread:$0]  %s3149_s2, 4096, %s46_s20, [#allocation9], %s2371_s25, %s2371_s25, %s2372_s27  }
  0x47   :  { %s2268_s13 = scalar_lea.hbm %s3151_s4, 64 }
  0x48   :  { %p2269_p4 = scmp.ne.s32.totalorder %s3151_s4, %s2268_s13  ;;  %p2272_p5 = scmp.lt.u32.totalorder %s2268_s13, %s3151_s4 }
  0x4a   :  { %p2274_p6 = pnand %p2272_p5, %p2269_p4 }
  0x4c   :  { %2277 = shalt.err (!%p2274_p6)
}
  0x4d   :  { %s2278_s16 = scalar_lea.vmem %s71_s22, 64  ;;  %p2283_p8 = scmp.lt.s32.totalorder %s71_s22, %s71_s22 }
  0x4e   :  { %p2279_p7 = scmp.ne.s32.totalorder %s71_s22, %s2278_s16  ;;  %p2284_p9 = scmp.lt.s32.totalorder %s2278_s16, %s2278_s16 }
  0x50   :  { %p2285_p10 = por %p2284_p9, %p2283_p8 }
  0x52   :  { %p2286_p11 = pnand %p2285_p10, %p2279_p7 }
  0x54   :  { %2289 = shalt.err (!%p2286_p11)
}
  0x55   :  { %73 = dma.hbm_to_vmem [thread:$0]  %s3151_s4, 64, %s71_s22, [#allocation12]  }
  0x56   :  { %2356 = dma.done.wait [#allocation6], 128  }
  0x57   :  { %2357 = vsyncadd [#allocation6], 4294967168 }
  0x58   :  { %2358 = dma.done.wait [#allocation9], 4608  }
  0x59   :  { %2359 = vsyncadd [#allocation9], 4294962688 }
  0x5a   :  { %2360 = dma.done.wait [#allocation12], 4160  }
  0x5b   :  { %2361 = vsyncadd [#allocation12], 4294963136  ;;  %v3155_v0 = vmov 0   ;;  %v1920_v1 = vld [vmem:[#allocation10 + $0x4] ss:$16 sps:$4 sm:$0xff]   ;;  %v1981_v44 = vld [vmem:[#allocation8 + $0x8] sm:$0xff]  }
  0x5c   :  { %374 = vmatprep.mubr.bf16.mxu0 %v3155_v0  ;;  %447 = vmatprep.mubr.bf16.mxu1 %v3155_v0  ;;  %v1922_v2 = vld [vmem:[#allocation10 + $0xc] ss:$16 sps:$4 sm:$0xff]   ;;  %v1924_v3 = vld [vmem:[#allocation10] ss:$16 sps:$4 sm:$0xff]   ;;  %v1925_v4 = vld [vmem:[#allocation10 + $0x8] ss:$16 sps:$4 sm:$0xff]  }
  0x5d   :  { %1918 = vset.pattern.permute.xlu0 %v3155_v0  ;;  %1919 = vset.pattern.permute.xlu1 %v3155_v0  ;;  %v1926_v5 = vld [vmem:[#allocation10 + $0x24] ss:$16 sps:$4 sm:$0xff]   ;;  %v1928_v6 = vld [vmem:[#allocation10 + $0x2c] ss:$16 sps:$4 sm:$0xff]   ;;  %v1930_v7 = vld [vmem:[#allocation10 + $0x20] ss:$16 sps:$4 sm:$0xff]  }
  0x5e   :  { %342 = vmatprep.subr.bf16.mxu0 %v1920_v1  ;;  %415 = vmatprep.subr.bf16.mxu1 %v1922_v2  ;;  %v1931_v8 = vld [vmem:[#allocation10 + $0x28] ss:$16 sps:$4 sm:$0xff]   ;;  %v1932_v9 = vld [vmem:[#allocation10 + $0x44] ss:$16 sps:$4 sm:$0xff]   ;;  %v1934_v10 = vld [vmem:[#allocation10 + $0x4c] ss:$16 sps:$4 sm:$0xff]  }
  0x5f   :  { %343 = vmatpush1.bf16.msra.mxu0 %v1924_v3  ;;  %416 = vmatpush1.bf16.msra.mxu1 %v1925_v4  ;;  %v1936_v11 = vld [vmem:[#allocation10 + $0x40] ss:$16 sps:$4 sm:$0xff]   ;;  %v1937_v12 = vld [vmem:[#allocation10 + $0x48] ss:$16 sps:$4 sm:$0xff]   ;;  %v1938_v13 = vld [vmem:[#allocation10 + $0x64] ss:$16 sps:$4 sm:$0xff]  }
  0x60   :  { %344 = vmatprep.subr.bf16.mxu0 %v1926_v5  ;;  %417 = vmatprep.subr.bf16.mxu1 %v1928_v6  ;;  %v1940_v14 = vld [vmem:[#allocation10 + $0x6c] ss:$16 sps:$4 sm:$0xff]   ;;  %v1942_v15 = vld [vmem:[#allocation10 + $0x60] ss:$16 sps:$4 sm:$0xff]   ;;  %v1943_v16 = vld [vmem:[#allocation10 + $0x68] ss:$16 sps:$4 sm:$0xff]  }
  0x61   :  { %v1944_v17 = vld [vmem:[#allocation10 + $0x84] ss:$16 sps:$4 sm:$0xff]   ;;  %v1946_v18 = vld [vmem:[#allocation10 + $0x8c] ss:$16 sps:$4 sm:$0xff]   ;;  %v1948_v19 = vld [vmem:[#allocation10 + $0x80] ss:$16 sps:$4 sm:$0xff]  }
  0x62   :  { %v1949_v20 = vld [vmem:[#allocation10 + $0x88] ss:$16 sps:$4 sm:$0xff]   ;;  %v1950_v21 = vld [vmem:[#allocation10 + $0xa4] ss:$16 sps:$4 sm:$0xff]   ;;  %v1952_v22 = vld [vmem:[#allocation10 + $0xac] ss:$16 sps:$4 sm:$0xff]  }
  0x63   :  { %345 = vmatpush1.bf16.msra.mxu0 %v1930_v7  ;;  %418 = vmatpush1.bf16.msra.mxu1 %v1931_v8  ;;  %v1954_v23 = vld [vmem:[#allocation10 + $0xa0] ss:$16 sps:$4 sm:$0xff]   ;;  %v1955_v24 = vld [vmem:[#allocation10 + $0xa8] ss:$16 sps:$4 sm:$0xff]   ;;  %v1956_v25 = vld [vmem:[#allocation10 + $0xc4] ss:$16 sps:$4 sm:$0xff]  }
  0x64   :  { %346 = vmatprep.subr.bf16.mxu0 %v1932_v9  ;;  %419 = vmatprep.subr.bf16.mxu1 %v1934_v10  ;;  %v1958_v26 = vld [vmem:[#allocation10 + $0xcc] ss:$16 sps:$4 sm:$0xff]   ;;  %v1960_v27 = vld [vmem:[#allocation10 + $0xc0] ss:$16 sps:$4 sm:$0xff]   ;;  %v1961_v28 = vld [vmem:[#allocation10 + $0xc8] ss:$16 sps:$4 sm:$0xff]  }
  0x65   :  { %v1962_v29 = vld [vmem:[#allocation10 + $0xe4] ss:$16 sps:$4 sm:$0xff]   ;;  %v1964_v30 = vld [vmem:[#allocation10 + $0xec] ss:$16 sps:$4 sm:$0xff]   ;;  %v1966_v31 = vld [vmem:[#allocation10 + $0xe0] ss:$16 sps:$4 sm:$0xff]  }
  0x66   :  { %v1967_v32 = vld [vmem:[#allocation10 + $0xe8] ss:$16 sps:$4 sm:$0xff]   ;;  %v2493_v33 = vld [vmem:[#allocation11 + $0x4] ss:$16 sps:$4 sm:$0xff]   ;;  %v2495_v34 = vld [vmem:[#allocation11 + $0xc] ss:$16 sps:$4 sm:$0xff]  }
  0x67   :  { %347 = vmatpush1.bf16.msra.mxu0 %v1936_v11  ;;  %420 = vmatpush1.bf16.msra.mxu1 %v1937_v12  ;;  %v1968_v35 = vld [vmem:[#allocation8] sm:$0xff]   ;;  %v2499_v37 = vld [vmem:[#allocation11 + $0x8] ss:$16 sps:$4 sm:$0xff]   ;;  %v2505_v39 = vld [vmem:[#allocation11 + $0x2c] ss:$16 sps:$4 sm:$0xff]   ;;  %v2376_v11 = vmov 0.0|0.0   ;;  %v138_v12 = vlaneseq }
  0x68   :  { %348 = vmatprep.subr.bf16.mxu0 %v1938_v13  ;;  %421 = vmatprep.subr.bf16.mxu1 %v1940_v14  ;;  %v2497_v36 = vld [vmem:[#allocation11] ss:$16 sps:$4 sm:$0xff]   ;;  %v2503_v38 = vld [vmem:[#allocation11 + $0x24] ss:$16 sps:$4 sm:$0xff]   ;;  %v2511_v41 = vld [vmem:[#allocation11 + $0x28] ss:$16 sps:$4 sm:$0xff]  }
  0x69   :  { %v2507_v40 = vld [vmem:[#allocation11 + $0x20] ss:$16 sps:$4 sm:$0xff]   ;;  %v2515_v42 = vld [vmem:[#allocation11 + $0x44] ss:$16 sps:$4 sm:$0xff]   ;;  %v2517_v43 = vld [vmem:[#allocation11 + $0x4c] ss:$16 sps:$4 sm:$0xff]  }
  0x6a   :  { %v2521_v45 = vld [vmem:[#allocation11 + $0x40] ss:$16 sps:$4 sm:$0xff]   ;;  %v2523_v46 = vld [vmem:[#allocation11 + $0x48] ss:$16 sps:$4 sm:$0xff]   ;;  %v2527_v47 = vld [vmem:[#allocation11 + $0x64] ss:$16 sps:$4 sm:$0xff]  }
  0x6b   :  { %349 = vmatpush1.bf16.msra.mxu0 %v1942_v15  ;;  %422 = vmatpush1.bf16.msra.mxu1 %v1943_v16  ;;  %v2531_v48 = vld [vmem:[#allocation11 + $0x6c] ss:$16 sps:$4 sm:$0xff]   ;;  %v2533_v49 = vld [vmem:[#allocation11 + $0x60] ss:$16 sps:$4 sm:$0xff]   ;;  %v2535_v50 = vld [vmem:[#allocation11 + $0x68] ss:$16 sps:$4 sm:$0xff]  }
  0x6c   :  { %350 = vmatprep.subr.bf16.mxu0 %v1944_v17  ;;  %423 = vmatprep.subr.bf16.mxu1 %v1946_v18  ;;  %v2539_v51 = vld [vmem:[#allocation11 + $0x84] ss:$16 sps:$4 sm:$0xff]   ;;  %v2543_v52 = vld [vmem:[#allocation11 + $0x8c] ss:$16 sps:$4 sm:$0xff]   ;;  %v2552_v55 = vld [vmem:[#allocation11 + $0x80] ss:$16 sps:$4 sm:$0xff]  }
  0x6d   :  { %v2547_v53 = vld [vmem:[#allocation5] sm:$0xff]  ;;  %v1994_v54 = vld [vmem:[#allocation8 + $0x10] sm:$0xff]   ;;  %v139_v13 = vshrl.u32 %v138_v12, 7  ;;  %v136_v17 = vld [vmem:[#allocation13] sm:$0xf]  ;;  %s2377_s4 = smov [#allocation15]  }
  0x6e   :  { %vm832_vm0 = vcmp.gt.s32.totalorder %v2547_v53, 0  ;;  %v2554_v56 = vld [vmem:[#allocation11 + $0x88] ss:$16 sps:$4 sm:$0xff]   ;;  %v2559_v58 = vld [vmem:[#allocation11 + $0xa4] ss:$16 sps:$4 sm:$0xff]   ;;  %vm961_vm1 = vcmp.gt.s32.totalorder %v2547_v53, 1 }
  0x6f   :  { %351 = vmatpush1.bf16.msra.mxu0 %v1948_v19  ;;  %424 = vmatpush1.bf16.msra.mxu1 %v1949_v20  ;;  %v833_v57 = vsel %vm832_vm0, 1, %v3155_v0  ;;  %v2561_v59 = vld [vmem:[#allocation11 + $0xac] ss:$16 sps:$4 sm:$0xff]   ;;  %v2566_v60 = vld [vmem:[#allocation11 + $0xa0] ss:$16 sps:$4 sm:$0xff]   ;;  %v962_v62 = vsel %vm961_vm1, 1, %v3155_v0 }
  0x70   :  { %352 = vmatprep.subr.bf16.mxu0 %v1950_v21  ;;  %425 = vmatprep.subr.bf16.mxu1 %v1952_v22  ;;  %v2568_v61 = vld [vmem:[#allocation11 + $0xa8] ss:$16 sps:$4 sm:$0xff]   ;;  %v2573_v63 = vld [vmem:[#allocation11 + $0xc4] ss:$16 sps:$4 sm:$0xff]   ;;  %v2575_v1 = vld [vmem:[#allocation11 + $0xcc] ss:$16 sps:$4 sm:$0xff]  }
  0x71   :  { %835 = vperm.xlu0 %1918, %v833_v57   ;;  %v2007_v2 = vld [vmem:[#allocation8 + $0x18] sm:$0xff]   ;;  %v2581_v3 = vld [vmem:[#allocation11 + $0xc0] ss:$16 sps:$4 sm:$0xff]   ;;  %v2587_v5 = vld [vmem:[#allocation11 + $0xe4] ss:$16 sps:$4 sm:$0xff]   ;;  %vm1351_vm2 = vcmp.gt.s32.totalorder %v2547_v53, 4 }
  0x72   :  { %v2583_v4 = vld [vmem:[#allocation11 + $0xc8] ss:$16 sps:$4 sm:$0xff]   ;;  %v2589_v6 = vld [vmem:[#allocation11 + $0xec] ss:$16 sps:$4 sm:$0xff]   ;;  %v2594_v7 = vld [vmem:[#allocation11 + $0xe0] ss:$16 sps:$4 sm:$0xff]  }
  0x73   :  { %353 = vmatpush1.bf16.msra.mxu0 %v1954_v23  ;;  %426 = vmatpush1.bf16.msra.mxu1 %v1955_v24  ;;  %v2596_v8 = vld [vmem:[#allocation11 + $0xe8] ss:$16 sps:$4 sm:$0xff]   ;;  %v1352_v9 = vsel %vm1351_vm2, 1, %v3155_v0  ;;  %vm1611_vm3 = vcmp.gt.s32.totalorder %v2547_v53, 6  ;;  %v148_v14 = vsub.s32 2, %v139_v13  ;;  %v152_v15 = vsub.s32 3, %v139_v13 }
  0x74   :  { %354 = vmatprep.subr.bf16.mxu0 %v1956_v25  ;;  %427 = vmatprep.subr.bf16.mxu1 %v1958_v26  ;;  %v1612_v10 = vsel %vm1611_vm3, 1, %v3155_v0  ;;  %v140_v16 = vsub.s32 0, %v139_v13  ;;  %v144_v18 = vsub.s32 1, %v139_v13  ;;  %vm1091_vm6 = vcmp.gt.s32.totalorder %v2547_v53, 2  ;;  %s1778_s27 = sshll.u32 %s2377_s4, 4  ;;  %s2378_s19 = smov [#allocation17]   ;;  %s1779_s27 = int_to_ptr.vmem [resolvable:$true] %s1778_s27 }
  0x75   :  { %964 = vperm.xlu0 %1918, %v962_v62   ;;  %v2643_v19 = vrot.slane %v136_v17, %v148_v14  ;;  %v2649_v22 = vrot.slane %v136_v17, %v152_v15  ;;  %vm1221_vm7 = vcmp.gt.s32.totalorder %v2547_v53, 3  ;;  %vm1481_vm8 = vcmp.gt.s32.totalorder %v2547_v53, 5  ;;  %s1788_s20 = sshll.u32 %s2378_s19, 4  ;;  %s2379_s21 = smov [#allocation14]   ;;  %s3094_s20 = int_to_ptr.vmem [resolvable:$true] %s1788_s20 }
  0x76   :  { %v141_v23 = vrot.slane %v136_v17, %v140_v16  ;;  %v145_v26 = vrot.slane %v136_v17, %v144_v18  ;;  %vm1741_vm9 = vcmp.gt.s32.totalorder %v2547_v53, 7  ;;  %s1765_s22 = sshll.u32 %s2379_s21, 4  ;;  %s2290_s23 = scalar_lea.vmem %s1779_s27, 128  ;;  %s3096_s22 = int_to_ptr.vmem [resolvable:$true] %s1765_s22 }
  0x77   :  { %355 = vmatpush1.bf16.msra.mxu0 %v1960_v27  ;;  %428 = vmatpush1.bf16.msra.mxu1 %v1961_v28  ;;  %p2291_p12 = scmp.ne.s32.totalorder %s1779_s27, %s2290_s23  ;;  %p2295_p13 = scmp.lt.s32.totalorder %s1779_s27, %s1779_s27 }
  0x78   :  { %356 = vmatprep.subr.bf16.mxu0 %v1962_v29  ;;  %429 = vmatprep.subr.bf16.mxu1 %v1964_v30  ;;  %p2296_p0 = scmp.lt.s32.totalorder %s2290_s23, %s2290_s23 }
  0x79   :  { %1354 = vperm.xlu0 %1918, %v1352_v9  }
  0x7a   :  { %p2297_p1 = por %p2296_p0, %p2295_p13 }
  0x7b   :  { %357 = vmatpush1.bf16.msra.mxu0 %v1966_v31  ;;  %430 = vmatpush1.bf16.msra.mxu1 %v1967_v32 }
  0x7c   :  { %721 = vmatprep.subr.bf16.mxu0 %v2493_v33  ;;  %762 = vmatprep.subr.bf16.mxu1 %v2495_v34  ;;  %p2298_p2 = pnand %p2297_p1, %p2291_p12 }
  0x7d   :  { %1614 = vperm.xlu0 %1918, %v1612_v10  }
  0x7e   :  { %375 = vmatmul.mubr.bf16.vlgmr.msra.gmra.mrb[0].mxu0 %v1968_v35  ;;  %448 = vmatmul.mubr.bf16.vlgmr.msra.gmra.mrb[0].mxu1 %v1968_v35 }
  0x7f   :  { %722 = vmatpush1.bf16.msra.mxu0 %v2497_v36  ;;  %763 = vmatpush1.bf16.msra.mxu1 %v2499_v37 }
  0x80   :  { %723 = vmatprep.subr.bf16.mxu0 %v2503_v38  ;;  %764 = vmatprep.subr.bf16.mxu1 %v2505_v39 }
  0x81   :  { %384 = vmatprep.mubr.bf16.mxu0 %v3155_v0  ;;  %457 = vmatprep.mubr.bf16.mxu1 %v3155_v0 }
  0x83   :  { %724 = vmatpush1.bf16.msra.mxu0 %v2507_v40  ;;  %765 = vmatpush1.bf16.msra.mxu1 %v2511_v41 }
  0x84   :  { %725 = vmatprep.subr.bf16.mxu0 %v2515_v42  ;;  %766 = vmatprep.subr.bf16.mxu1 %v2517_v43 }
  0x86   :  { %385 = vmatmul.mubr.bf16.gmra.mrb[4].mxu0 %v1981_v44  ;;  %458 = vmatmul.mubr.bf16.gmra.mrb[4].mxu1 %v1981_v44 }
  0x87   :  { %726 = vmatpush1.bf16.msra.mxu0 %v2521_v45  ;;  %767 = vmatpush1.bf16.msra.mxu1 %v2523_v46 }
  0x88   :  { %727 = vmatprep.subr.bf16.mxu0 %v2527_v47  ;;  %768 = vmatprep.subr.bf16.mxu1 %v2531_v48 }
  0x89   :  { %394 = vmatprep.mubr.bf16.mxu0 %v3155_v0  ;;  %467 = vmatprep.mubr.bf16.mxu1 %v3155_v0 }
  0x8b   :  { %728 = vmatpush1.bf16.msra.mxu0 %v2533_v49  ;;  %769 = vmatpush1.bf16.msra.mxu1 %v2535_v50 }
  0x8c   :  { %729 = vmatprep.subr.bf16.mxu0 %v2539_v51  ;;  %770 = vmatprep.subr.bf16.mxu1 %v2543_v52 }
  0x8e   :  { %395 = vmatmul.mubr.bf16.gmra.mrb[8].mxu0 %v1994_v54  ;;  %468 = vmatmul.mubr.bf16.gmra.mrb[8].mxu1 %v1994_v54 }
  0x8f   :  { %730 = vmatpush1.bf16.msra.mxu0 %v2552_v55  ;;  %771 = vmatpush1.bf16.msra.mxu1 %v2554_v56 }
  0x90   :  { %731 = vmatprep.subr.bf16.mxu0 %v2559_v58  ;;  %772 = vmatprep.subr.bf16.mxu1 %v2561_v59 }
  0x91   :  { %404 = vmatprep.mubr.bf16.mxu0 %v3155_v0  ;;  %477 = vmatprep.mubr.bf16.mxu1 %v3155_v0 }
  0x93   :  { %732 = vmatpush1.bf16.msra.mxu0 %v2566_v60  ;;  %773 = vmatpush1.bf16.msra.mxu1 %v2568_v61 }
  0x94   :  { %733 = vmatprep.subr.bf16.mxu0 %v2573_v63  ;;  %774 = vmatprep.subr.bf16.mxu1 %v2575_v1 }
  0x96   :  { %405 = vmatmul.mubr.bf16.gmra.mrb[12].mxu0 %v2007_v2  ;;  %478 = vmatmul.mubr.bf16.gmra.mrb[12].mxu1 %v2007_v2 }
  0x97   :  { %734 = vmatpush1.bf16.msra.mxu0 %v2581_v3  ;;  %775 = vmatpush1.bf16.msra.mxu1 %v2583_v4 }
  0x98   :  { %735 = vmatprep.subr.bf16.mxu0 %v2587_v5  ;;  %776 = vmatprep.subr.bf16.mxu1 %v2589_v6 }
  0x99   :  { %753 = vmatprep.mubr.bf16.mxu0 %v3155_v0  ;;  %794 = vmatprep.mubr.bf16.mxu1 %v3155_v0 }
  0x9b   :  { %736 = vmatpush1.bf16.msra.mxu0 %v2594_v7  ;;  %777 = vmatpush1.bf16.msra.mxu1 %v2596_v8 }
  0x9c   :  { %849 = vmatprep.subr.bf16.mxu0 %v2493_v33  ;;  %890 = vmatprep.subr.bf16.mxu1 %v2495_v34 }
  0x9e   :  { %754 = vmatmul.mubr.bf16.vlgmr.msra.gmra.mrb[16].mxu0 %v2376_v11  ;;  %795 = vmatmul.mubr.bf16.vlgmr.msra.gmra.mrb[16].mxu1 %v2376_v11 }
  0x9f   :  { %850 = vmatpush1.bf16.msra.mxu0 %v2497_v36  ;;  %891 = vmatpush1.bf16.msra.mxu1 %v2499_v37 }
  0xa0   :  { %851 = vmatprep.subr.bf16.mxu0 %v2503_v38  ;;  %892 = vmatprep.subr.bf16.mxu1 %v2505_v39 }
  0xa1   :  { %881 = vmatprep.mubr.bf16.mxu0 %v3155_v0  ;;  %922 = vmatprep.mubr.bf16.mxu1 %v3155_v0 }
  0xa3   :  { %852 = vmatpush1.bf16.msra.mxu0 %v2507_v40  ;;  %893 = vmatpush1.bf16.msra.mxu1 %v2511_v41 }
  0xa4   :  { %853 = vmatprep.subr.bf16.mxu0 %v2515_v42  ;;  %894 = vmatprep.subr.bf16.mxu1 %v2517_v43 }
  0xa7   :  { %854 = vmatpush1.bf16.msra.mxu0 %v2521_v45  ;;  %895 = vmatpush1.bf16.msra.mxu1 %v2523_v46 }
  0xa8   :  { %855 = vmatprep.subr.bf16.mxu0 %v2527_v47  ;;  %896 = vmatprep.subr.bf16.mxu1 %v2531_v48 }
  0xab   :  { %856 = vmatpush1.bf16.msra.mxu0 %v2533_v49  ;;  %897 = vmatpush1.bf16.msra.mxu1 %v2535_v50 }
  0xac   :  { %857 = vmatprep.subr.bf16.mxu0 %v2539_v51  ;;  %898 = vmatprep.subr.bf16.mxu1 %v2543_v52 }
  0xaf   :  { %858 = vmatpush1.bf16.msra.mxu0 %v2552_v55  ;;  %899 = vmatpush1.bf16.msra.mxu1 %v2554_v56 }
  0xb0   :  { %859 = vmatprep.subr.bf16.mxu0 %v2559_v58  ;;  %900 = vmatprep.subr.bf16.mxu1 %v2561_v59 }
  0xb3   :  { %860 = vmatpush1.bf16.msra.mxu0 %v2566_v60  ;;  %901 = vmatpush1.bf16.msra.mxu1 %v2568_v61 }
  0xb4   :  { %861 = vmatprep.subr.bf16.mxu0 %v2573_v63  ;;  %902 = vmatprep.subr.bf16.mxu1 %v2575_v1 }
  0xb7   :  { %862 = vmatpush1.bf16.msra.mxu0 %v2581_v3  ;;  %903 = vmatpush1.bf16.msra.mxu1 %v2583_v4 }
  0xb8   :  { %863 = vmatprep.subr.bf16.mxu0 %v2587_v5  ;;  %904 = vmatprep.subr.bf16.mxu1 %v2589_v6 }
  0xbb   :  { %864 = vmatpush1.bf16.msra.mxu0 %v2594_v7  ;;  %905 = vmatpush1.bf16.msra.mxu1 %v2596_v8 }
  0xbc   :  { %979 = vmatprep.subr.bf16.mxu0 %v2493_v33  ;;  %1020 = vmatprep.subr.bf16.mxu1 %v2495_v34 }
 0x151   :  { %v2645_v20 = vpop.f32.mrb[0].mxu0  ;;  %v2647_v21 = vpop.f32.mrb[0].mxu1 }
 0x152   :  { %v378_v24 = vpop.f32.mrb[1].mxu0  ;;  %v451_v25 = vpop.f32.mrb[1].mxu1 }
 0x153   :  { %v380_v27 = vpop.f32.mrb[2].mxu0  ;;  %v453_v28 = vpop.f32.mrb[2].mxu1 }
 0x154   :  { %v2651_v29 = vadd.f32 %v380_v27, %v141_v23  ;;  %v382_v30 = vpop.f32.mrb[3].mxu0  ;;  %v2654_v31 = vadd.f32 %v453_v28, %v2643_v19  ;;  %v455_v32 = vpop.f32.mrb[3].mxu1 }
 0x155   :  { %v2656_v35 = vadd.f32 %v382_v30, %v145_v26  ;;  %v2659_v44 = vadd.f32 %v455_v32, %v2649_v22 }
 0x159   :  { %v386_v54 = vpop.f32.mrb[4].mxu0  ;;  %v459_v57 = vpop.f32.mrb[4].mxu1 }
 0x15a   :  { %v2661_v62 = vadd.f32 %v386_v54, %v141_v23  ;;  %v388_v2 = vpop.f32.mrb[5].mxu0  ;;  %v2664_v9 = vadd.f32 %v459_v57, %v2643_v19  ;;  %v461_v10 = vpop.f32.mrb[5].mxu1 }
 0x15b   :  { %v2666_v11 = vadd.f32 %v388_v2, %v145_v26  ;;  %v390_v12 = vpop.f32.mrb[6].mxu0  ;;  %v2669_v13 = vadd.f32 %v461_v10, %v2649_v22  ;;  %v463_v14 = vpop.f32.mrb[6].mxu1 }
 0x15c   :  { %v2671_v15 = vadd.f32 %v390_v12, %v141_v23  ;;  %v392_v16 = vpop.f32.mrb[7].mxu0  ;;  %v2674_v17 = vadd.f32 %v463_v14, %v2643_v19  ;;  %v465_v18 = vpop.f32.mrb[7].mxu1 }
 0x15d   :  { %3157 = vst [vmem:[#allocation23_spill] sm:$0xff] %v2666_v11  ;;  %3158 = vst [vmem:[#allocation24_spill] sm:$0xff] %v2669_v13  ;;  %v2676_v27 = vadd.f32 %v392_v16, %v145_v26  ;;  %v2679_v28 = vadd.f32 %v465_v18, %v2649_v22 }
 0x15e   :  { %3159 = vst [vmem:[#allocation25_spill] sm:$0xff] %v2671_v15  ;;  %3160 = vst [vmem:[#allocation26_spill] sm:$0xff] %v2674_v17 }
 0x15f   :  { %3161 = vst [vmem:[#allocation27_spill] sm:$0xff] %v2676_v27  ;;  %3162 = vst [vmem:[#allocation28_spill] sm:$0xff] %v2679_v28 }
 0x161   :  { %v396_v30 = vpop.f32.mrb[8].mxu0  ;;  %v469_v32 = vpop.f32.mrb[8].mxu1 }
 0x162   :  { %v2681_v54 = vadd.f32 %v396_v30, %v141_v23  ;;  %v398_v57 = vpop.f32.mrb[9].mxu0  ;;  %v2684_v2 = vadd.f32 %v469_v32, %v2643_v19  ;;  %v471_v10 = vpop.f32.mrb[9].mxu1 }
 0x163   :  { %v2686_v12 = vadd.f32 %v398_v57, %v145_v26  ;;  %v400_v0 = vpop.f32.mrb[10].mxu0  ;;  %v2689_v14 = vadd.f32 %v471_v10, %v2649_v22  ;;  %v473_v16 = vpop.f32.mrb[10].mxu1 }
 0x164   :  { %3163 = vst [vmem:[#allocation29_spill] sm:$0xff] %v2681_v54  ;;  %3164 = vst [vmem:[#allocation30_spill] sm:$0xff] %v2684_v2  ;;  %v2691_v27 = vadd.f32 %v400_v0, %v141_v23  ;;  %v402_v18 = vpop.f32.mrb[11].mxu0  ;;  %v2694_v28 = vadd.f32 %v473_v16, %v2643_v19  ;;  %v475_v30 = vpop.f32.mrb[11].mxu1 }
 0x165   :  { %3165 = vst [vmem:[#allocation31_spill] sm:$0xff] %v2686_v12  ;;  %3166 = vst [vmem:[#allocation32_spill] sm:$0xff] %v2689_v14  ;;  %v2696_v54 = vadd.f32 %v402_v18, %v145_v26  ;;  %v2699_v32 = vadd.f32 %v475_v30, %v2649_v22 }
 0x166   :  { %3167 = vst [vmem:[#allocation33_spill] sm:$0xff] %v2691_v27  ;;  %3168 = vst [vmem:[#allocation34_spill] sm:$0xff] %v2694_v28 }
 0x167   :  { %3169 = vst [vmem:[#allocation35_spill] sm:$0xff] %v2696_v54  ;;  %3170 = vst [vmem:[#allocation36_spill] sm:$0xff] %v2699_v32 }
 0x169   :  { %v406_v2 = vpop.f32.mrb[12].mxu0  ;;  %v479_v57 = vpop.f32.mrb[12].mxu1 }
 0x16a   :  { %v2701_v12 = vadd.f32 %v406_v2, %v141_v23  ;;  %v408_v17 = vpop.f32.mrb[13].mxu0  ;;  %v2704_v10 = vadd.f32 %v479_v57, %v2643_v19  ;;  %v481_v0 = vpop.f32.mrb[13].mxu1 }
 0x16b   :  { %v2706_v27 = vadd.f32 %v408_v17, %v145_v26  ;;  %v410_v14 = vpop.f32.mrb[14].mxu0  ;;  %v2709_v16 = vadd.f32 %v481_v0, %v2649_v22  ;;  %v483_v18 = vpop.f32.mrb[14].mxu1  ;;  %v377_v17 = vadd.f32 %v2645_v20, %v141_v23  ;;  %v379_v0 = vadd.f32 %v378_v24, %v145_v26 }
 0x16c   :  { %3171 = vst [vmem:[#allocation37_spill] sm:$0xff] %v2701_v12  ;;  %3172 = vst [vmem:[#allocation38_spill] sm:$0xff] %v2704_v10  ;;  %v2711_v54 = vadd.f32 %v410_v14, %v141_v23  ;;  %v412_v30 = vpop.f32.mrb[15].mxu0  ;;  %v2714_v32 = vadd.f32 %v483_v18, %v2643_v19  ;;  %v485_v2 = vpop.f32.mrb[15].mxu1 }
 0x16d   :  { %3173 = vst [vmem:[#allocation39_spill] sm:$0xff] %v2706_v27  ;;  %3174 = vst [vmem:[#allocation40_spill] sm:$0xff] %v2709_v16  ;;  %v2716_v12 = vadd.f32 %v412_v30, %v145_v26  ;;  %v2719_v57 = vadd.f32 %v485_v2, %v2649_v22  ;;  %v450_v27 = vadd.f32 %v2647_v21, %v2643_v19 }
 0x16e   :  { %3175 = vst [vmem:[#allocation41_spill] sm:$0xff] %v2711_v54  ;;  %3176 = vst [vmem:[#allocation42_spill] sm:$0xff] %v2714_v32  ;;  %v452_v16 = vadd.f32 %v451_v25, %v2649_v22 }
 0x16f   :  { %3177 = vst [vmem:[#allocation43_spill] sm:$0xff] %v2716_v12  ;;  %3178 = vst [vmem:[#allocation44_spill] sm:$0xff] %v2719_v57 }
 0x171   :  { %v755_v14 = vpop.f32.mrb[16].mxu0  ;;  %v796_v54 = vpop.f32.mrb[16].mxu1 }
 0x172   :  { %v803_v10 = vadd.f32 %v755_v14, %v377_v17  ;;  %v805_v28 = vadd.f32 %v796_v54, %v450_v27  ;;  %v757_v18 = vpop.f32.mrb[17].mxu0  ;;  %v798_v32 = vpop.f32.mrb[17].mxu1  ;;  %v3179_v14 = vmov 0  }
 0x173   :  { %v804_v15 = vadd.f32 %v757_v18, %v379_v0  ;;  %v806_v30 = vadd.f32 %v798_v32, %v452_v16  ;;  %v759_v12 = vpop.f32.mrb[18].mxu0  ;;  %v800_v13 = vpop.f32.mrb[18].mxu1  ;;  %v1092_v18 = vsel %vm1091_vm6, 1, %v3179_v14 }
 0x174   :  { %v1874_v2 = vmul.f32 -1.442695, %v803_v10  ;;  %v760_v57 = vpop.f32.mrb[19].mxu0  ;;  %v801_v11 = vpop.f32.mrb[19].mxu1  ;;  %1094 = vperm.xlu1 %1919, %v1092_v18  }
 0x175   :  { %v1875_v20 = vmul.f32 -1.442695, %v804_v15  ;;  %v1876_v19 = vmul.f32 -1.442695, %v806_v30  ;;  %v2728_v15 = vpop.permute.xlu0 %835  ;;  %v1222_v30 = vsel %vm1221_vm7, 1, %v3179_v14 }
 0x176   :  { %2020 = vpow2.f32 %v1874_v2  ;;  %vm837_vm4 = vcmp.eq.s32.totalorder %v2728_v15, 1  ;;  %v1482_v2 = vsel %vm1481_vm8, 1, %v3179_v14 }
 0x177   :  { %2022 = vpow2.f32 %v1875_v20  ;;  %vm1898_vm5 = vmpackc.low %vm837_vm4, %vm837_vm4  ;;  %v1742_v20 = vsel %vm1741_vm9, 1, %v3179_v14 }
 0x178   :  { %2024 = vpow2.f32 %v1876_v19  ;;  %1224 = vperm.xlu1 %1919, %v1222_v30  }
 0x179   :  { %2026 = vtanh.f32 %v805_v28 }
 0x17c   :  { %1484 = vperm.xlu1 %1919, %v1482_v2  }
 0x180   :  { %v2021_v21 = vpop.eup %2020  ;;  %1744 = vperm.xlu1 %1919, %v1742_v20  }
 0x181   :  { %v2023_v23 = vpop.eup %2022  ;;  %v810_v22 = vadd.f32 1.0, %v2021_v21 }
 0x182   :  { %v816_v24 = vadd.f32 1.0, %v2023_v23  ;;  %v2025_v25 = vpop.eup %2024 }
 0x183   :  { %2028 = vrcp.f32 %v810_v22  ;;  %v2027_v26 = vpop.eup %2026  ;;  %v823_v13 = vadd.f32 1.0, %v2025_v25 }
 0x184   :  { %2030 = vrcp.f32 %v816_v24 }
 0x185   :  { %2032 = vrcp.f32 %v823_v13 }
 0x18d   :  { %v2029_v27 = vpop.eup %2028 }
 0x18e   :  { %v2031_v54 = vpop.eup %2030  ;;  %v827_v12 = vmul.f32 %v2029_v27, %v2027_v26 }
 0x18f   :  { %v826_v32 = vmul.f32 0.0, %v2031_v54  ;;  %v2033_v10 = vpop.eup %2032 }
 0x191   :  { %v2725_v11 = vadd.f32 %v827_v12, %v826_v32 }
 0x193   :  { %2034 = vtanh.f32 %v2725_v11  ;;  %v842_v30 = vsel %vm837_vm4, %v2725_v11, 0.0 }
 0x19d   :  { %v2035_v16 = vpop.eup %2034 }
 0x19e   :  { %v830_v28 = vmul.f32 %v2035_v16, %v2033_v10 }
 0x1a0   :  { %v2736_v57 = vsel %vm837_vm4, %v830_v28, 0.0  ;;  %v1899_v17 = vpack.c.bf16 %v830_v28, %v830_v28 }
 0x1a1   :  { %v839_v0 = vpack.c.bf16 %v2736_v57, %v2736_v57 }
 0x1a2   :  { %1900 = vmatmul.mubr.msk.bf16.vlgmr.msra.gmra.mrb[20].mxu0 %vm1898_vm5, %v1899_v17  ;;  %1903 = vmatmul.mubr.msk.bf16.vlgmr.msra.gmra.mrb[20].mxu1 %vm1898_vm5, %v1899_v17 }
 0x1a3   :  { %840 = vst [vmem:[#allocation14] sm:$0xf] %v839_v0  ;;  %980 = vmatpush1.bf16.msra.mxu0 %v2497_v36  ;;  %1021 = vmatpush1.bf16.msra.mxu1 %v2499_v37 }
 0x1a4   :  { %981 = vmatprep.subr.bf16.mxu0 %v2503_v38  ;;  %1022 = vmatprep.subr.bf16.mxu1 %v2505_v39 }
 0x1a5   :  { %1011 = vmatprep.mubr.bf16.mxu0 %v3179_v14  ;;  %1052 = vmatprep.mubr.bf16.mxu1 %v3179_v14 }
 0x1a7   :  { %982 = vmatpush1.bf16.msra.mxu0 %v2507_v40  ;;  %1023 = vmatpush1.bf16.msra.mxu1 %v2511_v41 }
 0x1a8   :  { %983 = vmatprep.subr.bf16.mxu0 %v2515_v42  ;;  %1024 = vmatprep.subr.bf16.mxu1 %v2517_v43 }
 0x1ab   :  { %984 = vmatpush1.bf16.msra.mxu0 %v2521_v45  ;;  %1025 = vmatpush1.bf16.msra.mxu1 %v2523_v46 }
 0x1ac   :  { %985 = vmatprep.subr.bf16.mxu0 %v2527_v47  ;;  %1026 = vmatprep.subr.bf16.mxu1 %v2531_v48 }
 0x1af   :  { %986 = vmatpush1.bf16.msra.mxu0 %v2533_v49  ;;  %1027 = vmatpush1.bf16.msra.mxu1 %v2535_v50 }
 0x1b0   :  { %987 = vmatprep.subr.bf16.mxu0 %v2539_v51  ;;  %1028 = vmatprep.subr.bf16.mxu1 %v2543_v52 }
 0x1b3   :  { %988 = vmatpush1.bf16.msra.mxu0 %v2552_v55  ;;  %1029 = vmatpush1.bf16.msra.mxu1 %v2554_v56 }
 0x1b4   :  { %989 = vmatprep.subr.bf16.mxu0 %v2559_v58  ;;  %1030 = vmatprep.subr.bf16.mxu1 %v2561_v59 }
 0x1b7   :  { %990 = vmatpush1.bf16.msra.mxu0 %v2566_v60  ;;  %1031 = vmatpush1.bf16.msra.mxu1 %v2568_v61 }
 0x1b8   :  { %991 = vmatprep.subr.bf16.mxu0 %v2573_v63  ;;  %1032 = vmatprep.subr.bf16.mxu1 %v2575_v1 }
 0x1bb   :  { %992 = vmatpush1.bf16.msra.mxu0 %v2581_v3  ;;  %1033 = vmatpush1.bf16.msra.mxu1 %v2583_v4 }
 0x1bc   :  { %993 = vmatprep.subr.bf16.mxu0 %v2587_v5  ;;  %1034 = vmatprep.subr.bf16.mxu1 %v2589_v6 }
 0x1bf   :  { %994 = vmatpush1.bf16.msra.mxu0 %v2594_v7  ;;  %1035 = vmatpush1.bf16.msra.mxu1 %v2596_v8 }
 0x1c0   :  { %1109 = vmatprep.subr.bf16.mxu0 %v2493_v33  ;;  %1150 = vmatprep.subr.bf16.mxu1 %v2495_v34 }
 0x275   :  { %v883_v19 = vpop.f32.mrb[20].mxu0  ;;  %v924_v21 = vpop.f32.mrb[20].mxu1 }
 0x276   :  { %v931_v23 = vadd.f32 %v883_v19, %v2651_v29  ;;  %v933_v22 = vadd.f32 %v924_v21, %v2654_v31  ;;  %v885_v24 = vpop.f32.mrb[21].mxu0  ;;  %v926_v25 = vpop.f32.mrb[21].mxu1 }
 0x277   :  { %v932_v26 = vadd.f32 %v885_v24, %v2656_v35  ;;  %v934_v27 = vadd.f32 %v926_v25, %v2659_v44  ;;  %v887_v54 = vpop.f32.mrb[22].mxu0  ;;  %v928_v13 = vpop.f32.mrb[22].mxu1 }
 0x278   :  { %v1877_v12 = vmul.f32 -1.442695, %v931_v23  ;;  %v888_v53 = vpop.f32.mrb[23].mxu0  ;;  %v929_v32 = vpop.f32.mrb[23].mxu1 }
 0x279   :  { %v1878_v10 = vmul.f32 -1.442695, %v932_v26  ;;  %v1879_v16 = vmul.f32 -1.442695, %v934_v27  ;;  %v965_v21 = vpop.permute.xlu0 %964 }
 0x27a   :  { %2036 = vpow2.f32 %v1877_v12  ;;  %vm966_vm10 = vcmp.eq.s32.totalorder %v965_v21, 1 }
 0x27b   :  { %2038 = vpow2.f32 %v1878_v10 }
 0x27c   :  { %2040 = vpow2.f32 %v1879_v16  ;;  %v3180_v16 = vld [vmem:[#allocation23_spill] sm:$0xff] }
 0x27d   :  { %2042 = vtanh.f32 %v933_v22 }
 0x284   :  { %v2037_v28 = vpop.eup %2036 }
 0x285   :  { %v2039_v17 = vpop.eup %2038  ;;  %v938_v29 = vadd.f32 1.0, %v2037_v28 }
 0x286   :  { %v944_v31 = vadd.f32 1.0, %v2039_v17  ;;  %v2041_v35 = vpop.eup %2040  ;;  %v3181_v17 = vld [vmem:[#allocation24_spill] sm:$0xff] }
 0x287   :  { %2044 = vrcp.f32 %v938_v29  ;;  %v2043_v0 = vpop.eup %2042  ;;  %v951_v20 = vadd.f32 1.0, %v2041_v35 }
 0x288   :  { %2046 = vrcp.f32 %v944_v31 }
 0x289   :  { %2048 = vrcp.f32 %v951_v20 }
 0x291   :  { %v2045_v44 = vpop.eup %2044 }
 0x292   :  { %v2047_v18 = vpop.eup %2046  ;;  %v955_v2 = vmul.f32 %v2045_v44, %v2043_v0 }
 0x293   :  { %v954_v19 = vmul.f32 %v2047_v18, %v842_v30  ;;  %v2049_v24 = vpop.eup %2048 }
 0x295   :  { %v956_v23 = vadd.f32 %v955_v2, %v954_v19 }
 0x297   :  { %2050 = vtanh.f32 %v956_v23  ;;  %v2789_v22 = vsel %vm966_vm10, %v956_v23, %v842_v30 }
 0x2a1   :  { %v2051_v25 = vpop.eup %2050 }
 0x2a2   :  { %v958_v26 = vmul.f32 %v2051_v25, %v2049_v24  ;;  %v1095_v25 = vpop.permute.xlu1 %1094 }
 0x2a3   :  { %vm1096_vm11 = vcmp.eq.s32.totalorder %v1095_v25, 1 }
 0x2a4   :  { %v967_v27 = vsel %vm966_vm10, %v958_v26, 0.0  ;;  %v2792_v54 = vsel %vm966_vm10, %v958_v26, %v2736_v57 }
 0x2a5   :  { %v968_v13 = vpack.c.bf16 %v967_v27, %v967_v27  ;;  %v978_v11 = vpack.c.bf16 %v2792_v54, %v2792_v54 }
 0x2a6   :  { %v1225_v25 = vpop.permute.xlu1 %1224 }
 0x2a7   :  { %970 = vst [vmem:[#allocation14 + $0x4] sm:$0xf] %v968_v13  ;;  %1012 = vmatmul.mubr.bf16.vlgmr.msra.gmra.mrb[24].mxu0 %v978_v11  ;;  %1053 = vmatmul.mubr.bf16.vlgmr.msra.gmra.mrb[24].mxu1 %v978_v11  ;;  %vm1226_vm12 = vcmp.eq.s32.totalorder %v1225_v25, 1  ;;  %v2976_v25 = vld [vmem:[#allocation11 + $0x6c] ss:$16 sps:$4 sm:$0xff]  }
 0x2a8   :  { %1110 = vmatpush1.bf16.msra.mxu0 %v2497_v36  ;;  %1151 = vmatpush1.bf16.msra.mxu1 %v2499_v37 }
 0x2a9   :  { %1111 = vmatprep.subr.bf16.mxu0 %v2503_v38  ;;  %1152 = vmatprep.subr.bf16.mxu1 %v2505_v39 }
 0x2aa   :  { %1141 = vmatprep.mubr.bf16.mxu0 %v3179_v14  ;;  %1182 = vmatprep.mubr.bf16.mxu1 %v3179_v14 }
 0x2ac   :  { %1112 = vmatpush1.bf16.msra.mxu0 %v2507_v40  ;;  %1153 = vmatpush1.bf16.msra.mxu1 %v2511_v41 }
 0x2ad   :  { %1113 = vmatprep.subr.bf16.mxu0 %v2515_v42  ;;  %1154 = vmatprep.subr.bf16.mxu1 %v2517_v43 }
 0x2b0   :  { %1114 = vmatpush1.bf16.msra.mxu0 %v2521_v45  ;;  %1155 = vmatpush1.bf16.msra.mxu1 %v2523_v46 }
 0x2b1   :  { %1115 = vmatprep.subr.bf16.mxu0 %v2527_v47  ;;  %1156 = vmatprep.subr.bf16.mxu1 %v2531_v48 }
 0x2b4   :  { %1116 = vmatpush1.bf16.msra.mxu0 %v2533_v49  ;;  %1157 = vmatpush1.bf16.msra.mxu1 %v2535_v50 }
 0x2b5   :  { %1117 = vmatprep.subr.bf16.mxu0 %v2539_v51  ;;  %1158 = vmatprep.subr.bf16.mxu1 %v2543_v52 }
 0x2b8   :  { %1118 = vmatpush1.bf16.msra.mxu0 %v2552_v55  ;;  %1159 = vmatpush1.bf16.msra.mxu1 %v2554_v56 }
 0x2b9   :  { %1119 = vmatprep.subr.bf16.mxu0 %v2559_v58  ;;  %1160 = vmatprep.subr.bf16.mxu1 %v2561_v59 }
 0x2bc   :  { %1120 = vmatpush1.bf16.msra.mxu0 %v2566_v60  ;;  %1161 = vmatpush1.bf16.msra.mxu1 %v2568_v61 }
 0x2bd   :  { %1121 = vmatprep.subr.bf16.mxu0 %v2573_v63  ;;  %1162 = vmatprep.subr.bf16.mxu1 %v2575_v1 }
 0x2c0   :  { %1122 = vmatpush1.bf16.msra.mxu0 %v2581_v3  ;;  %1163 = vmatpush1.bf16.msra.mxu1 %v2583_v4 }
 0x2c1   :  { %1123 = vmatprep.subr.bf16.mxu0 %v2587_v5  ;;  %1164 = vmatprep.subr.bf16.mxu1 %v2589_v6 }
 0x2c4   :  { %1124 = vmatpush1.bf16.msra.mxu0 %v2594_v7  ;;  %1165 = vmatpush1.bf16.msra.mxu1 %v2596_v8 }
 0x2c5   :  { %1239 = vmatprep.subr.bf16.mxu0 %v2493_v33  ;;  %1280 = vmatprep.subr.bf16.mxu1 %v2495_v34 }
 0x37a   :  { %v1013_v15 = vpop.f32.mrb[24].mxu0  ;;  %v1054_v57 = vpop.f32.mrb[24].mxu1 }
 0x37b   :  { %v1061_v12 = vadd.f32 %v1013_v15, %v2661_v62  ;;  %v1063_v53 = vadd.f32 %v1054_v57, %v2664_v9  ;;  %v1015_v32 = vpop.f32.mrb[25].mxu0  ;;  %v1056_v10 = vpop.f32.mrb[25].mxu1 }
 0x37c   :  { %v1062_v28 = vadd.f32 %v1015_v32, %v3180_v16  ;;  %v1064_v29 = vadd.f32 %v1056_v10, %v3181_v17  ;;  %v1017_v31 = vpop.f32.mrb[26].mxu0  ;;  %v1058_v35 = vpop.f32.mrb[26].mxu1 }
 0x37d   :  { %v1880_v0 = vmul.f32 -1.442695, %v1061_v12  ;;  %v1018_v44 = vpop.f32.mrb[27].mxu0  ;;  %v1059_v18 = vpop.f32.mrb[27].mxu1 }
 0x37e   :  { %v1881_v30 = vmul.f32 -1.442695, %v1062_v28  ;;  %v1882_v2 = vmul.f32 -1.442695, %v1064_v29 }
 0x37f   :  { %2052 = vpow2.f32 %v1880_v0 }
 0x380   :  { %2054 = vpow2.f32 %v1881_v30 }
 0x381   :  { %2056 = vpow2.f32 %v1882_v2 }
 0x382   :  { %2058 = vtanh.f32 %v1063_v53 }
 0x389   :  { %v2053_v20 = vpop.eup %2052 }
 0x38a   :  { %v2055_v19 = vpop.eup %2054  ;;  %v1068_v62 = vadd.f32 1.0, %v2053_v20 }
 0x38b   :  { %v1074_v9 = vadd.f32 1.0, %v2055_v19  ;;  %v2057_v21 = vpop.eup %2056 }
 0x38c   :  { %2060 = vrcp.f32 %v1068_v62  ;;  %v2059_v23 = vpop.eup %2058  ;;  %v1081_v27 = vadd.f32 1.0, %v2057_v21 }
 0x38d   :  { %2062 = vrcp.f32 %v1074_v9 }
 0x38e   :  { %2064 = vrcp.f32 %v1081_v27 }
 0x396   :  { %v2061_v24 = vpop.eup %2060 }
 0x397   :  { %v2063_v26 = vpop.eup %2062  ;;  %v1085_v13 = vmul.f32 %v2061_v24, %v2059_v23 }
 0x398   :  { %v1084_v11 = vmul.f32 %v2063_v26, %v2789_v22  ;;  %v2065_v12 = vpop.eup %2064 }
 0x39a   :  { %v1086_v15 = vadd.f32 %v1085_v13, %v1084_v11 }
 0x39c   :  { %2066 = vtanh.f32 %v1086_v15  ;;  %v2836_v57 = vsel %vm1096_vm11, %v1086_v15, %v2789_v22 }
 0x3a6   :  { %v2067_v53 = vpop.eup %2066 }
 0x3a7   :  { %v1088_v32 = vmul.f32 %v2067_v53, %v2065_v12 }
 0x3a9   :  { %v1097_v10 = vsel %vm1096_vm11, %v1088_v32, 0.0  ;;  %v2839_v16 = vsel %vm1096_vm11, %v1088_v32, %v2792_v54 }
 0x3aa   :  { %v1098_v28 = vpack.c.bf16 %v1097_v10, %v1097_v10  ;;  %v1108_v17 = vpack.c.bf16 %v2839_v16, %v2839_v16 }
 0x3ac   :  { %1100 = vst [vmem:[#allocation14 + $0x8] sm:$0xf] %v1098_v28  ;;  %1142 = vmatmul.mubr.bf16.vlgmr.msra.gmra.mrb[28].mxu0 %v1108_v17  ;;  %1183 = vmatmul.mubr.bf16.vlgmr.msra.gmra.mrb[28].mxu1 %v1108_v17  ;;  %v2890_v28 = vld [vmem:[#allocation11] ss:$16 sps:$4 sm:$0xff]   ;;  %v2896_v17 = vld [vmem:[#allocation11 + $0x24] ss:$16 sps:$4 sm:$0xff]  }
 0x3ad   :  { %1240 = vmatpush1.bf16.msra.mxu0 %v2497_v36  ;;  %1281 = vmatpush1.bf16.msra.mxu1 %v2499_v37 }
 0x3ae   :  { %1241 = vmatprep.subr.bf16.mxu0 %v2503_v38  ;;  %1282 = vmatprep.subr.bf16.mxu1 %v2505_v39  ;;  %v3182_v38 = vld [vmem:[#allocation25_spill] sm:$0xff] }
 0x3af   :  { %1271 = vmatprep.mubr.bf16.mxu0 %v3179_v14  ;;  %1312 = vmatprep.mubr.bf16.mxu1 %v3179_v14 }
 0x3b1   :  { %1242 = vmatpush1.bf16.msra.mxu0 %v2507_v40  ;;  %1283 = vmatpush1.bf16.msra.mxu1 %v2511_v41  ;;  %v3183_v40 = vld [vmem:[#allocation26_spill] sm:$0xff] }
 0x3b2   :  { %1243 = vmatprep.subr.bf16.mxu0 %v2515_v42  ;;  %1284 = vmatprep.subr.bf16.mxu1 %v2517_v43 }
 0x3b5   :  { %1244 = vmatpush1.bf16.msra.mxu0 %v2521_v45  ;;  %1285 = vmatpush1.bf16.msra.mxu1 %v2523_v46  ;;  %v3184_v45 = vld [vmem:[#allocation27_spill] sm:$0xff] }
 0x3b6   :  { %1245 = vmatprep.subr.bf16.mxu0 %v2527_v47  ;;  %1286 = vmatprep.subr.bf16.mxu1 %v2531_v48  ;;  %v3185_v47 = vld [vmem:[#allocation28_spill] sm:$0xff] }
 0x3b9   :  { %1246 = vmatpush1.bf16.msra.mxu0 %v2533_v49  ;;  %1287 = vmatpush1.bf16.msra.mxu1 %v2535_v50 }
 0x3ba   :  { %1247 = vmatprep.subr.bf16.mxu0 %v2539_v51  ;;  %1288 = vmatprep.subr.bf16.mxu1 %v2543_v52 }
 0x3bd   :  { %1248 = vmatpush1.bf16.msra.mxu0 %v2552_v55  ;;  %1289 = vmatpush1.bf16.msra.mxu1 %v2554_v56 }
 0x3be   :  { %1249 = vmatprep.subr.bf16.mxu0 %v2559_v58  ;;  %1290 = vmatprep.subr.bf16.mxu1 %v2561_v59 }
 0x3c1   :  { %1250 = vmatpush1.bf16.msra.mxu0 %v2566_v60  ;;  %1291 = vmatpush1.bf16.msra.mxu1 %v2568_v61 }
 0x3c2   :  { %1251 = vmatprep.subr.bf16.mxu0 %v2573_v63  ;;  %1292 = vmatprep.subr.bf16.mxu1 %v2575_v1 }
 0x3c5   :  { %1252 = vmatpush1.bf16.msra.mxu0 %v2581_v3  ;;  %1293 = vmatpush1.bf16.msra.mxu1 %v2583_v4 }
 0x3c6   :  { %1253 = vmatprep.subr.bf16.mxu0 %v2587_v5  ;;  %1294 = vmatprep.subr.bf16.mxu1 %v2589_v6 }
 0x3c9   :  { %1254 = vmatpush1.bf16.msra.mxu0 %v2594_v7  ;;  %1295 = vmatpush1.bf16.msra.mxu1 %v2596_v8 }
 0x3ca   :  { %1369 = vmatprep.subr.bf16.mxu0 %v2493_v33  ;;  %1410 = vmatprep.subr.bf16.mxu1 %v2495_v34 }
 0x47f   :  { %v1143_v36 = vpop.f32.mrb[28].mxu0  ;;  %v1184_v37 = vpop.f32.mrb[28].mxu1 }
 0x480   :  { %v1191_v39 = vadd.f32 %v1143_v36, %v3182_v38  ;;  %v1193_v41 = vadd.f32 %v1184_v37, %v3183_v40  ;;  %v1145_v42 = vpop.f32.mrb[29].mxu0  ;;  %v1186_v43 = vpop.f32.mrb[29].mxu1  ;;  %v2904_v36 = vld [vmem:[#allocation11 + $0x20] ss:$16 sps:$4 sm:$0xff]   ;;  %v2907_v37 = vld [vmem:[#allocation11 + $0x28] ss:$16 sps:$4 sm:$0xff]  }
 0x481   :  { %v1192_v46 = vadd.f32 %v1145_v42, %v3184_v45  ;;  %v1194_v22 = vadd.f32 %v1186_v43, %v3185_v47  ;;  %v1147_v54 = vpop.f32.mrb[30].mxu0  ;;  %v1188_v29 = vpop.f32.mrb[30].mxu1  ;;  %v2910_v38 = vld [vmem:[#allocation11 + $0x44] ss:$16 sps:$4 sm:$0xff]   ;;  %v2916_v40 = vld [vmem:[#allocation11 + $0x40] ss:$16 sps:$4 sm:$0xff]  }
 0x482   :  { %v1883_v31 = vmul.f32 -1.442695, %v1191_v39  ;;  %v1148_v35 = vpop.f32.mrb[31].mxu0  ;;  %v1189_v0 = vpop.f32.mrb[31].mxu1  ;;  %v2913_v39 = vld [vmem:[#allocation11 + $0x4c] ss:$16 sps:$4 sm:$0xff]  }
 0x483   :  { %v1884_v33 = vmul.f32 -1.442695, %v1192_v46  ;;  %v1885_v34 = vmul.f32 -1.442695, %v1194_v22  ;;  %v2922_v42 = vld [vmem:[#allocation11 + $0x64] ss:$16 sps:$4 sm:$0xff]  }
 0x484   :  { %2068 = vpow2.f32 %v1883_v31 }
 0x485   :  { %2070 = vpow2.f32 %v1884_v33 }
 0x486   :  { %2072 = vpow2.f32 %v1885_v34 }
 0x487   :  { %2074 = vtanh.f32 %v1193_v41  ;;  %v2919_v41 = vld [vmem:[#allocation11 + $0x48] ss:$16 sps:$4 sm:$0xff]  }
 0x48e   :  { %v2069_v44 = vpop.eup %2068 }
 0x48f   :  { %v2071_v18 = vpop.eup %2070  ;;  %v1198_v30 = vadd.f32 1.0, %v2069_v44 }
 0x490   :  { %v1204_v2 = vadd.f32 1.0, %v2071_v18  ;;  %v2073_v20 = vpop.eup %2072  ;;  %v1355_v18 = vpop.permute.xlu0 %1354 }
 0x491   :  { %2076 = vrcp.f32 %v1198_v30  ;;  %v2075_v19 = vpop.eup %2074  ;;  %v1211_v23 = vadd.f32 1.0, %v2073_v20  ;;  %vm1356_vm13 = vcmp.eq.s32.totalorder %v1355_v18, 1 }
 0x492   :  { %2078 = vrcp.f32 %v1204_v2 }
 0x493   :  { %2080 = vrcp.f32 %v1211_v23 }
 0x49b   :  { %v2077_v62 = vpop.eup %2076 }
 0x49c   :  { %v2079_v9 = vpop.eup %2078  ;;  %v1215_v21 = vmul.f32 %v2077_v62, %v2075_v19 }
 0x49d   :  { %v1214_v24 = vmul.f32 %v2079_v9, %v2836_v57  ;;  %v2081_v13 = vpop.eup %2080 }
 0x49f   :  { %v1216_v26 = vadd.f32 %v1215_v21, %v1214_v24 }
 0x4a1   :  { %2082 = vtanh.f32 %v1216_v26  ;;  %v2883_v27 = vsel %vm1226_vm12, %v1216_v26, %v2836_v57  ;;  %v2893_v57 = vld [vmem:[#allocation11 + $0x8] ss:$16 sps:$4 sm:$0xff]   ;;  %v2979_v26 = vld [vmem:[#allocation11 + $0x60] ss:$16 sps:$4 sm:$0xff]  }
 0x4ab   :  { %v2083_v11 = vpop.eup %2082 }
 0x4ac   :  { %v1218_v15 = vmul.f32 %v2083_v11, %v2081_v13  ;;  %v2985_v13 = vld [vmem:[#allocation11 + $0x84] ss:$16 sps:$4 sm:$0xff]   ;;  %v2988_v11 = vld [vmem:[#allocation11 + $0x8c] ss:$16 sps:$4 sm:$0xff]  }
 0x4ae   :  { %v1227_v12 = vsel %vm1226_vm12, %v1218_v15, 0.0  ;;  %v2886_v53 = vsel %vm1226_vm12, %v1218_v15, %v2839_v16  ;;  %v2899_v16 = vld [vmem:[#allocation11 + $0x2c] ss:$16 sps:$4 sm:$0xff]   ;;  %v2991_v15 = vld [vmem:[#allocation11 + $0x80] ss:$16 sps:$4 sm:$0xff]  }
 0x4af   :  { %v1228_v32 = vpack.c.bf16 %v1227_v12, %v1227_v12  ;;  %v1238_v10 = vpack.c.bf16 %v2886_v53, %v2886_v53  ;;  %v2994_v12 = vld [vmem:[#allocation11 + $0x88] ss:$16 sps:$4 sm:$0xff]  }
 0x4b1   :  { %1230 = vst [vmem:[#allocation14 + $0xc] sm:$0xf] %v1228_v32  ;;  %1272 = vmatmul.mubr.bf16.vlgmr.msra.gmra.mrb[32].mxu0 %v1238_v10  ;;  %1313 = vmatmul.mubr.bf16.vlgmr.msra.gmra.mrb[32].mxu1 %v1238_v10  ;;  %v3000_v32 = vld [vmem:[#allocation11 + $0xac] ss:$16 sps:$4 sm:$0xff]   ;;  %v3003_v10 = vld [vmem:[#allocation11 + $0xa0] ss:$16 sps:$4 sm:$0xff]  }
 0x4b2   :  { %1370 = vmatpush1.bf16.msra.mxu0 %v2890_v28  ;;  %1411 = vmatpush1.bf16.msra.mxu1 %v2893_v57 }
 0x4b3   :  { %1371 = vmatprep.subr.bf16.mxu0 %v2896_v17  ;;  %1412 = vmatprep.subr.bf16.mxu1 %v2899_v16 }
 0x4b4   :  { %1401 = vmatprep.mubr.bf16.mxu0 %v3179_v14  ;;  %1442 = vmatprep.mubr.bf16.mxu1 %v3179_v14 }
 0x4b6   :  { %1372 = vmatpush1.bf16.msra.mxu0 %v2904_v36  ;;  %1413 = vmatpush1.bf16.msra.mxu1 %v2907_v37 }
 0x4b7   :  { %1373 = vmatprep.subr.bf16.mxu0 %v2910_v38  ;;  %1414 = vmatprep.subr.bf16.mxu1 %v2913_v39 }
 0x4ba   :  { %1374 = vmatpush1.bf16.msra.mxu0 %v2916_v40  ;;  %1415 = vmatpush1.bf16.msra.mxu1 %v2919_v41 }
 0x4bb   :  { %1375 = vmatprep.subr.bf16.mxu0 %v2922_v42  ;;  %1416 = vmatprep.subr.bf16.mxu1 %v2531_v48  ;;  %v2944_v48 = vld [vmem:[#allocation11 + $0x4] ss:$16 sps:$4 sm:$0xff]  }
 0x4be   :  { %1376 = vmatpush1.bf16.msra.mxu0 %v2533_v49  ;;  %1417 = vmatpush1.bf16.msra.mxu1 %v2535_v50  ;;  %v2947_v49 = vld [vmem:[#allocation11 + $0xc] ss:$16 sps:$4 sm:$0xff]  }
 0x4bf   :  { %1377 = vmatprep.subr.bf16.mxu0 %v2539_v51  ;;  %1418 = vmatprep.subr.bf16.mxu1 %v2543_v52  ;;  %v3186_v52 = vld [vmem:[#allocation29_spill] sm:$0xff] }
 0x4c2   :  { %1378 = vmatpush1.bf16.msra.mxu0 %v2552_v55  ;;  %1419 = vmatpush1.bf16.msra.mxu1 %v2554_v56  ;;  %v3187_v56 = vld [vmem:[#allocation30_spill] sm:$0xff] }
 0x4c3   :  { %1379 = vmatprep.subr.bf16.mxu0 %v2559_v58  ;;  %1420 = vmatprep.subr.bf16.mxu1 %v2561_v59 }
 0x4c6   :  { %1380 = vmatpush1.bf16.msra.mxu0 %v2566_v60  ;;  %1421 = vmatpush1.bf16.msra.mxu1 %v2568_v61  ;;  %v3188_v61 = vld [vmem:[#allocation31_spill] sm:$0xff] }
 0x4c7   :  { %1381 = vmatprep.subr.bf16.mxu0 %v2573_v63  ;;  %1422 = vmatprep.subr.bf16.mxu1 %v2575_v1  ;;  %v3189_v1 = vld [vmem:[#allocation32_spill] sm:$0xff] }
 0x4ca   :  { %1382 = vmatpush1.bf16.msra.mxu0 %v2581_v3  ;;  %1423 = vmatpush1.bf16.msra.mxu1 %v2583_v4 }
 0x4cb   :  { %1383 = vmatprep.subr.bf16.mxu0 %v2587_v5  ;;  %1424 = vmatprep.subr.bf16.mxu1 %v2589_v6 }
 0x4ce   :  { %1384 = vmatpush1.bf16.msra.mxu0 %v2594_v7  ;;  %1425 = vmatpush1.bf16.msra.mxu1 %v2596_v8 }
 0x4cf   :  { %1499 = vmatprep.subr.bf16.mxu0 %v2944_v48  ;;  %1540 = vmatprep.subr.bf16.mxu1 %v2947_v49 }
 0x584   :  { %v1273_v50 = vpop.f32.mrb[32].mxu0  ;;  %v1314_v51 = vpop.f32.mrb[32].mxu1 }
 0x585   :  { %v1321_v55 = vadd.f32 %v1273_v50, %v3186_v52  ;;  %v1323_v58 = vadd.f32 %v1314_v51, %v3187_v56  ;;  %v1275_v59 = vpop.f32.mrb[33].mxu0  ;;  %v1316_v60 = vpop.f32.mrb[33].mxu1  ;;  %v3006_v50 = vld [vmem:[#allocation11 + $0xa8] ss:$16 sps:$4 sm:$0xff]   ;;  %v3009_v51 = vld [vmem:[#allocation11 + $0xc4] ss:$16 sps:$4 sm:$0xff]  }
 0x586   :  { %v1322_v63 = vadd.f32 %v1275_v59, %v3188_v61  ;;  %v1324_v3 = vadd.f32 %v1316_v60, %v3189_v1  ;;  %v1277_v4 = vpop.f32.mrb[34].mxu0  ;;  %v1318_v5 = vpop.f32.mrb[34].mxu1  ;;  %v3012_v52 = vld [vmem:[#allocation11 + $0xcc] ss:$16 sps:$4 sm:$0xff]   ;;  %v3018_v56 = vld [vmem:[#allocation11 + $0xc8] ss:$16 sps:$4 sm:$0xff]  }
 0x587   :  { %v1886_v6 = vmul.f32 -1.442695, %v1321_v55  ;;  %v1278_v7 = vpop.f32.mrb[35].mxu0  ;;  %v1319_v8 = vpop.f32.mrb[35].mxu1  ;;  %v3015_v55 = vld [vmem:[#allocation11 + $0xc0] ss:$16 sps:$4 sm:$0xff]  }
 0x588   :  { %v1887_v43 = vmul.f32 -1.442695, %v1322_v63  ;;  %v1888_v45 = vmul.f32 -1.442695, %v1324_v3  ;;  %v3024_v59 = vld [vmem:[#allocation11 + $0xec] ss:$16 sps:$4 sm:$0xff]  }
 0x589   :  { %2084 = vpow2.f32 %v1886_v6  ;;  %v3027_v60 = vld [vmem:[#allocation11 + $0xe0] ss:$16 sps:$4 sm:$0xff]   ;;  %v3030_v61 = vld [vmem:[#allocation11 + $0xe8] ss:$16 sps:$4 sm:$0xff]  }
 0x58a   :  { %2086 = vpow2.f32 %v1887_v43  ;;  %v3190_v3 = vld [vmem:[#allocation33_spill] sm:$0xff]  ;;  %v3191_v5 = vld [vmem:[#allocation34_spill] sm:$0xff]  ;;  %v3192_v43 = vld [vmem:[#allocation35_spill] sm:$0xff] }
 0x58b   :  { %2088 = vpow2.f32 %v1888_v45 }
 0x58c   :  { %2090 = vtanh.f32 %v1323_v58  ;;  %v3021_v58 = vld [vmem:[#allocation11 + $0xe4] ss:$16 sps:$4 sm:$0xff]  }
 0x593   :  { %v2085_v46 = vpop.eup %2084 }
 0x594   :  { %v2087_v47 = vpop.eup %2086  ;;  %v1328_v22 = vadd.f32 1.0, %v2085_v46  ;;  %v3193_v46 = vld [vmem:[#allocation36_spill] sm:$0xff] }
 0x595   :  { %v1334_v54 = vadd.f32 1.0, %v2087_v47  ;;  %v2089_v29 = vpop.eup %2088 }
 0x596   :  { %2092 = vrcp.f32 %v1328_v22  ;;  %v2091_v31 = vpop.eup %2090  ;;  %v1341_v34 = vadd.f32 1.0, %v2089_v29 }
 0x597   :  { %2094 = vrcp.f32 %v1334_v54 }
 0x598   :  { %2096 = vrcp.f32 %v1341_v34 }
 0x5a0   :  { %v2093_v35 = vpop.eup %2092 }
 0x5a1   :  { %v2095_v0 = vpop.eup %2094  ;;  %v1345_v33 = vmul.f32 %v2093_v35, %v2091_v31 }
 0x5a2   :  { %v1344_v44 = vmul.f32 %v2095_v0, %v2883_v27  ;;  %v2097_v20 = vpop.eup %2096 }
 0x5a4   :  { %v1346_v30 = vadd.f32 %v1345_v33, %v1344_v44 }
 0x5a6   :  { %2098 = vtanh.f32 %v1346_v30  ;;  %v2956_v2 = vsel %vm1356_vm13, %v1346_v30, %v2883_v27  ;;  %v2982_v27 = vld [vmem:[#allocation11 + $0x68] ss:$16 sps:$4 sm:$0xff]  }
 0x5b0   :  { %v2099_v19 = vpop.eup %2098 }
 0x5b1   :  { %v1348_v62 = vmul.f32 %v2099_v19, %v2097_v20 }
 0x5b3   :  { %v1357_v9 = vsel %vm1356_vm13, %v1348_v62, 0.0  ;;  %v2959_v21 = vsel %vm1356_vm13, %v1348_v62, %v2886_v53  ;;  %v2997_v53 = vld [vmem:[#allocation11 + $0xa4] ss:$16 sps:$4 sm:$0xff]  }
 0x5b4   :  { %v1358_v23 = vpack.c.bf16 %v1357_v9, %v1357_v9  ;;  %v1368_v24 = vpack.c.bf16 %v2959_v21, %v2959_v21 }
 0x5b6   :  { %1360 = vst [vmem:[#allocation14 + $0x10] sm:$0xf] %v1358_v23  ;;  %1402 = vmatmul.mubr.bf16.vlgmr.msra.gmra.mrb[36].mxu0 %v1368_v24  ;;  %1443 = vmatmul.mubr.bf16.vlgmr.msra.gmra.mrb[36].mxu1 %v1368_v24  ;;  %v1485_v24 = vpop.permute.xlu1 %1484 }
 0x5b7   :  { %1500 = vmatpush1.bf16.msra.mxu0 %v2890_v28  ;;  %1541 = vmatpush1.bf16.msra.mxu1 %v2893_v57  ;;  %vm1486_vm14 = vcmp.eq.s32.totalorder %v1485_v24, 1 }
 0x5b8   :  { %1501 = vmatprep.subr.bf16.mxu0 %v2896_v17  ;;  %1542 = vmatprep.subr.bf16.mxu1 %v2899_v16 }
 0x5b9   :  { %1531 = vmatprep.mubr.bf16.mxu0 %v3179_v14  ;;  %1572 = vmatprep.mubr.bf16.mxu1 %v3179_v14 }
 0x5bb   :  { %1502 = vmatpush1.bf16.msra.mxu0 %v2904_v36  ;;  %1543 = vmatpush1.bf16.msra.mxu1 %v2907_v37 }
 0x5bc   :  { %1503 = vmatprep.subr.bf16.mxu0 %v2910_v38  ;;  %1544 = vmatprep.subr.bf16.mxu1 %v2913_v39 }
 0x5bf   :  { %1504 = vmatpush1.bf16.msra.mxu0 %v2916_v40  ;;  %1545 = vmatpush1.bf16.msra.mxu1 %v2919_v41 }
 0x5c0   :  { %1505 = vmatprep.subr.bf16.mxu0 %v2922_v42  ;;  %1546 = vmatprep.subr.bf16.mxu1 %v2976_v25 }
 0x5c3   :  { %1506 = vmatpush1.bf16.msra.mxu0 %v2979_v26  ;;  %1547 = vmatpush1.bf16.msra.mxu1 %v2982_v27 }
 0x5c4   :  { %1507 = vmatprep.subr.bf16.mxu0 %v2985_v13  ;;  %1548 = vmatprep.subr.bf16.mxu1 %v2988_v11 }
 0x5c7   :  { %1508 = vmatpush1.bf16.msra.mxu0 %v2991_v15  ;;  %1549 = vmatpush1.bf16.msra.mxu1 %v2994_v12 }
 0x5c8   :  { %1509 = vmatprep.subr.bf16.mxu0 %v2997_v53  ;;  %1550 = vmatprep.subr.bf16.mxu1 %v3000_v32 }
 0x5cb   :  { %1510 = vmatpush1.bf16.msra.mxu0 %v3003_v10  ;;  %1551 = vmatpush1.bf16.msra.mxu1 %v3006_v50 }
 0x5cc   :  { %1511 = vmatprep.subr.bf16.mxu0 %v3009_v51  ;;  %1552 = vmatprep.subr.bf16.mxu1 %v3012_v52 }
 0x5cf   :  { %1512 = vmatpush1.bf16.msra.mxu0 %v3015_v55  ;;  %1553 = vmatpush1.bf16.msra.mxu1 %v3018_v56 }
 0x5d0   :  { %1513 = vmatprep.subr.bf16.mxu0 %v3021_v58  ;;  %1554 = vmatprep.subr.bf16.mxu1 %v3024_v59 }
 0x5d3   :  { %1514 = vmatpush1.bf16.msra.mxu0 %v3027_v60  ;;  %1555 = vmatpush1.bf16.msra.mxu1 %v3030_v61 }
 0x5d4   :  { %1629 = vmatprep.subr.bf16.mxu0 %v2944_v48  ;;  %1670 = vmatprep.subr.bf16.mxu1 %v2947_v49 }
 0x689   :  { %v1403_v63 = vpop.f32.mrb[36].mxu0  ;;  %v1444_v1 = vpop.f32.mrb[36].mxu1 }
 0x68a   :  { %v1451_v4 = vadd.f32 %v1403_v63, %v3190_v3  ;;  %v1453_v6 = vadd.f32 %v1444_v1, %v3191_v5  ;;  %v1405_v7 = vpop.f32.mrb[37].mxu0  ;;  %v1446_v8 = vpop.f32.mrb[37].mxu1 }
 0x68b   :  { %v1452_v45 = vadd.f32 %v1405_v7, %v3192_v43  ;;  %v1454_v47 = vadd.f32 %v1446_v8, %v3193_v46  ;;  %v1407_v22 = vpop.f32.mrb[38].mxu0  ;;  %v1448_v54 = vpop.f32.mrb[38].mxu1 }
 0x68c   :  { %v1889_v29 = vmul.f32 -1.442695, %v1451_v4  ;;  %v1408_v31 = vpop.f32.mrb[39].mxu0  ;;  %v1449_v35 = vpop.f32.mrb[39].mxu1 }
 0x68d   :  { %v1890_v48 = vmul.f32 -1.442695, %v1452_v45  ;;  %v1891_v49 = vmul.f32 -1.442695, %v1454_v47 }
 0x68e   :  { %2100 = vpow2.f32 %v1889_v29 }
 0x68f   :  { %2102 = vpow2.f32 %v1890_v48 }
 0x690   :  { %2104 = vpow2.f32 %v1891_v49  ;;  %v3198_v49 = vld [vmem:[#allocation41_spill] sm:$0xff] }
 0x691   :  { %2106 = vtanh.f32 %v1453_v6 }
 0x698   :  { %v2101_v0 = vpop.eup %2100 }
 0x699   :  { %v2103_v33 = vpop.eup %2102  ;;  %v1458_v34 = vadd.f32 1.0, %v2101_v0 }
 0x69a   :  { %v1464_v44 = vadd.f32 1.0, %v2103_v33  ;;  %v2105_v18 = vpop.eup %2104  ;;  %v3199_v33 = vld [vmem:[#allocation42_spill] sm:$0xff] }
 0x69b   :  { %2108 = vrcp.f32 %v1458_v34  ;;  %v2107_v30 = vpop.eup %2106  ;;  %v1471_v9 = vadd.f32 1.0, %v2105_v18 }
 0x69c   :  { %2110 = vrcp.f32 %v1464_v44 }
 0x69d   :  { %2112 = vrcp.f32 %v1471_v9 }
 0x6a5   :  { %v2109_v20 = vpop.eup %2108 }
 0x6a6   :  { %v2111_v19 = vpop.eup %2110  ;;  %v1475_v62 = vmul.f32 %v2109_v20, %v2107_v30  ;;  %v3200_v30 = vld [vmem:[#allocation43_spill] sm:$0xff] }
 0x6a7   :  { %v1474_v23 = vmul.f32 %v2111_v19, %v2956_v2  ;;  %v2113_v3 = vpop.eup %2112  ;;  %v3201_v19 = vld [vmem:[#allocation44_spill] sm:$0xff] }
 0x6a9   :  { %v1476_v63 = vadd.f32 %v1475_v62, %v1474_v23 }
 0x6ab   :  { %2114 = vtanh.f32 %v1476_v63  ;;  %v3041_v1 = vsel %vm1486_vm14, %v1476_v63, %v2956_v2 }
 0x6b5   :  { %v2115_v4 = vpop.eup %2114 }
 0x6b6   :  { %v1478_v5 = vmul.f32 %v2115_v4, %v2113_v3 }
 0x6b8   :  { %v1487_v6 = vsel %vm1486_vm14, %v1478_v5, 0.0  ;;  %v3044_v7 = vsel %vm1486_vm14, %v1478_v5, %v2959_v21 }
 0x6b9   :  { %v1488_v8 = vpack.c.bf16 %v1487_v6, %v1487_v6  ;;  %v1498_v43 = vpack.c.bf16 %v3044_v7, %v3044_v7 }
 0x6bb   :  { %1490 = vst [vmem:[#allocation14 + $0x14] sm:$0xf] %v1488_v8  ;;  %1532 = vmatmul.mubr.bf16.vlgmr.msra.gmra.mrb[40].mxu0 %v1498_v43  ;;  %1573 = vmatmul.mubr.bf16.vlgmr.msra.gmra.mrb[40].mxu1 %v1498_v43 }
 0x6bc   :  { %1630 = vmatpush1.bf16.msra.mxu0 %v2890_v28  ;;  %1671 = vmatpush1.bf16.msra.mxu1 %v2893_v57  ;;  %v3194_v57 = vld [vmem:[#allocation37_spill] sm:$0xff] }
 0x6bd   :  { %1631 = vmatprep.subr.bf16.mxu0 %v2896_v17  ;;  %1672 = vmatprep.subr.bf16.mxu1 %v2899_v16  ;;  %v3195_v16 = vld [vmem:[#allocation38_spill] sm:$0xff] }
 0x6be   :  { %1661 = vmatprep.mubr.bf16.mxu0 %v3179_v14  ;;  %1702 = vmatprep.mubr.bf16.mxu1 %v3179_v14 }
 0x6c0   :  { %1632 = vmatpush1.bf16.msra.mxu0 %v2904_v36  ;;  %1673 = vmatpush1.bf16.msra.mxu1 %v2907_v37 }
 0x6c1   :  { %1633 = vmatprep.subr.bf16.mxu0 %v2910_v38  ;;  %1674 = vmatprep.subr.bf16.mxu1 %v2913_v39  ;;  %v3196_v39 = vld [vmem:[#allocation39_spill] sm:$0xff] }
 0x6c4   :  { %1634 = vmatpush1.bf16.msra.mxu0 %v2916_v40  ;;  %1675 = vmatpush1.bf16.msra.mxu1 %v2919_v41  ;;  %v3197_v41 = vld [vmem:[#allocation40_spill] sm:$0xff] }
 0x6c5   :  { %1635 = vmatprep.subr.bf16.mxu0 %v2922_v42  ;;  %1676 = vmatprep.subr.bf16.mxu1 %v2976_v25 }
 0x6c8   :  { %1636 = vmatpush1.bf16.msra.mxu0 %v2979_v26  ;;  %1677 = vmatpush1.bf16.msra.mxu1 %v2982_v27 }
 0x6c9   :  { %1637 = vmatprep.subr.bf16.mxu0 %v2985_v13  ;;  %1678 = vmatprep.subr.bf16.mxu1 %v2988_v11 }
 0x6cc   :  { %1638 = vmatpush1.bf16.msra.mxu0 %v2991_v15  ;;  %1679 = vmatpush1.bf16.msra.mxu1 %v2994_v12 }
 0x6cd   :  { %1639 = vmatprep.subr.bf16.mxu0 %v2997_v53  ;;  %1680 = vmatprep.subr.bf16.mxu1 %v3000_v32 }
 0x6d0   :  { %1640 = vmatpush1.bf16.msra.mxu0 %v3003_v10  ;;  %1681 = vmatpush1.bf16.msra.mxu1 %v3006_v50 }
 0x6d1   :  { %1641 = vmatprep.subr.bf16.mxu0 %v3009_v51  ;;  %1682 = vmatprep.subr.bf16.mxu1 %v3012_v52 }
 0x6d4   :  { %1642 = vmatpush1.bf16.msra.mxu0 %v3015_v55  ;;  %1683 = vmatpush1.bf16.msra.mxu1 %v3018_v56 }
 0x6d5   :  { %1643 = vmatprep.subr.bf16.mxu0 %v3021_v58  ;;  %1684 = vmatprep.subr.bf16.mxu1 %v3024_v59  ;;  %v1615_v58 = vpop.permute.xlu0 %1614 }
 0x6d6   :  { %vm1616_vm15 = vcmp.eq.s32.totalorder %v1615_v58, 1 }
 0x6d8   :  { %1644 = vmatpush1.bf16.msra.mxu0 %v3027_v60  ;;  %1685 = vmatpush1.bf16.msra.mxu1 %v3030_v61 }
 0x78e   :  { %v1533_v14 = vpop.f32.mrb[40].mxu0  ;;  %v1574_v28 = vpop.f32.mrb[40].mxu1 }
 0x78f   :  { %v1581_v17 = vadd.f32 %v1533_v14, %v3194_v57  ;;  %v1583_v36 = vadd.f32 %v1574_v28, %v3195_v16  ;;  %v1535_v37 = vpop.f32.mrb[41].mxu0  ;;  %v1576_v38 = vpop.f32.mrb[41].mxu1 }
 0x790   :  { %v1582_v40 = vadd.f32 %v1535_v37, %v3196_v39  ;;  %v1584_v42 = vadd.f32 %v1576_v38, %v3197_v41  ;;  %v1537_v2 = vpop.f32.mrb[42].mxu0  ;;  %v1578_v21 = vpop.f32.mrb[42].mxu1 }
 0x791   :  { %v1892_v25 = vmul.f32 -1.442695, %v1581_v17  ;;  %v1538_v26 = vpop.f32.mrb[43].mxu0  ;;  %v1579_v27 = vpop.f32.mrb[43].mxu1 }
 0x792   :  { %v1893_v13 = vmul.f32 -1.442695, %v1582_v40  ;;  %v1894_v11 = vmul.f32 -1.442695, %v1584_v42 }
 0x793   :  { %2116 = vpow2.f32 %v1892_v25 }
 0x794   :  { %2118 = vpow2.f32 %v1893_v13 }
 0x795   :  { %2120 = vpow2.f32 %v1894_v11 }
 0x796   :  { %2122 = vtanh.f32 %v1583_v36  ;;  %v1745_v36 = vpop.permute.xlu1 %1744 }
 0x797   :  { %vm1746_vm0 = vcmp.eq.s32.totalorder %v1745_v36, 1 }
 0x79d   :  { %v2117_v15 = vpop.eup %2116 }
 0x79e   :  { %v2119_v12 = vpop.eup %2118  ;;  %v1588_v53 = vadd.f32 1.0, %v2117_v15 }
 0x79f   :  { %v1594_v32 = vadd.f32 1.0, %v2119_v12  ;;  %v2121_v10 = vpop.eup %2120 }
 0x7a0   :  { %2124 = vrcp.f32 %v1588_v53  ;;  %v2123_v50 = vpop.eup %2122  ;;  %v1601_v56 = vadd.f32 1.0, %v2121_v10 }
 0x7a1   :  { %2126 = vrcp.f32 %v1594_v32 }
 0x7a2   :  { %2128 = vrcp.f32 %v1601_v56 }
 0x7aa   :  { %v2125_v51 = vpop.eup %2124 }
 0x7ab   :  { %v2127_v52 = vpop.eup %2126  ;;  %v1605_v55 = vmul.f32 %v2125_v51, %v2123_v50 }
 0x7ac   :  { %v1604_v59 = vmul.f32 %v2127_v52, %v3041_v1  ;;  %v2129_v45 = vpop.eup %2128 }
 0x7ae   :  { %v1606_v60 = vadd.f32 %v1605_v55, %v1604_v59 }
 0x7b0   :  { %2130 = vtanh.f32 %v1606_v60  ;;  %v1622_v61 = vsel %vm1616_vm15, %v1606_v60, %v3041_v1 }
 0x7ba   :  { %v2131_v46 = vpop.eup %2130 }
 0x7bb   :  { %v1608_v47 = vmul.f32 %v2131_v46, %v2129_v45 }
 0x7bd   :  { %v1617_v22 = vsel %vm1616_vm15, %v1608_v47, 0.0  ;;  %v1621_v54 = vsel %vm1616_vm15, %v1608_v47, %v3044_v7 }
 0x7be   :  { %v1618_v29 = vpack.c.bf16 %v1617_v22, %v1617_v22  ;;  %v1628_v31 = vpack.c.bf16 %v1621_v54, %v1621_v54 }
 0x7c0   :  { %1620 = vst [vmem:[#allocation14 + $0x18] sm:$0xf] %v1618_v29  ;;  %1662 = vmatmul.mubr.bf16.vlgmr.msra.gmra.mrb[44].mxu0 %v1628_v31  ;;  %1703 = vmatmul.mubr.bf16.vlgmr.msra.gmra.mrb[44].mxu1 %v1628_v31 }
 0x893   :  { %v1663_v35 = vpop.f32.mrb[44].mxu0  ;;  %v1704_v48 = vpop.f32.mrb[44].mxu1 }
 0x894   :  { %v1711_v0 = vadd.f32 %v1663_v35, %v3198_v49  ;;  %v1713_v34 = vadd.f32 %v1704_v48, %v3199_v33  ;;  %v1665_v44 = vpop.f32.mrb[45].mxu0  ;;  %v1706_v18 = vpop.f32.mrb[45].mxu1 }
 0x895   :  { %v1712_v20 = vadd.f32 %v1665_v44, %v3200_v30  ;;  %v1714_v62 = vadd.f32 %v1706_v18, %v3201_v19  ;;  %v1667_v9 = vpop.f32.mrb[46].mxu0  ;;  %v1708_v23 = vpop.f32.mrb[46].mxu1 }
 0x896   :  { %v1895_v24 = vmul.f32 -1.442695, %v1711_v0  ;;  %v1668_v63 = vpop.f32.mrb[47].mxu0  ;;  %v1709_v1 = vpop.f32.mrb[47].mxu1 }
 0x897   :  { %v1896_v3 = vmul.f32 -1.442695, %v1712_v20  ;;  %v1897_v4 = vmul.f32 -1.442695, %v1714_v62 }
 0x898   :  { %2132 = vpow2.f32 %v1895_v24 }
 0x899   :  { %2134 = vpow2.f32 %v1896_v3 }
 0x89a   :  { %2136 = vpow2.f32 %v1897_v4 }
 0x89b   :  { %2138 = vtanh.f32 %v1713_v34 }
 0x8a2   :  { %v2133_v5 = vpop.eup %2132 }
 0x8a3   :  { %v2135_v6 = vpop.eup %2134  ;;  %v1718_v7 = vadd.f32 1.0, %v2133_v5 }
 0x8a4   :  { %v1724_v8 = vadd.f32 1.0, %v2135_v6  ;;  %v2137_v43 = vpop.eup %2136 }
 0x8a5   :  { %2140 = vrcp.f32 %v1718_v7  ;;  %v2139_v14 = vpop.eup %2138  ;;  %v1731_v16 = vadd.f32 1.0, %v2137_v43 }
 0x8a6   :  { %2142 = vrcp.f32 %v1724_v8 }
 0x8a7   :  { %2144 = vrcp.f32 %v1731_v16 }
 0x8af   :  { %v2141_v28 = vpop.eup %2140 }
 0x8b0   :  { %v2143_v57 = vpop.eup %2142  ;;  %v1735_v17 = vmul.f32 %v2141_v28, %v2139_v14 }
 0x8b1   :  { %v1734_v37 = vmul.f32 %v2143_v57, %v1622_v61  ;;  %v2145_v40 = vpop.eup %2144 }
 0x8b3   :  { %v1736_v38 = vadd.f32 %v1735_v17, %v1734_v37 }
 0x8b5   :  { %2146 = vtanh.f32 %v1736_v38  ;;  %v1752_v39 = vsel %vm1746_vm0, %v1736_v38, %v1622_v61 }
 0x8b6   :  { %1759 = vst [vmem:[#allocation17] sm:$0xff] %v1752_v39 }
 0x8bf   :  { %v2147_v41 = vpop.eup %2146 }
 0x8c0   :  { %v1738_v42 = vmul.f32 %v2147_v41, %v2145_v40 }
 0x8c2   :  { %v1747_v2 = vsel %vm1746_vm0, %v1738_v42, 0.0  ;;  %v1751_v21 = vsel %vm1746_vm0, %v1738_v42, %v1621_v54 }
 0x8c3   :  { %v1748_v25 = vpack.c.bf16 %v1747_v2, %v1747_v2  ;;  %1758 = vst [vmem:[#allocation15] sm:$0xff] %v1751_v21 }
 0x8c4   :  { %2301 = shalt.err (!%p2298_p2)
}
 0x8c5   :  { %s2302_s1 = scalar_lea.hbm %s3153_s6, 128 }
 0x8c6   :  { %p2303_p3 = scmp.ne.s32.totalorder %s3153_s6, %s2302_s1  ;;  %p2306_p4 = scmp.lt.u32.totalorder %s2302_s1, %s3153_s6 }
 0x8c8   :  { %p2308_p5 = pnand %p2306_p4, %p2303_p3 }
 0x8ca   :  { %2311 = shalt.err (!%p2308_p5)
}
 0x8cb   :  { %1781 = dma.vmem_to_hbm [thread:$0]  %s1779_s27, 128, %s3153_s6, [#allocation16]   ;;  %1750 = vst [vmem:[#allocation14 + $0x1c] sm:$0xf] %v1748_v25 }
 0x8cc   :  { %s2312_s9 = scalar_lea.vmem %s3094_s20, 128  ;;  %p2317_p7 = scmp.lt.s32.totalorder %s3094_s20, %s3094_s20 }
 0x8cd   :  { %p2313_p6 = scmp.ne.s32.totalorder %s3094_s20, %s2312_s9  ;;  %p2318_p8 = scmp.lt.s32.totalorder %s2312_s9, %s2312_s9 }
 0x8cf   :  { %p2319_p9 = por %p2318_p8, %p2317_p7 }
 0x8d1   :  { %p2320_p10 = pnand %p2319_p9, %p2313_p6 }
 0x8d3   :  { %2323 = shalt.err (!%p2320_p10)
}
 0x8d4   :  { %s2324_s14 = scalar_lea.hbm %s3154_s7, 128 }
 0x8d5   :  { %p2325_p11 = scmp.ne.s32.totalorder %s3154_s7, %s2324_s14  ;;  %p2328_p12 = scmp.lt.u32.totalorder %s2324_s14, %s3154_s7 }
 0x8d7   :  { %p2330_p13 = pnand %p2328_p12, %p2325_p11 }
 0x8d9   :  { %2333 = shalt.err (!%p2330_p13)
}
 0x8da   :  { %1791 = dma.vmem_to_hbm [thread:$0]  %s3094_s20, 128, %s3154_s7, [#allocation16]  }
 0x8db   :  { %s2334_s25 = scalar_lea.vmem %s3096_s22, 512  ;;  %p2339_p1 = scmp.lt.s32.totalorder %s3096_s22, %s3096_s22 }
 0x8dc   :  { %p2335_p0 = scmp.ne.s32.totalorder %s3096_s22, %s2334_s25  ;;  %p2340_p2 = scmp.lt.s32.totalorder %s2334_s25, %s2334_s25 }
 0x8de   :  { %p2341_p3 = por %p2340_p2, %p2339_p1 }
 0x8e0   :  { %p2342_p4 = pnand %p2341_p3, %p2335_p0 }
 0x8e2   :  { %2345 = shalt.err (!%p2342_p4)
}
 0x8e3   :  { %s2346_s19 = scalar_lea.hbm %s3152_s5, 512 }
 0x8e4   :  { %p2347_p5 = scmp.ne.s32.totalorder %s3152_s5, %s2346_s19  ;;  %p2350_p6 = scmp.lt.u32.totalorder %s2346_s19, %s3152_s5 }
 0x8e6   :  { %p2352_p7 = pnand %p2350_p6, %p2347_p5 }
 0x8e8   :  { %2355 = shalt.err (!%p2352_p7)
}
 0x8e9   :  { %1771 = dma.vmem_to_hbm [thread:$0]  %s3096_s22, 512, %s3152_s5, [#allocation7], %s2367_s11, %s2367_s11, %s2368_s12  }
 0x8ea   :  { %2362 = dma.done.wait [#allocation7], 512  }
 0x8eb   :  { %2363 = vsyncadd [#allocation7], 4294966784 }
 0x8ec   :  { %2364 = dma.done.wait [#allocation16], 256  }
 0x8ed   :  { %2365 = vsyncadd [#allocation16], 4294967040 }
 0x8ee   :  { %1801 = vsyncpa [#allocation6], 1 }
 0x8ef   :  { %1802 = vsyncpa [#allocation9], 1 }
 0x8f0   :  { %1803 = vsyncpa [#allocation12], 1 }
 0x8f1   :  { %1804 = vsyncpa [#allocation7], 1 }
 0x8f2   :  { %1805 = vsyncpa [#allocation16], 1 }

// kernel: base_encoder_forward.5
= control target key start
LH: loop header
LB: loop body
LE: loop exit
PB: predicated region body
PF: predicated region fallthrough
CT: control target
= control target key end

     0   :  { %13 = vsyncpa [#allocation6], 0  ;;  %s2934_s0 = inlined_call_operand.hbm [shape: s32[8,1], index: 0, kind: input, shape index: {}]   ;;  %s2935_s1 = inlined_call_operand.hbm [shape: bf16[8,8,16], index: 1, kind: input, shape index: {}]   ;;  %s2936_s2 = inlined_call_operand.hbm [shape: bf16[16,512], index: 2, kind: input, shape index: {}]   ;;  %s2937_s3 = inlined_call_operand.hbm [shape: bf16[128,512], index: 3, kind: input, shape index: {}]   ;;  %s2938_s4 = inlined_call_operand.hbm [shape: f32[1,512], index: 4, kind: input, shape index: {}]   ;;  %s2939_s5 = inlined_call_operand.hbm [shape: bf16[8,8,128], index: 5, kind: output, shape index: {0}]   ;;  %s2940_s6 = inlined_call_operand.hbm [shape: f32[8,128], index: 6, kind: output, shape index: {1}]   ;;  %s2941_s7 = inlined_call_operand.hbm [shape: f32[8,128], index: 7, kind: output, shape index: {2}]  }
   0x1   :  { %14 = vsyncpa [#allocation9], 0 }
   0x2   :  { %15 = vsyncpa [#allocation12], 0 }
   0x3   :  { %16 = vsyncpa [#allocation7], 0 }
   0x4   :  { %17 = vsyncpa [#allocation16], 0  ;;  %s2145_s24 = smov [#allocation8]   ;;  %s1959_s28 = scalar_lea.hbm %s2935_s1, 512 }
   0x5   :  { %s33_s25 = sshll.u32 %s2145_s24, 4  ;;  %p1960_p0 = scmp.ne.s32.totalorder %s2935_s1, %s1959_s28  ;;  %s34_s25 = int_to_ptr.vmem [resolvable:$true] %s33_s25 }
   0x6   :  { %p1963_p1 = scmp.lt.u32.totalorder %s1959_s28, %s2935_s1 }
   0x8   :  { %p1965_p2 = pnand %p1963_p1, %p1960_p0 }
   0xa   :  { %1968 = shalt.err (!%p1965_p2)
}
   0xb   :  { %s1969_s10 = scalar_lea.vmem %s34_s25, 512  ;;  %p1974_p4 = scmp.lt.s32.totalorder %s34_s25, %s34_s25 }
   0xc   :  { %p1970_p3 = scmp.ne.s32.totalorder %s34_s25, %s1969_s10  ;;  %p1975_p5 = scmp.lt.s32.totalorder %s1969_s10, %s1969_s10 }
   0xe   :  { %p1976_p6 = por %p1975_p5, %p1974_p4 }
  0x10   :  { %p1977_p7 = pnand %p1976_p6, %p1970_p3 }
  0x12   :  { %1980 = shalt.err (!%p1977_p7)
}
  0x13   :  { %s2146_s11 = smov 64   ;;  %s2147_s12 = smov 4  }
  0x14   :  { %39 = dma.hbm_to_vmem [thread:$0]  %s2935_s1, 512, %s34_s25, [#allocation9], %s2146_s11, %s2146_s11, %s2147_s12  }
  0x15   :  { %s2148_s15 = smov [#allocation11]   ;;  %s2149_s17 = smov [#allocation5]  }
  0x16   :  { %s57_s16 = sshll.u32 %s2148_s15, 4  ;;  %s24_s18 = sshll.u32 %s2149_s17, 4  ;;  %s58_s16 = int_to_ptr.vmem [resolvable:$true] %s57_s16  ;;  %s25_s18 = int_to_ptr.vmem [resolvable:$true] %s24_s18 }
  0x17   :  { %s1981_s21 = scalar_lea.hbm %s2937_s3, 4096 }
  0x18   :  { %p1982_p8 = scmp.ne.s32.totalorder %s2937_s3, %s1981_s21  ;;  %p1985_p9 = scmp.lt.u32.totalorder %s1981_s21, %s2937_s3 }
  0x1a   :  { %p1987_p10 = pnand %p1985_p9, %p1982_p8 }
  0x1c   :  { %1990 = shalt.err (!%p1987_p10)
}
  0x1d   :  { %s1991_s1 = scalar_lea.vmem %s58_s16, 4096  ;;  %p1996_p12 = scmp.lt.s32.totalorder %s58_s16, %s58_s16 }
  0x1e   :  { %p1992_p11 = scmp.ne.s32.totalorder %s58_s16, %s1991_s1  ;;  %p1997_p13 = scmp.lt.s32.totalorder %s1991_s1, %s1991_s1 }
  0x20   :  { %p1998_p0 = por %p1997_p13, %p1996_p12 }
  0x22   :  { %p1999_p1 = pnand %p1998_p0, %p1992_p11 }
  0x24   :  { %2002 = shalt.err (!%p1999_p1)
}
  0x25   :  { %s2150_s25 = smov 256   ;;  %s2151_s27 = smov 16  }
  0x26   :  { %63 = dma.hbm_to_vmem [thread:$0]  %s2937_s3, 4096, %s58_s16, [#allocation12], %s2150_s25, %s2150_s25, %s2151_s27  }
  0x27   :  { %s2003_s9 = scalar_lea.hbm %s2934_s0, 128 }
  0x28   :  { %p2004_p2 = scmp.ne.s32.totalorder %s2934_s0, %s2003_s9  ;;  %p2007_p3 = scmp.lt.u32.totalorder %s2003_s9, %s2934_s0 }
  0x2a   :  { %p2009_p4 = pnand %p2007_p3, %p2004_p2 }
  0x2c   :  { %2012 = shalt.err (!%p2009_p4)
}
  0x2d   :  { %s2013_s17 = scalar_lea.vmem %s25_s18, 128  ;;  %p2018_p6 = scmp.lt.s32.totalorder %s25_s18, %s25_s18 }
  0x2e   :  { %p2014_p5 = scmp.ne.s32.totalorder %s25_s18, %s2013_s17  ;;  %p2019_p7 = scmp.lt.s32.totalorder %s2013_s17, %s2013_s17 }
  0x30   :  { %p2020_p8 = por %p2019_p7, %p2018_p6 }
  0x32   :  { %p2021_p9 = pnand %p2020_p8, %p2014_p5 }
  0x34   :  { %2024 = shalt.err (!%p2021_p9)
}
  0x35   :  { %27 = dma.hbm_to_vmem [thread:$0]  %s2934_s0, 128, %s25_s18, [#allocation6]  }
  0x36   :  { %s2152_s19 = smov [#allocation10]   ;;  %s2153_s21 = smov [#allocation13]  }
  0x37   :  { %s45_s20 = sshll.u32 %s2152_s19, 4  ;;  %s70_s22 = sshll.u32 %s2153_s21, 4  ;;  %s46_s20 = int_to_ptr.vmem [resolvable:$true] %s45_s20  ;;  %s71_s22 = int_to_ptr.vmem [resolvable:$true] %s70_s22 }
  0x38   :  { %s2025_s26 = scalar_lea.hbm %s2936_s2, 512 }
  0x39   :  { %p2026_p10 = scmp.ne.s32.totalorder %s2936_s2, %s2025_s26  ;;  %p2029_p11 = scmp.lt.u32.totalorder %s2025_s26, %s2936_s2 }
  0x3b   :  { %p2031_p12 = pnand %p2029_p11, %p2026_p10 }
  0x3d   :  { %2034 = shalt.err (!%p2031_p12)
}
  0x3e   :  { %s2035_s0 = scalar_lea.vmem %s46_s20, 512  ;;  %p2040_p0 = scmp.lt.s32.totalorder %s46_s20, %s46_s20 }
  0x3f   :  { %p2036_p13 = scmp.ne.s32.totalorder %s46_s20, %s2035_s0  ;;  %p2041_p1 = scmp.lt.s32.totalorder %s2035_s0, %s2035_s0 }
  0x41   :  { %p2042_p2 = por %p2041_p1, %p2040_p0 }
  0x43   :  { %p2043_p3 = pnand %p2042_p2, %p2036_p13 }
  0x45   :  { %2046 = shalt.err (!%p2043_p3)
}
  0x46   :  { %51 = dma.hbm_to_vmem [thread:$0]  %s2936_s2, 512, %s46_s20, [#allocation9], %s2150_s25, %s2150_s25, %s2151_s27  }
  0x47   :  { %s2047_s13 = scalar_lea.hbm %s2938_s4, 64 }
  0x48   :  { %p2048_p4 = scmp.ne.s32.totalorder %s2938_s4, %s2047_s13  ;;  %p2051_p5 = scmp.lt.u32.totalorder %s2047_s13, %s2938_s4 }
  0x4a   :  { %p2053_p6 = pnand %p2051_p5, %p2048_p4 }
  0x4c   :  { %2056 = shalt.err (!%p2053_p6)
}
  0x4d   :  { %s2057_s16 = scalar_lea.vmem %s71_s22, 64  ;;  %p2062_p8 = scmp.lt.s32.totalorder %s71_s22, %s71_s22 }
  0x4e   :  { %p2058_p7 = scmp.ne.s32.totalorder %s71_s22, %s2057_s16  ;;  %p2063_p9 = scmp.lt.s32.totalorder %s2057_s16, %s2057_s16 }
  0x50   :  { %p2064_p10 = por %p2063_p9, %p2062_p8 }
  0x52   :  { %p2065_p11 = pnand %p2064_p10, %p2058_p7 }
  0x54   :  { %2068 = shalt.err (!%p2065_p11)
}
  0x55   :  { %73 = dma.hbm_to_vmem [thread:$0]  %s2938_s4, 64, %s71_s22, [#allocation12]  }
  0x56   :  { %2135 = dma.done.wait [#allocation6], 128  }
  0x57   :  { %2136 = vsyncadd [#allocation6], 4294967168 }
  0x58   :  { %2137 = dma.done.wait [#allocation9], 1024  }
  0x59   :  { %2138 = vsyncadd [#allocation9], 4294966272 }
  0x5a   :  { %2139 = dma.done.wait [#allocation12], 4160  }
  0x5b   :  { %2140 = vsyncadd [#allocation12], 4294963136  ;;  %v2942_v0 = vmov 0   ;;  %v1741_v1 = vld [vmem:[#allocation10 + $0x4] ss:$16 sps:$4 sm:$0xff]   ;;  %vm170_vm0 = vcmask 130048   ;;  %v110_v47 = vlaneseq }
  0x5c   :  { %215 = vmatprep.mubr.bf16.mxu0 %v2942_v0  ;;  %288 = vmatprep.mubr.bf16.mxu1 %v2942_v0  ;;  %v1743_v2 = vld [vmem:[#allocation10 + $0xc] ss:$16 sps:$4 sm:$0xff]   ;;  %v1745_v3 = vld [vmem:[#allocation10] ss:$16 sps:$4 sm:$0xff]   ;;  %v1746_v4 = vld [vmem:[#allocation10 + $0x8] ss:$16 sps:$4 sm:$0xff]  }
  0x5d   :  { %1739 = vset.pattern.permute.xlu0 %v2942_v0  ;;  %1740 = vset.pattern.permute.xlu1 %v2942_v0  ;;  %v1747_v5 = vld [vmem:[#allocation8] sm:$0xff]   ;;  %v2274_v7 = vld [vmem:[#allocation11 + $0xc] ss:$16 sps:$4 sm:$0xff]   ;;  %v2279_v9 = vld [vmem:[#allocation11 + $0x8] ss:$16 sps:$4 sm:$0xff]   ;;  %v2155_v44 = vmov 0.0|0.0  }
  0x5e   :  { %183 = vmatprep.subr.bf16.mxu0 %v1741_v1  ;;  %256 = vmatprep.subr.bf16.mxu1 %v1743_v2  ;;  %v2272_v6 = vld [vmem:[#allocation11 + $0x4] ss:$16 sps:$4 sm:$0xff]   ;;  %v2276_v8 = vld [vmem:[#allocation11] ss:$16 sps:$4 sm:$0xff]   ;;  %v2287_v11 = vld [vmem:[#allocation11 + $0x2c] ss:$16 sps:$4 sm:$0xff]  }
  0x5f   :  { %184 = vmatpush1.bf16.msra.mxu0 %v1745_v3  ;;  %257 = vmatpush1.bf16.msra.mxu1 %v1746_v4  ;;  %v2283_v10 = vld [vmem:[#allocation11 + $0x24] ss:$16 sps:$4 sm:$0xff]   ;;  %v2289_v12 = vld [vmem:[#allocation11 + $0x20] ss:$16 sps:$4 sm:$0xff]   ;;  %v2291_v13 = vld [vmem:[#allocation11 + $0x28] ss:$16 sps:$4 sm:$0xff]  }
  0x60   :  { %562 = vmatprep.subr.bf16.mxu0 %v2272_v6  ;;  %603 = vmatprep.subr.bf16.mxu1 %v2274_v7  ;;  %v1760_v14 = vld [vmem:[#allocation8 + $0x8] sm:$0xff]   ;;  %v2297_v15 = vld [vmem:[#allocation11 + $0x44] ss:$16 sps:$4 sm:$0xff]   ;;  %v2303_v17 = vld [vmem:[#allocation11 + $0x40] ss:$16 sps:$4 sm:$0xff]   ;;  %v111_v48 = vshrl.u32 %v110_v47, 7 }
  0x61   :  { %v2300_v16 = vld [vmem:[#allocation11 + $0x4c] ss:$16 sps:$4 sm:$0xff]   ;;  %v2305_v18 = vld [vmem:[#allocation11 + $0x48] ss:$16 sps:$4 sm:$0xff]   ;;  %v2309_v19 = vld [vmem:[#allocation11 + $0x64] ss:$16 sps:$4 sm:$0xff]  }
  0x62   :  { %1655 = vmatmul.mubr.msk.bf16.vlgmr.msra.gmra.mrb[0].mxu0 %vm170_vm0, %v1747_v5  ;;  %1659 = vmatmul.mubr.msk.bf16.vlgmr.msra.gmra.mrb[0].mxu1 %vm170_vm0, %v1747_v5  ;;  %v2312_v20 = vld [vmem:[#allocation11 + $0x6c] ss:$16 sps:$4 sm:$0xff]   ;;  %v2316_v21 = vld [vmem:[#allocation11 + $0x60] ss:$16 sps:$4 sm:$0xff]   ;;  %v2319_v22 = vld [vmem:[#allocation11 + $0x68] ss:$16 sps:$4 sm:$0xff]  }
  0x63   :  { %563 = vmatpush1.bf16.msra.mxu0 %v2276_v8  ;;  %604 = vmatpush1.bf16.msra.mxu1 %v2279_v9  ;;  %v2324_v23 = vld [vmem:[#allocation11 + $0x84] ss:$16 sps:$4 sm:$0xff]   ;;  %v2328_v24 = vld [vmem:[#allocation11 + $0x8c] ss:$16 sps:$4 sm:$0xff]   ;;  %v2331_v26 = vld [vmem:[#allocation11 + $0x80] ss:$16 sps:$4 sm:$0xff]  }
  0x64   :  { %564 = vmatprep.subr.bf16.mxu0 %v2283_v10  ;;  %605 = vmatprep.subr.bf16.mxu1 %v2287_v11  ;;  %v1773_v25 = vld [vmem:[#allocation8 + $0x10] sm:$0xff]   ;;  %v2335_v27 = vld [vmem:[#allocation11 + $0x88] ss:$16 sps:$4 sm:$0xff]   ;;  %v2340_v29 = vld [vmem:[#allocation11 + $0xac] ss:$16 sps:$4 sm:$0xff]   ;;  %v120_v49 = vsub.s32 2, %v111_v48 }
  0x65   :  { %225 = vmatprep.mubr.bf16.mxu0 %v2942_v0  ;;  %298 = vmatprep.mubr.bf16.mxu1 %v2942_v0  ;;  %v2337_v28 = vld [vmem:[#allocation11 + $0xa4] ss:$16 sps:$4 sm:$0xff]   ;;  %v2345_v30 = vld [vmem:[#allocation11 + $0xa0] ss:$16 sps:$4 sm:$0xff]   ;;  %v2347_v31 = vld [vmem:[#allocation11 + $0xa8] ss:$16 sps:$4 sm:$0xff]  }
  0x66   :  { %v2352_v32 = vld [vmem:[#allocation11 + $0xc4] ss:$16 sps:$4 sm:$0xff]   ;;  %v2356_v33 = vld [vmem:[#allocation11 + $0xcc] ss:$16 sps:$4 sm:$0xff]   ;;  %v2359_v35 = vld [vmem:[#allocation11 + $0xc0] ss:$16 sps:$4 sm:$0xff]  }
  0x67   :  { %565 = vmatpush1.bf16.msra.mxu0 %v2289_v12  ;;  %606 = vmatpush1.bf16.msra.mxu1 %v2291_v13  ;;  %v1786_v34 = vld [vmem:[#allocation8 + $0x18] sm:$0xff]   ;;  %v2367_v38 = vld [vmem:[#allocation11 + $0xe4] ss:$16 sps:$4 sm:$0xff]   ;;  %v2376_v40 = vld [vmem:[#allocation11 + $0xe0] ss:$16 sps:$4 sm:$0xff]   ;;  %v124_v50 = vsub.s32 3, %v111_v48 }
  0x68   :  { %566 = vmatprep.subr.bf16.mxu0 %v2297_v15  ;;  %607 = vmatprep.subr.bf16.mxu1 %v2300_v16  ;;  %v2361_v36 = vld [vmem:[#allocation5] sm:$0xff]  ;;  %v112_v51 = vsub.s32 0, %v111_v48  ;;  %v108_v52 = vld [vmem:[#allocation13] sm:$0xf]  ;;  %v116_v53 = vsub.s32 1, %v111_v48  ;;  %s2156_s4 = smov [#allocation15]  }
  0x69   :  { %v2365_v37 = vld [vmem:[#allocation11 + $0xc8] ss:$16 sps:$4 sm:$0xff]   ;;  %vm673_vm1 = vcmp.gt.s32.totalorder %v2361_v36, 0  ;;  %v2371_v39 = vld [vmem:[#allocation11 + $0xec] ss:$16 sps:$4 sm:$0xff]   ;;  %vm802_vm2 = vcmp.gt.s32.totalorder %v2361_v36, 1  ;;  %v2430_v54 = vrot.slane %v108_v52, %v120_v49  ;;  %v2436_v57 = vrot.slane %v108_v52, %v124_v50 }
  0x6a   :  { %1656 = vmatmul.mubr.msk.bf16.gmra.mrb[4].mxu0 %vm170_vm0, %v1760_v14  ;;  %1660 = vmatmul.mubr.msk.bf16.gmra.mrb[4].mxu1 %vm170_vm0, %v1760_v14  ;;  %v674_v41 = vsel %vm673_vm1, 1, %v2942_v0  ;;  %v2382_v42 = vld [vmem:[#allocation11 + $0xe8] ss:$16 sps:$4 sm:$0xff]   ;;  %v803_v43 = vsel %vm802_vm2, 1, %v2942_v0  ;;  %vm1192_vm3 = vcmp.gt.s32.totalorder %v2361_v36, 4  ;;  %vm1452_vm4 = vcmp.gt.s32.totalorder %v2361_v36, 6 }
  0x6b   :  { %567 = vmatpush1.bf16.msra.mxu0 %v2303_v17  ;;  %235 = vmatprep.mubr.bf16.mxu0 %v2942_v0  ;;  %v1193_v45 = vsel %vm1192_vm3, 1, %v2942_v0  ;;  %v1453_v46 = vsel %vm1452_vm4, 1, %v2942_v0  ;;  %v113_v58 = vrot.slane %v108_v52, %v112_v51  ;;  %v117_v61 = vrot.slane %v108_v52, %v116_v53  ;;  %s1619_s27 = sshll.u32 %s2156_s4, 4  ;;  %s2157_s19 = smov [#allocation17]   ;;  %s1620_s27 = int_to_ptr.vmem [resolvable:$true] %s1619_s27 }
  0x6c   :  { %608 = vmatpush1.bf16.msra.mxu1 %v2305_v18  ;;  %568 = vmatprep.subr.bf16.mxu0 %v2309_v19  ;;  %vm932_vm7 = vcmp.gt.s32.totalorder %v2361_v36, 2  ;;  %vm1062_vm8 = vcmp.gt.s32.totalorder %v2361_v36, 3  ;;  %vm1322_vm9 = vcmp.gt.s32.totalorder %v2361_v36, 5  ;;  %vm1582_vm10 = vcmp.gt.s32.totalorder %v2361_v36, 7  ;;  %s1629_s20 = sshll.u32 %s2157_s19, 4  ;;  %s2158_s21 = smov [#allocation14]   ;;  %s2881_s20 = int_to_ptr.vmem [resolvable:$true] %s1629_s20 }
  0x6d   :  { %609 = vmatprep.subr.bf16.mxu1 %v2312_v20  ;;  %308 = vmatprep.mubr.bf16.mxu1 %v2942_v0  ;;  %s1606_s22 = sshll.u32 %s2158_s21, 4  ;;  %s2069_s23 = scalar_lea.vmem %s1620_s27, 128  ;;  %s2883_s22 = int_to_ptr.vmem [resolvable:$true] %s1606_s22 }
  0x6e   :  { %676 = vperm.xlu0 %1739, %v674_v41   ;;  %p2070_p12 = scmp.ne.s32.totalorder %s1620_s27, %s2069_s23  ;;  %p2074_p13 = scmp.lt.s32.totalorder %s1620_s27, %s1620_s27 }
  0x6f   :  { %569 = vmatpush1.bf16.msra.mxu0 %v2316_v21  ;;  %p2075_p0 = scmp.lt.s32.totalorder %s2069_s23, %s2069_s23 }
  0x70   :  { %610 = vmatpush1.bf16.msra.mxu1 %v2319_v22  ;;  %570 = vmatprep.subr.bf16.mxu0 %v2324_v23 }
  0x71   :  { %611 = vmatprep.subr.bf16.mxu1 %v2328_v24  ;;  %p2076_p1 = por %p2075_p0, %p2074_p13 }
  0x72   :  { %1657 = vmatmul.mubr.msk.bf16.gmra.mrb[8].mxu0 %vm170_vm0, %v1773_v25  ;;  %1661 = vmatmul.mubr.msk.bf16.gmra.mrb[8].mxu1 %vm170_vm0, %v1773_v25 }
  0x73   :  { %571 = vmatpush1.bf16.msra.mxu0 %v2331_v26  ;;  %245 = vmatprep.mubr.bf16.mxu0 %v2942_v0  ;;  %p2077_p2 = pnand %p2076_p1, %p2070_p12 }
  0x74   :  { %612 = vmatpush1.bf16.msra.mxu1 %v2335_v27  ;;  %572 = vmatprep.subr.bf16.mxu0 %v2337_v28 }
  0x75   :  { %613 = vmatprep.subr.bf16.mxu1 %v2340_v29  ;;  %318 = vmatprep.mubr.bf16.mxu1 %v2942_v0 }
  0x76   :  { %805 = vperm.xlu0 %1739, %v803_v43  }
  0x77   :  { %573 = vmatpush1.bf16.msra.mxu0 %v2345_v30 }
  0x78   :  { %614 = vmatpush1.bf16.msra.mxu1 %v2347_v31  ;;  %574 = vmatprep.subr.bf16.mxu0 %v2352_v32 }
  0x79   :  { %615 = vmatprep.subr.bf16.mxu1 %v2356_v33 }
  0x7a   :  { %1658 = vmatmul.mubr.msk.bf16.gmra.mrb[12].mxu0 %vm170_vm0, %v1786_v34  ;;  %1662 = vmatmul.mubr.msk.bf16.gmra.mrb[12].mxu1 %vm170_vm0, %v1786_v34 }
  0x7b   :  { %575 = vmatpush1.bf16.msra.mxu0 %v2359_v35  ;;  %594 = vmatprep.mubr.bf16.mxu0 %v2942_v0 }
  0x7c   :  { %616 = vmatpush1.bf16.msra.mxu1 %v2365_v37  ;;  %576 = vmatprep.subr.bf16.mxu0 %v2367_v38 }
  0x7d   :  { %617 = vmatprep.subr.bf16.mxu1 %v2371_v39  ;;  %635 = vmatprep.mubr.bf16.mxu1 %v2942_v0 }
  0x7e   :  { %1195 = vperm.xlu0 %1739, %v1193_v45  }
  0x7f   :  { %577 = vmatpush1.bf16.msra.mxu0 %v2376_v40 }
  0x80   :  { %618 = vmatpush1.bf16.msra.mxu1 %v2382_v42  ;;  %690 = vmatprep.subr.bf16.mxu0 %v2272_v6 }
  0x81   :  { %731 = vmatprep.subr.bf16.mxu1 %v2274_v7 }
  0x82   :  { %595 = vmatmul.mubr.bf16.vlgmr.msra.gmra.mrb[16].mxu0 %v2155_v44  ;;  %1455 = vperm.xlu0 %1739, %v1453_v46  }
  0x83   :  { %636 = vmatmul.mubr.bf16.vlgmr.msra.gmra.mrb[16].mxu1 %v2155_v44  ;;  %691 = vmatpush1.bf16.msra.mxu0 %v2276_v8 }
  0x84   :  { %732 = vmatpush1.bf16.msra.mxu1 %v2279_v9  ;;  %692 = vmatprep.subr.bf16.mxu0 %v2283_v10 }
  0x85   :  { %733 = vmatprep.subr.bf16.mxu1 %v2287_v11  ;;  %722 = vmatprep.mubr.bf16.mxu0 %v2942_v0 }
  0x86   :  { %763 = vmatprep.mubr.bf16.mxu1 %v2942_v0 }
  0x87   :  { %693 = vmatpush1.bf16.msra.mxu0 %v2289_v12 }
  0x88   :  { %734 = vmatpush1.bf16.msra.mxu1 %v2291_v13  ;;  %694 = vmatprep.subr.bf16.mxu0 %v2297_v15 }
  0x89   :  { %735 = vmatprep.subr.bf16.mxu1 %v2300_v16 }
  0x8b   :  { %695 = vmatpush1.bf16.msra.mxu0 %v2303_v17 }
  0x8c   :  { %736 = vmatpush1.bf16.msra.mxu1 %v2305_v18  ;;  %696 = vmatprep.subr.bf16.mxu0 %v2309_v19 }
  0x8d   :  { %737 = vmatprep.subr.bf16.mxu1 %v2312_v20 }
  0x8f   :  { %697 = vmatpush1.bf16.msra.mxu0 %v2316_v21 }
  0x90   :  { %738 = vmatpush1.bf16.msra.mxu1 %v2319_v22  ;;  %698 = vmatprep.subr.bf16.mxu0 %v2324_v23 }
  0x91   :  { %739 = vmatprep.subr.bf16.mxu1 %v2328_v24 }
  0x93   :  { %699 = vmatpush1.bf16.msra.mxu0 %v2331_v26 }
  0x94   :  { %740 = vmatpush1.bf16.msra.mxu1 %v2335_v27  ;;  %700 = vmatprep.subr.bf16.mxu0 %v2337_v28 }
  0x95   :  { %741 = vmatprep.subr.bf16.mxu1 %v2340_v29 }
  0x97   :  { %701 = vmatpush1.bf16.msra.mxu0 %v2345_v30 }
  0x98   :  { %742 = vmatpush1.bf16.msra.mxu1 %v2347_v31  ;;  %702 = vmatprep.subr.bf16.mxu0 %v2352_v32 }
  0x99   :  { %743 = vmatprep.subr.bf16.mxu1 %v2356_v33 }
  0x9b   :  { %703 = vmatpush1.bf16.msra.mxu0 %v2359_v35 }
  0x9c   :  { %744 = vmatpush1.bf16.msra.mxu1 %v2365_v37  ;;  %704 = vmatprep.subr.bf16.mxu0 %v2367_v38 }
  0x9d   :  { %745 = vmatprep.subr.bf16.mxu1 %v2371_v39 }
  0x9f   :  { %705 = vmatpush1.bf16.msra.mxu0 %v2376_v40 }
  0xa0   :  { %746 = vmatpush1.bf16.msra.mxu1 %v2382_v42  ;;  %820 = vmatprep.subr.bf16.mxu0 %v2272_v6 }
  0xa1   :  { %861 = vmatprep.subr.bf16.mxu1 %v2274_v7 }
 0x135   :  { %v2432_v55 = vpop.f32.mrb[0].mxu0  ;;  %v2434_v56 = vpop.f32.mrb[0].mxu1 }
 0x136   :  { %v219_v59 = vpop.f32.mrb[1].mxu0  ;;  %v292_v60 = vpop.f32.mrb[1].mxu1 }
 0x137   :  { %v221_v62 = vpop.f32.mrb[2].mxu0  ;;  %v294_v63 = vpop.f32.mrb[2].mxu1 }
 0x138   :  { %v2438_v1 = vadd.f32 %v221_v62, %v113_v58  ;;  %v223_v2 = vpop.f32.mrb[3].mxu0  ;;  %v2441_v3 = vadd.f32 %v294_v63, %v2430_v54  ;;  %v296_v4 = vpop.f32.mrb[3].mxu1 }
 0x139   :  { %v2443_v5 = vadd.f32 %v223_v2, %v117_v61  ;;  %v2446_v14 = vadd.f32 %v296_v4, %v2436_v57 }
 0x13d   :  { %v227_v25 = vpop.f32.mrb[4].mxu0  ;;  %v300_v34 = vpop.f32.mrb[4].mxu1 }
 0x13e   :  { %v2448_v41 = vadd.f32 %v227_v25, %v113_v58  ;;  %v229_v43 = vpop.f32.mrb[5].mxu0  ;;  %v2451_v44 = vadd.f32 %v300_v34, %v2430_v54  ;;  %v302_v45 = vpop.f32.mrb[5].mxu1 }
 0x13f   :  { %v2453_v46 = vadd.f32 %v229_v43, %v117_v61  ;;  %v231_v47 = vpop.f32.mrb[6].mxu0  ;;  %v2456_v48 = vadd.f32 %v302_v45, %v2436_v57  ;;  %v304_v49 = vpop.f32.mrb[6].mxu1 }
 0x140   :  { %v2458_v50 = vadd.f32 %v231_v47, %v113_v58  ;;  %v233_v51 = vpop.f32.mrb[7].mxu0  ;;  %v2461_v52 = vadd.f32 %v304_v49, %v2430_v54  ;;  %v306_v53 = vpop.f32.mrb[7].mxu1 }
 0x141   :  { %2944 = vst [vmem:[#allocation23_spill] sm:$0xff] %v2453_v46  ;;  %2945 = vst [vmem:[#allocation24_spill] sm:$0xff] %v2456_v48  ;;  %v2463_v62 = vadd.f32 %v233_v51, %v117_v61  ;;  %v2466_v63 = vadd.f32 %v306_v53, %v2436_v57 }
 0x142   :  { %2946 = vst [vmem:[#allocation25_spill] sm:$0xff] %v2458_v50  ;;  %2947 = vst [vmem:[#allocation26_spill] sm:$0xff] %v2461_v52 }
 0x143   :  { %2948 = vst [vmem:[#allocation27_spill] sm:$0xff] %v2463_v62  ;;  %2949 = vst [vmem:[#allocation28_spill] sm:$0xff] %v2466_v63 }
 0x145   :  { %v237_v2 = vpop.f32.mrb[8].mxu0  ;;  %v310_v4 = vpop.f32.mrb[8].mxu1 }
 0x146   :  { %v2468_v25 = vadd.f32 %v237_v2, %v113_v58  ;;  %v239_v34 = vpop.f32.mrb[9].mxu0  ;;  %v2471_v43 = vadd.f32 %v310_v4, %v2430_v54  ;;  %v312_v45 = vpop.f32.mrb[9].mxu1 }
 0x147   :  { %v2473_v47 = vadd.f32 %v239_v34, %v117_v61  ;;  %v241_v0 = vpop.f32.mrb[10].mxu0  ;;  %v2476_v49 = vadd.f32 %v312_v45, %v2436_v57  ;;  %v314_v51 = vpop.f32.mrb[10].mxu1 }
 0x148   :  { %2950 = vst [vmem:[#allocation29_spill] sm:$0xff] %v2468_v25  ;;  %2951 = vst [vmem:[#allocation30_spill] sm:$0xff] %v2471_v43  ;;  %v2478_v62 = vadd.f32 %v241_v0, %v113_v58  ;;  %v243_v53 = vpop.f32.mrb[11].mxu0  ;;  %v2481_v63 = vadd.f32 %v314_v51, %v2430_v54  ;;  %v316_v2 = vpop.f32.mrb[11].mxu1 }
 0x149   :  { %2952 = vst [vmem:[#allocation31_spill] sm:$0xff] %v2473_v47  ;;  %2953 = vst [vmem:[#allocation32_spill] sm:$0xff] %v2476_v49  ;;  %v2483_v25 = vadd.f32 %v243_v53, %v117_v61  ;;  %v2486_v4 = vadd.f32 %v316_v2, %v2436_v57 }
 0x14a   :  { %2954 = vst [vmem:[#allocation33_spill] sm:$0xff] %v2478_v62  ;;  %2955 = vst [vmem:[#allocation34_spill] sm:$0xff] %v2481_v63 }
 0x14b   :  { %2956 = vst [vmem:[#allocation35_spill] sm:$0xff] %v2483_v25  ;;  %2957 = vst [vmem:[#allocation36_spill] sm:$0xff] %v2486_v4 }
 0x14d   :  { %v247_v43 = vpop.f32.mrb[12].mxu0  ;;  %v320_v34 = vpop.f32.mrb[12].mxu1 }
 0x14e   :  { %v2488_v47 = vadd.f32 %v247_v43, %v113_v58  ;;  %v249_v52 = vpop.f32.mrb[13].mxu0  ;;  %v2491_v45 = vadd.f32 %v320_v34, %v2430_v54  ;;  %v322_v0 = vpop.f32.mrb[13].mxu1 }
 0x14f   :  { %v2493_v62 = vadd.f32 %v249_v52, %v117_v61  ;;  %v251_v49 = vpop.f32.mrb[14].mxu0  ;;  %v2496_v51 = vadd.f32 %v322_v0, %v2436_v57  ;;  %v324_v53 = vpop.f32.mrb[14].mxu1  ;;  %v218_v52 = vadd.f32 %v2432_v55, %v113_v58  ;;  %v291_v0 = vadd.f32 %v2434_v56, %v2430_v54 }
 0x150   :  { %2958 = vst [vmem:[#allocation37_spill] sm:$0xff] %v2488_v47  ;;  %2959 = vst [vmem:[#allocation38_spill] sm:$0xff] %v2491_v45  ;;  %v2498_v25 = vadd.f32 %v251_v49, %v113_v58  ;;  %v253_v2 = vpop.f32.mrb[15].mxu0  ;;  %v2501_v4 = vadd.f32 %v324_v53, %v2430_v54  ;;  %v326_v43 = vpop.f32.mrb[15].mxu1  ;;  %v293_v49 = vadd.f32 %v292_v60, %v2436_v57 }
 0x151   :  { %2960 = vst [vmem:[#allocation39_spill] sm:$0xff] %v2493_v62  ;;  %2961 = vst [vmem:[#allocation40_spill] sm:$0xff] %v2496_v51  ;;  %v2503_v47 = vadd.f32 %v253_v2, %v117_v61  ;;  %v2506_v34 = vadd.f32 %v326_v43, %v2436_v57  ;;  %v220_v62 = vadd.f32 %v219_v59, %v117_v61 }
 0x152   :  { %2962 = vst [vmem:[#allocation41_spill] sm:$0xff] %v2498_v25  ;;  %2963 = vst [vmem:[#allocation42_spill] sm:$0xff] %v2501_v4 }
 0x153   :  { %2964 = vst [vmem:[#allocation43_spill] sm:$0xff] %v2503_v47  ;;  %2965 = vst [vmem:[#allocation44_spill] sm:$0xff] %v2506_v34 }
 0x155   :  { %v596_v51 = vpop.f32.mrb[16].mxu0 }
 0x156   :  { %v644_v25 = vadd.f32 %v596_v51, %v218_v52  ;;  %v637_v45 = vpop.f32.mrb[16].mxu1  ;;  %v598_v63 = vpop.f32.mrb[17].mxu0 }
 0x157   :  { %v646_v53 = vadd.f32 %v637_v45, %v291_v0  ;;  %v645_v4 = vadd.f32 %v598_v63, %v220_v62  ;;  %v639_v50 = vpop.f32.mrb[17].mxu1  ;;  %v600_v2 = vpop.f32.mrb[18].mxu0 }
 0x158   :  { %v1695_v47 = vmul.f32 -1.442695, %v644_v25  ;;  %v647_v48 = vadd.f32 %v639_v50, %v293_v49  ;;  %v601_v43 = vpop.f32.mrb[19].mxu0  ;;  %v641_v34 = vpop.f32.mrb[18].mxu1  ;;  %v2966_v49 = vmov 0  }
 0x159   :  { %v1696_v46 = vmul.f32 -1.442695, %v645_v4  ;;  %v642_v55 = vpop.f32.mrb[19].mxu1  ;;  %v1063_v2 = vsel %vm1062_vm8, 1, %v2966_v49  ;;  %v1323_v43 = vsel %vm1322_vm9, 1, %v2966_v49 }
 0x15a   :  { %1799 = vpow2.f32 %v1695_v47  ;;  %v1697_v58 = vmul.f32 -1.442695, %v647_v48  ;;  %v1583_v55 = vsel %vm1582_vm10, 1, %v2966_v49 }
 0x15b   :  { %1801 = vpow2.f32 %v1696_v46  ;;  %v2515_v46 = vpop.permute.xlu0 %676 }
 0x15c   :  { %1803 = vpow2.f32 %v1697_v58  ;;  %vm678_vm5 = vcmp.eq.s32.totalorder %v2515_v46, 1 }
 0x15d   :  { %1805 = vtanh.f32 %v646_v53  ;;  %vm1719_vm6 = vmpackc.low %vm678_vm5, %vm678_vm5  ;;  %v933_v53 = vsel %vm932_vm7, 1, %v2966_v49 }
 0x15e   :  { %935 = vperm.xlu1 %1740, %v933_v53  }
 0x162   :  { %1065 = vperm.xlu1 %1740, %v1063_v2  }
 0x164   :  { %v1800_v54 = vpop.eup %1799 }
 0x165   :  { %v1802_v56 = vpop.eup %1801  ;;  %v651_v59 = vadd.f32 1.0, %v1800_v54 }
 0x166   :  { %v657_v57 = vadd.f32 1.0, %v1802_v56  ;;  %v1804_v60 = vpop.eup %1803  ;;  %1325 = vperm.xlu1 %1740, %v1323_v43  }
 0x167   :  { %1807 = vrcp.f32 %v651_v59  ;;  %v1806_v61 = vpop.eup %1805  ;;  %v664_v50 = vadd.f32 1.0, %v1804_v60 }
 0x168   :  { %1809 = vrcp.f32 %v657_v57 }
 0x169   :  { %1811 = vrcp.f32 %v664_v50 }
 0x16a   :  { %1585 = vperm.xlu1 %1740, %v1583_v55  }
 0x171   :  { %v1808_v62 = vpop.eup %1807 }
 0x172   :  { %v1810_v63 = vpop.eup %1809  ;;  %v668_v25 = vmul.f32 %v1808_v62, %v1806_v61 }
 0x173   :  { %v667_v45 = vmul.f32 0.0, %v1810_v63  ;;  %v1812_v48 = vpop.eup %1811 }
 0x175   :  { %v2512_v4 = vadd.f32 %v668_v25, %v667_v45 }
 0x177   :  { %1813 = vtanh.f32 %v2512_v4  ;;  %v683_v2 = vsel %vm678_vm5, %v2512_v4, 0.0 }
 0x181   :  { %v1814_v47 = vpop.eup %1813 }
 0x182   :  { %v671_v51 = vmul.f32 %v1814_v47, %v1812_v48 }
 0x184   :  { %v2523_v34 = vsel %vm678_vm5, %v671_v51, 0.0  ;;  %v1720_v52 = vpack.c.bf16 %v671_v51, %v671_v51 }
 0x185   :  { %v680_v0 = vpack.c.bf16 %v2523_v34, %v2523_v34 }
 0x186   :  { %1721 = vmatmul.mubr.msk.bf16.vlgmr.msra.gmra.mrb[20].mxu0 %vm1719_vm6, %v1720_v52  ;;  %1724 = vmatmul.mubr.msk.bf16.vlgmr.msra.gmra.mrb[20].mxu1 %vm1719_vm6, %v1720_v52 }
 0x187   :  { %681 = vst [vmem:[#allocation14] sm:$0xf] %v680_v0  ;;  %821 = vmatpush1.bf16.msra.mxu0 %v2276_v8  ;;  %862 = vmatpush1.bf16.msra.mxu1 %v2279_v9 }
 0x188   :  { %822 = vmatprep.subr.bf16.mxu0 %v2283_v10  ;;  %863 = vmatprep.subr.bf16.mxu1 %v2287_v11 }
 0x189   :  { %852 = vmatprep.mubr.bf16.mxu0 %v2966_v49  ;;  %893 = vmatprep.mubr.bf16.mxu1 %v2966_v49 }
 0x18b   :  { %823 = vmatpush1.bf16.msra.mxu0 %v2289_v12  ;;  %864 = vmatpush1.bf16.msra.mxu1 %v2291_v13 }
 0x18c   :  { %824 = vmatprep.subr.bf16.mxu0 %v2297_v15  ;;  %865 = vmatprep.subr.bf16.mxu1 %v2300_v16 }
 0x18f   :  { %825 = vmatpush1.bf16.msra.mxu0 %v2303_v17  ;;  %866 = vmatpush1.bf16.msra.mxu1 %v2305_v18 }
 0x190   :  { %826 = vmatprep.subr.bf16.mxu0 %v2309_v19  ;;  %867 = vmatprep.subr.bf16.mxu1 %v2312_v20 }
 0x193   :  { %827 = vmatpush1.bf16.msra.mxu0 %v2316_v21  ;;  %868 = vmatpush1.bf16.msra.mxu1 %v2319_v22 }
 0x194   :  { %828 = vmatprep.subr.bf16.mxu0 %v2324_v23  ;;  %869 = vmatprep.subr.bf16.mxu1 %v2328_v24 }
 0x197   :  { %829 = vmatpush1.bf16.msra.mxu0 %v2331_v26  ;;  %870 = vmatpush1.bf16.msra.mxu1 %v2335_v27 }
 0x198   :  { %830 = vmatprep.subr.bf16.mxu0 %v2337_v28  ;;  %871 = vmatprep.subr.bf16.mxu1 %v2340_v29 }
 0x19b   :  { %831 = vmatpush1.bf16.msra.mxu0 %v2345_v30  ;;  %872 = vmatpush1.bf16.msra.mxu1 %v2347_v31 }
 0x19c   :  { %832 = vmatprep.subr.bf16.mxu0 %v2352_v32  ;;  %873 = vmatprep.subr.bf16.mxu1 %v2356_v33 }
 0x19f   :  { %833 = vmatpush1.bf16.msra.mxu0 %v2359_v35  ;;  %874 = vmatpush1.bf16.msra.mxu1 %v2365_v37 }
 0x1a0   :  { %834 = vmatprep.subr.bf16.mxu0 %v2367_v38  ;;  %875 = vmatprep.subr.bf16.mxu1 %v2371_v39 }
 0x1a3   :  { %835 = vmatpush1.bf16.msra.mxu0 %v2376_v40  ;;  %876 = vmatpush1.bf16.msra.mxu1 %v2382_v42 }
 0x1a4   :  { %950 = vmatprep.subr.bf16.mxu0 %v2272_v6  ;;  %991 = vmatprep.subr.bf16.mxu1 %v2274_v7 }
 0x259   :  { %v724_v58 = vpop.f32.mrb[20].mxu0  ;;  %v765_v54 = vpop.f32.mrb[20].mxu1 }
 0x25a   :  { %v772_v56 = vadd.f32 %v724_v58, %v2438_v1  ;;  %v774_v59 = vadd.f32 %v765_v54, %v2441_v3  ;;  %v726_v57 = vpop.f32.mrb[21].mxu0  ;;  %v767_v60 = vpop.f32.mrb[21].mxu1 }
 0x25b   :  { %v773_v61 = vadd.f32 %v726_v57, %v2443_v5  ;;  %v775_v62 = vadd.f32 %v767_v60, %v2446_v14  ;;  %v728_v63 = vpop.f32.mrb[22].mxu0  ;;  %v769_v50 = vpop.f32.mrb[22].mxu1 }
 0x25c   :  { %v1698_v25 = vmul.f32 -1.442695, %v772_v56  ;;  %v729_v36 = vpop.f32.mrb[23].mxu0  ;;  %v770_v45 = vpop.f32.mrb[23].mxu1 }
 0x25d   :  { %v1699_v48 = vmul.f32 -1.442695, %v773_v61  ;;  %v1700_v47 = vmul.f32 -1.442695, %v775_v62  ;;  %v806_v54 = vpop.permute.xlu0 %805 }
 0x25e   :  { %1815 = vpow2.f32 %v1698_v25  ;;  %vm807_vm11 = vcmp.eq.s32.totalorder %v806_v54, 1 }
 0x25f   :  { %1817 = vpow2.f32 %v1699_v48 }
 0x260   :  { %1819 = vpow2.f32 %v1700_v47  ;;  %v2967_v47 = vld [vmem:[#allocation23_spill] sm:$0xff] }
 0x261   :  { %1821 = vtanh.f32 %v774_v59 }
 0x268   :  { %v1816_v51 = vpop.eup %1815 }
 0x269   :  { %v1818_v52 = vpop.eup %1817  ;;  %v779_v1 = vadd.f32 1.0, %v1816_v51 }
 0x26a   :  { %v785_v3 = vadd.f32 1.0, %v1818_v52  ;;  %v1820_v5 = vpop.eup %1819  ;;  %v2968_v52 = vld [vmem:[#allocation24_spill] sm:$0xff] }
 0x26b   :  { %1823 = vrcp.f32 %v779_v1  ;;  %v1822_v0 = vpop.eup %1821  ;;  %v792_v55 = vadd.f32 1.0, %v1820_v5 }
 0x26c   :  { %1825 = vrcp.f32 %v785_v3 }
 0x26d   :  { %1827 = vrcp.f32 %v792_v55 }
 0x275   :  { %v1824_v14 = vpop.eup %1823 }
 0x276   :  { %v1826_v53 = vpop.eup %1825  ;;  %v796_v43 = vmul.f32 %v1824_v14, %v1822_v0 }
 0x277   :  { %v795_v58 = vmul.f32 %v1826_v53, %v683_v2  ;;  %v1828_v57 = vpop.eup %1827 }
 0x279   :  { %v797_v56 = vadd.f32 %v796_v43, %v795_v58 }
 0x27b   :  { %1829 = vtanh.f32 %v797_v56  ;;  %v2576_v59 = vsel %vm807_vm11, %v797_v56, %v683_v2 }
 0x285   :  { %v1830_v60 = vpop.eup %1829 }
 0x286   :  { %v799_v61 = vmul.f32 %v1830_v60, %v1828_v57  ;;  %v936_v60 = vpop.permute.xlu1 %935 }
 0x287   :  { %vm937_vm12 = vcmp.eq.s32.totalorder %v936_v60, 1 }
 0x288   :  { %v808_v62 = vsel %vm807_vm11, %v799_v61, 0.0  ;;  %v2579_v63 = vsel %vm807_vm11, %v799_v61, %v2523_v34 }
 0x289   :  { %v809_v50 = vpack.c.bf16 %v808_v62, %v808_v62  ;;  %v819_v4 = vpack.c.bf16 %v2579_v63, %v2579_v63 }
 0x28b   :  { %811 = vst [vmem:[#allocation14 + $0x4] sm:$0xf] %v809_v50  ;;  %853 = vmatmul.mubr.bf16.vlgmr.msra.gmra.mrb[24].mxu0 %v819_v4  ;;  %894 = vmatmul.mubr.bf16.vlgmr.msra.gmra.mrb[24].mxu1 %v819_v4 }
 0x28c   :  { %951 = vmatpush1.bf16.msra.mxu0 %v2276_v8  ;;  %992 = vmatpush1.bf16.msra.mxu1 %v2279_v9 }
 0x28d   :  { %952 = vmatprep.subr.bf16.mxu0 %v2283_v10  ;;  %993 = vmatprep.subr.bf16.mxu1 %v2287_v11 }
 0x28e   :  { %982 = vmatprep.mubr.bf16.mxu0 %v2966_v49  ;;  %1023 = vmatprep.mubr.bf16.mxu1 %v2966_v49 }
 0x290   :  { %953 = vmatpush1.bf16.msra.mxu0 %v2289_v12  ;;  %994 = vmatpush1.bf16.msra.mxu1 %v2291_v13 }
 0x291   :  { %954 = vmatprep.subr.bf16.mxu0 %v2297_v15  ;;  %995 = vmatprep.subr.bf16.mxu1 %v2300_v16 }
 0x294   :  { %955 = vmatpush1.bf16.msra.mxu0 %v2303_v17  ;;  %996 = vmatpush1.bf16.msra.mxu1 %v2305_v18 }
 0x295   :  { %956 = vmatprep.subr.bf16.mxu0 %v2309_v19  ;;  %997 = vmatprep.subr.bf16.mxu1 %v2312_v20 }
 0x298   :  { %957 = vmatpush1.bf16.msra.mxu0 %v2316_v21  ;;  %998 = vmatpush1.bf16.msra.mxu1 %v2319_v22 }
 0x299   :  { %958 = vmatprep.subr.bf16.mxu0 %v2324_v23  ;;  %999 = vmatprep.subr.bf16.mxu1 %v2328_v24 }
 0x29c   :  { %959 = vmatpush1.bf16.msra.mxu0 %v2331_v26  ;;  %1000 = vmatpush1.bf16.msra.mxu1 %v2335_v27 }
 0x29d   :  { %960 = vmatprep.subr.bf16.mxu0 %v2337_v28  ;;  %1001 = vmatprep.subr.bf16.mxu1 %v2340_v29 }
 0x2a0   :  { %961 = vmatpush1.bf16.msra.mxu0 %v2345_v30  ;;  %1002 = vmatpush1.bf16.msra.mxu1 %v2347_v31 }
 0x2a1   :  { %962 = vmatprep.subr.bf16.mxu0 %v2352_v32  ;;  %1003 = vmatprep.subr.bf16.mxu1 %v2356_v33 }
 0x2a4   :  { %963 = vmatpush1.bf16.msra.mxu0 %v2359_v35  ;;  %1004 = vmatpush1.bf16.msra.mxu1 %v2365_v37 }
 0x2a5   :  { %964 = vmatprep.subr.bf16.mxu0 %v2367_v38  ;;  %1005 = vmatprep.subr.bf16.mxu1 %v2371_v39 }
 0x2a8   :  { %965 = vmatpush1.bf16.msra.mxu0 %v2376_v40  ;;  %1006 = vmatpush1.bf16.msra.mxu1 %v2382_v42 }
 0x2a9   :  { %1080 = vmatprep.subr.bf16.mxu0 %v2272_v6  ;;  %1121 = vmatprep.subr.bf16.mxu1 %v2274_v7 }
 0x35e   :  { %v854_v46 = vpop.f32.mrb[24].mxu0  ;;  %v895_v34 = vpop.f32.mrb[24].mxu1 }
 0x35f   :  { %v902_v25 = vadd.f32 %v854_v46, %v2448_v41  ;;  %v904_v36 = vadd.f32 %v895_v34, %v2451_v44  ;;  %v856_v45 = vpop.f32.mrb[25].mxu0  ;;  %v897_v48 = vpop.f32.mrb[25].mxu1 }
 0x360   :  { %v903_v51 = vadd.f32 %v856_v45, %v2967_v47  ;;  %v905_v1 = vadd.f32 %v897_v48, %v2968_v52  ;;  %v858_v3 = vpop.f32.mrb[26].mxu0  ;;  %v899_v5 = vpop.f32.mrb[26].mxu1 }
 0x361   :  { %v1701_v0 = vmul.f32 -1.442695, %v902_v25  ;;  %v859_v14 = vpop.f32.mrb[27].mxu0  ;;  %v900_v53 = vpop.f32.mrb[27].mxu1 }
 0x362   :  { %v1702_v2 = vmul.f32 -1.442695, %v903_v51  ;;  %v1703_v43 = vmul.f32 -1.442695, %v905_v1 }
 0x363   :  { %1831 = vpow2.f32 %v1701_v0 }
 0x364   :  { %1833 = vpow2.f32 %v1702_v2 }
 0x365   :  { %1835 = vpow2.f32 %v1703_v43 }
 0x366   :  { %1837 = vtanh.f32 %v904_v36 }
 0x36d   :  { %v1832_v55 = vpop.eup %1831 }
 0x36e   :  { %v1834_v58 = vpop.eup %1833  ;;  %v909_v41 = vadd.f32 1.0, %v1832_v55 }
 0x36f   :  { %v915_v44 = vadd.f32 1.0, %v1834_v58  ;;  %v1836_v54 = vpop.eup %1835 }
 0x370   :  { %1839 = vrcp.f32 %v909_v41  ;;  %v1838_v56 = vpop.eup %1837  ;;  %v922_v62 = vadd.f32 1.0, %v1836_v54  ;;  %v1066_v54 = vpop.permute.xlu1 %1065 }
 0x371   :  { %1841 = vrcp.f32 %v915_v44  ;;  %vm1067_vm13 = vcmp.eq.s32.totalorder %v1066_v54, 1 }
 0x372   :  { %1843 = vrcp.f32 %v922_v62 }
 0x37a   :  { %v1840_v57 = vpop.eup %1839 }
 0x37b   :  { %v1842_v61 = vpop.eup %1841  ;;  %v926_v50 = vmul.f32 %v1840_v57, %v1838_v56 }
 0x37c   :  { %v925_v4 = vmul.f32 %v1842_v61, %v2576_v59  ;;  %v1844_v25 = vpop.eup %1843 }
 0x37e   :  { %v927_v46 = vadd.f32 %v926_v50, %v925_v4 }
 0x380   :  { %1845 = vtanh.f32 %v927_v46  ;;  %v2623_v34 = vsel %vm937_vm12, %v927_v46, %v2576_v59 }
 0x38a   :  { %v1846_v36 = vpop.eup %1845 }
 0x38b   :  { %v929_v45 = vmul.f32 %v1846_v36, %v1844_v25  ;;  %v2677_v36 = vld [vmem:[#allocation11] ss:$16 sps:$4 sm:$0xff]  }
 0x38d   :  { %v938_v48 = vsel %vm937_vm12, %v929_v45, 0.0  ;;  %v2626_v47 = vsel %vm937_vm12, %v929_v45, %v2579_v63  ;;  %v2683_v45 = vld [vmem:[#allocation11 + $0x24] ss:$16 sps:$4 sm:$0xff]  }
 0x38e   :  { %v939_v51 = vpack.c.bf16 %v938_v48, %v938_v48  ;;  %v949_v52 = vpack.c.bf16 %v2626_v47, %v2626_v47  ;;  %v2686_v48 = vld [vmem:[#allocation11 + $0x2c] ss:$16 sps:$4 sm:$0xff]  }
 0x390   :  { %941 = vst [vmem:[#allocation14 + $0x8] sm:$0xf] %v939_v51  ;;  %983 = vmatmul.mubr.bf16.vlgmr.msra.gmra.mrb[28].mxu0 %v949_v52  ;;  %1024 = vmatmul.mubr.bf16.vlgmr.msra.gmra.mrb[28].mxu1 %v949_v52  ;;  %v2694_v51 = vld [vmem:[#allocation11 + $0x28] ss:$16 sps:$4 sm:$0xff]   ;;  %v2697_v52 = vld [vmem:[#allocation11 + $0x44] ss:$16 sps:$4 sm:$0xff]  }
 0x391   :  { %1081 = vmatpush1.bf16.msra.mxu0 %v2276_v8  ;;  %1122 = vmatpush1.bf16.msra.mxu1 %v2279_v9 }
 0x392   :  { %1082 = vmatprep.subr.bf16.mxu0 %v2283_v10  ;;  %1123 = vmatprep.subr.bf16.mxu1 %v2287_v11  ;;  %v2969_v10 = vld [vmem:[#allocation25_spill] sm:$0xff] }
 0x393   :  { %1112 = vmatprep.mubr.bf16.mxu0 %v2966_v49  ;;  %1153 = vmatprep.mubr.bf16.mxu1 %v2966_v49 }
 0x395   :  { %1083 = vmatpush1.bf16.msra.mxu0 %v2289_v12  ;;  %1124 = vmatpush1.bf16.msra.mxu1 %v2291_v13  ;;  %v2970_v12 = vld [vmem:[#allocation26_spill] sm:$0xff] }
 0x396   :  { %1084 = vmatprep.subr.bf16.mxu0 %v2297_v15  ;;  %1125 = vmatprep.subr.bf16.mxu1 %v2300_v16 }
 0x399   :  { %1085 = vmatpush1.bf16.msra.mxu0 %v2303_v17  ;;  %1126 = vmatpush1.bf16.msra.mxu1 %v2305_v18  ;;  %v2971_v17 = vld [vmem:[#allocation27_spill] sm:$0xff] }
 0x39a   :  { %1086 = vmatprep.subr.bf16.mxu0 %v2309_v19  ;;  %1127 = vmatprep.subr.bf16.mxu1 %v2312_v20  ;;  %v2972_v19 = vld [vmem:[#allocation28_spill] sm:$0xff] }
 0x39d   :  { %1087 = vmatpush1.bf16.msra.mxu0 %v2316_v21  ;;  %1128 = vmatpush1.bf16.msra.mxu1 %v2319_v22 }
 0x39e   :  { %1088 = vmatprep.subr.bf16.mxu0 %v2324_v23  ;;  %1129 = vmatprep.subr.bf16.mxu1 %v2328_v24 }
 0x3a1   :  { %1089 = vmatpush1.bf16.msra.mxu0 %v2331_v26  ;;  %1130 = vmatpush1.bf16.msra.mxu1 %v2335_v27 }
 0x3a2   :  { %1090 = vmatprep.subr.bf16.mxu0 %v2337_v28  ;;  %1131 = vmatprep.subr.bf16.mxu1 %v2340_v29 }
 0x3a5   :  { %1091 = vmatpush1.bf16.msra.mxu0 %v2345_v30  ;;  %1132 = vmatpush1.bf16.msra.mxu1 %v2347_v31 }
 0x3a6   :  { %1092 = vmatprep.subr.bf16.mxu0 %v2352_v32  ;;  %1133 = vmatprep.subr.bf16.mxu1 %v2356_v33 }
 0x3a9   :  { %1093 = vmatpush1.bf16.msra.mxu0 %v2359_v35  ;;  %1134 = vmatpush1.bf16.msra.mxu1 %v2365_v37 }
 0x3aa   :  { %1094 = vmatprep.subr.bf16.mxu0 %v2367_v38  ;;  %1135 = vmatprep.subr.bf16.mxu1 %v2371_v39 }
 0x3ad   :  { %1095 = vmatpush1.bf16.msra.mxu0 %v2376_v40  ;;  %1136 = vmatpush1.bf16.msra.mxu1 %v2382_v42 }
 0x3ae   :  { %1210 = vmatprep.subr.bf16.mxu0 %v2272_v6  ;;  %1251 = vmatprep.subr.bf16.mxu1 %v2274_v7 }
 0x463   :  { %v984_v8 = vpop.f32.mrb[28].mxu0  ;;  %v1025_v9 = vpop.f32.mrb[28].mxu1 }
 0x464   :  { %v1032_v11 = vadd.f32 %v984_v8, %v2969_v10  ;;  %v1034_v13 = vadd.f32 %v1025_v9, %v2970_v12  ;;  %v986_v15 = vpop.f32.mrb[29].mxu0  ;;  %v1027_v16 = vpop.f32.mrb[29].mxu1  ;;  %v2700_v8 = vld [vmem:[#allocation11 + $0x4c] ss:$16 sps:$4 sm:$0xff]   ;;  %v2703_v9 = vld [vmem:[#allocation11 + $0x40] ss:$16 sps:$4 sm:$0xff]  }
 0x465   :  { %v1033_v18 = vadd.f32 %v986_v15, %v2971_v17  ;;  %v1035_v20 = vadd.f32 %v1027_v16, %v2972_v19  ;;  %v988_v21 = vpop.f32.mrb[30].mxu0  ;;  %v1029_v22 = vpop.f32.mrb[30].mxu1  ;;  %v2706_v10 = vld [vmem:[#allocation11 + $0x48] ss:$16 sps:$4 sm:$0xff]   ;;  %v2712_v12 = vld [vmem:[#allocation11 + $0x6c] ss:$16 sps:$4 sm:$0xff]  }
 0x466   :  { %v1704_v59 = vmul.f32 -1.442695, %v1032_v11  ;;  %v989_v63 = vpop.f32.mrb[31].mxu0  ;;  %v1030_v1 = vpop.f32.mrb[31].mxu1  ;;  %v2709_v11 = vld [vmem:[#allocation11 + $0x64] ss:$16 sps:$4 sm:$0xff]  }
 0x467   :  { %v1705_v6 = vmul.f32 -1.442695, %v1033_v18  ;;  %v1706_v7 = vmul.f32 -1.442695, %v1035_v20  ;;  %v2718_v15 = vld [vmem:[#allocation11 + $0x68] ss:$16 sps:$4 sm:$0xff]  }
 0x468   :  { %1847 = vpow2.f32 %v1704_v59 }
 0x469   :  { %1849 = vpow2.f32 %v1705_v6 }
 0x46a   :  { %1851 = vpow2.f32 %v1706_v7 }
 0x46b   :  { %1853 = vtanh.f32 %v1034_v13  ;;  %v2715_v13 = vld [vmem:[#allocation11 + $0x60] ss:$16 sps:$4 sm:$0xff]  }
 0x472   :  { %v1848_v3 = vpop.eup %1847 }
 0x473   :  { %v1850_v5 = vpop.eup %1849  ;;  %v1039_v0 = vadd.f32 1.0, %v1848_v3 }
 0x474   :  { %v1045_v14 = vadd.f32 1.0, %v1850_v5  ;;  %v1852_v53 = vpop.eup %1851 }
 0x475   :  { %1855 = vrcp.f32 %v1039_v0  ;;  %v1854_v2 = vpop.eup %1853  ;;  %v1052_v41 = vadd.f32 1.0, %v1852_v53  ;;  %v1196_v53 = vpop.permute.xlu0 %1195 }
 0x476   :  { %1857 = vrcp.f32 %v1045_v14  ;;  %vm1197_vm14 = vcmp.eq.s32.totalorder %v1196_v53, 1 }
 0x477   :  { %1859 = vrcp.f32 %v1052_v41 }
 0x47f   :  { %v1856_v43 = vpop.eup %1855 }
 0x480   :  { %v1858_v55 = vpop.eup %1857  ;;  %v1056_v58 = vmul.f32 %v1856_v43, %v1854_v2 }
 0x481   :  { %v1055_v44 = vmul.f32 %v1858_v55, %v2623_v34  ;;  %v1860_v60 = vpop.eup %1859 }
 0x483   :  { %v1057_v56 = vadd.f32 %v1056_v58, %v1055_v44 }
 0x485   :  { %1861 = vtanh.f32 %v1057_v56  ;;  %v2670_v57 = vsel %vm1067_vm13, %v1057_v56, %v2623_v34  ;;  %v2680_v34 = vld [vmem:[#allocation11 + $0x8] ss:$16 sps:$4 sm:$0xff]  }
 0x48f   :  { %v1862_v61 = vpop.eup %1861 }
 0x490   :  { %v1059_v62 = vmul.f32 %v1862_v61, %v1860_v60  ;;  %v2775_v61 = vld [vmem:[#allocation11 + $0x8c] ss:$16 sps:$4 sm:$0xff]  }
 0x492   :  { %v1068_v50 = vsel %vm1067_vm13, %v1059_v62, 0.0  ;;  %v2673_v4 = vsel %vm1067_vm13, %v1059_v62, %v2626_v47  ;;  %v2691_v47 = vld [vmem:[#allocation11 + $0x20] ss:$16 sps:$4 sm:$0xff]  }
 0x493   :  { %v1069_v46 = vpack.c.bf16 %v1068_v50, %v1068_v50  ;;  %v1079_v25 = vpack.c.bf16 %v2673_v4, %v2673_v4  ;;  %v2778_v62 = vld [vmem:[#allocation11 + $0x80] ss:$16 sps:$4 sm:$0xff]   ;;  %v2781_v50 = vld [vmem:[#allocation11 + $0x88] ss:$16 sps:$4 sm:$0xff]  }
 0x495   :  { %1071 = vst [vmem:[#allocation14 + $0xc] sm:$0xf] %v1069_v46  ;;  %1113 = vmatmul.mubr.bf16.vlgmr.msra.gmra.mrb[32].mxu0 %v1079_v25  ;;  %1154 = vmatmul.mubr.bf16.vlgmr.msra.gmra.mrb[32].mxu1 %v1079_v25  ;;  %v2787_v46 = vld [vmem:[#allocation11 + $0xac] ss:$16 sps:$4 sm:$0xff]   ;;  %v2790_v25 = vld [vmem:[#allocation11 + $0xa0] ss:$16 sps:$4 sm:$0xff]  }
 0x496   :  { %1211 = vmatpush1.bf16.msra.mxu0 %v2677_v36  ;;  %1252 = vmatpush1.bf16.msra.mxu1 %v2680_v34 }
 0x497   :  { %1212 = vmatprep.subr.bf16.mxu0 %v2683_v45  ;;  %1253 = vmatprep.subr.bf16.mxu1 %v2686_v48 }
 0x498   :  { %1242 = vmatprep.mubr.bf16.mxu0 %v2966_v49  ;;  %1283 = vmatprep.mubr.bf16.mxu1 %v2966_v49 }
 0x49a   :  { %1213 = vmatpush1.bf16.msra.mxu0 %v2691_v47  ;;  %1254 = vmatpush1.bf16.msra.mxu1 %v2694_v51 }
 0x49b   :  { %1214 = vmatprep.subr.bf16.mxu0 %v2697_v52  ;;  %1255 = vmatprep.subr.bf16.mxu1 %v2700_v8 }
 0x49e   :  { %1215 = vmatpush1.bf16.msra.mxu0 %v2703_v9  ;;  %1256 = vmatpush1.bf16.msra.mxu1 %v2706_v10 }
 0x49f   :  { %1216 = vmatprep.subr.bf16.mxu0 %v2709_v11  ;;  %1257 = vmatprep.subr.bf16.mxu1 %v2712_v12 }
 0x4a2   :  { %1217 = vmatpush1.bf16.msra.mxu0 %v2715_v13  ;;  %1258 = vmatpush1.bf16.msra.mxu1 %v2718_v15 }
 0x4a3   :  { %1218 = vmatprep.subr.bf16.mxu0 %v2324_v23  ;;  %1259 = vmatprep.subr.bf16.mxu1 %v2328_v24  ;;  %v2737_v23 = vld [vmem:[#allocation11 + $0x4] ss:$16 sps:$4 sm:$0xff]   ;;  %v2740_v24 = vld [vmem:[#allocation11 + $0xc] ss:$16 sps:$4 sm:$0xff]  }
 0x4a6   :  { %1219 = vmatpush1.bf16.msra.mxu0 %v2331_v26  ;;  %1260 = vmatpush1.bf16.msra.mxu1 %v2335_v27 }
 0x4a7   :  { %1220 = vmatprep.subr.bf16.mxu0 %v2337_v28  ;;  %1261 = vmatprep.subr.bf16.mxu1 %v2340_v29  ;;  %v2973_v28 = vld [vmem:[#allocation29_spill] sm:$0xff] }
 0x4aa   :  { %1221 = vmatpush1.bf16.msra.mxu0 %v2345_v30  ;;  %1262 = vmatpush1.bf16.msra.mxu1 %v2347_v31  ;;  %v2974_v30 = vld [vmem:[#allocation30_spill] sm:$0xff] }
 0x4ab   :  { %1222 = vmatprep.subr.bf16.mxu0 %v2352_v32  ;;  %1263 = vmatprep.subr.bf16.mxu1 %v2356_v33 }
 0x4ae   :  { %1223 = vmatpush1.bf16.msra.mxu0 %v2359_v35  ;;  %1264 = vmatpush1.bf16.msra.mxu1 %v2365_v37  ;;  %v2975_v35 = vld [vmem:[#allocation31_spill] sm:$0xff] }
 0x4af   :  { %1224 = vmatprep.subr.bf16.mxu0 %v2367_v38  ;;  %1265 = vmatprep.subr.bf16.mxu1 %v2371_v39  ;;  %v2976_v38 = vld [vmem:[#allocation32_spill] sm:$0xff] }
 0x4b2   :  { %1225 = vmatpush1.bf16.msra.mxu0 %v2376_v40  ;;  %1266 = vmatpush1.bf16.msra.mxu1 %v2382_v42 }
 0x4b3   :  { %1340 = vmatprep.subr.bf16.mxu0 %v2737_v23  ;;  %1381 = vmatprep.subr.bf16.mxu1 %v2740_v24 }
 0x568   :  { %v1114_v26 = vpop.f32.mrb[32].mxu0  ;;  %v1155_v27 = vpop.f32.mrb[32].mxu1 }
 0x569   :  { %v1162_v29 = vadd.f32 %v1114_v26, %v2973_v28  ;;  %v1164_v31 = vadd.f32 %v1155_v27, %v2974_v30  ;;  %v1116_v32 = vpop.f32.mrb[33].mxu0  ;;  %v1157_v33 = vpop.f32.mrb[33].mxu1  ;;  %v2793_v26 = vld [vmem:[#allocation11 + $0xa8] ss:$16 sps:$4 sm:$0xff]   ;;  %v2796_v27 = vld [vmem:[#allocation11 + $0xc4] ss:$16 sps:$4 sm:$0xff]  }
 0x56a   :  { %v1163_v37 = vadd.f32 %v1116_v32, %v2975_v35  ;;  %v1165_v39 = vadd.f32 %v1157_v33, %v2976_v38  ;;  %v1118_v40 = vpop.f32.mrb[34].mxu0  ;;  %v1159_v42 = vpop.f32.mrb[34].mxu1  ;;  %v2799_v28 = vld [vmem:[#allocation11 + $0xcc] ss:$16 sps:$4 sm:$0xff]   ;;  %v2805_v30 = vld [vmem:[#allocation11 + $0xc8] ss:$16 sps:$4 sm:$0xff]  }
 0x56b   :  { %v1707_v16 = vmul.f32 -1.442695, %v1162_v29  ;;  %v1119_v17 = vpop.f32.mrb[35].mxu0  ;;  %v1160_v18 = vpop.f32.mrb[35].mxu1  ;;  %v2802_v29 = vld [vmem:[#allocation11 + $0xc0] ss:$16 sps:$4 sm:$0xff]  }
 0x56c   :  { %v1708_v19 = vmul.f32 -1.442695, %v1163_v37  ;;  %v1709_v20 = vmul.f32 -1.442695, %v1165_v39  ;;  %v2811_v32 = vld [vmem:[#allocation11 + $0xec] ss:$16 sps:$4 sm:$0xff]  }
 0x56d   :  { %1863 = vpow2.f32 %v1707_v16  ;;  %v2814_v33 = vld [vmem:[#allocation11 + $0xe0] ss:$16 sps:$4 sm:$0xff]   ;;  %v2817_v35 = vld [vmem:[#allocation11 + $0xe8] ss:$16 sps:$4 sm:$0xff]  }
 0x56e   :  { %1865 = vpow2.f32 %v1708_v19  ;;  %v2977_v39 = vld [vmem:[#allocation33_spill] sm:$0xff]  ;;  %v2978_v42 = vld [vmem:[#allocation34_spill] sm:$0xff]  ;;  %v2979_v19 = vld [vmem:[#allocation35_spill] sm:$0xff] }
 0x56f   :  { %1867 = vpow2.f32 %v1709_v20 }
 0x570   :  { %1869 = vtanh.f32 %v1164_v31  ;;  %v2808_v31 = vld [vmem:[#allocation11 + $0xe4] ss:$16 sps:$4 sm:$0xff]  }
 0x577   :  { %v1864_v21 = vpop.eup %1863 }
 0x578   :  { %v1866_v22 = vpop.eup %1865  ;;  %v1169_v59 = vadd.f32 1.0, %v1864_v21  ;;  %v2980_v21 = vld [vmem:[#allocation36_spill] sm:$0xff] }
 0x579   :  { %v1175_v63 = vadd.f32 1.0, %v1866_v22  ;;  %v1868_v1 = vpop.eup %1867 }
 0x57a   :  { %1871 = vrcp.f32 %v1169_v59  ;;  %v1870_v6 = vpop.eup %1869  ;;  %v1182_v0 = vadd.f32 1.0, %v1868_v1 }
 0x57b   :  { %1873 = vrcp.f32 %v1175_v63 }
 0x57c   :  { %1875 = vrcp.f32 %v1182_v0 }
 0x584   :  { %v1872_v7 = vpop.eup %1871 }
 0x585   :  { %v1874_v3 = vpop.eup %1873  ;;  %v1186_v5 = vmul.f32 %v1872_v7, %v1870_v6 }
 0x586   :  { %v1185_v14 = vmul.f32 %v1874_v3, %v2670_v57  ;;  %v1876_v55 = vpop.eup %1875 }
 0x588   :  { %v1187_v2 = vadd.f32 %v1186_v5, %v1185_v14 }
 0x58a   :  { %1877 = vtanh.f32 %v1187_v2  ;;  %v2749_v43 = vsel %vm1197_vm14, %v1187_v2, %v2670_v57  ;;  %v2772_v57 = vld [vmem:[#allocation11 + $0x84] ss:$16 sps:$4 sm:$0xff]  }
 0x594   :  { %v1878_v58 = vpop.eup %1877 }
 0x595   :  { %v1189_v41 = vmul.f32 %v1878_v58, %v1876_v55 }
 0x597   :  { %v1198_v44 = vsel %vm1197_vm14, %v1189_v41, 0.0  ;;  %v2752_v54 = vsel %vm1197_vm14, %v1189_v41, %v2673_v4  ;;  %v2784_v4 = vld [vmem:[#allocation11 + $0xa4] ss:$16 sps:$4 sm:$0xff]  }
 0x598   :  { %v1199_v56 = vpack.c.bf16 %v1198_v44, %v1198_v44  ;;  %v1209_v60 = vpack.c.bf16 %v2752_v54, %v2752_v54 }
 0x59a   :  { %1201 = vst [vmem:[#allocation14 + $0x10] sm:$0xf] %v1199_v56  ;;  %1243 = vmatmul.mubr.bf16.vlgmr.msra.gmra.mrb[36].mxu0 %v1209_v60  ;;  %1284 = vmatmul.mubr.bf16.vlgmr.msra.gmra.mrb[36].mxu1 %v1209_v60  ;;  %v1326_v60 = vpop.permute.xlu1 %1325 }
 0x59b   :  { %1341 = vmatpush1.bf16.msra.mxu0 %v2677_v36  ;;  %1382 = vmatpush1.bf16.msra.mxu1 %v2680_v34  ;;  %vm1327_vm15 = vcmp.eq.s32.totalorder %v1326_v60, 1 }
 0x59c   :  { %1342 = vmatprep.subr.bf16.mxu0 %v2683_v45  ;;  %1383 = vmatprep.subr.bf16.mxu1 %v2686_v48 }
 0x59d   :  { %1372 = vmatprep.mubr.bf16.mxu0 %v2966_v49  ;;  %1413 = vmatprep.mubr.bf16.mxu1 %v2966_v49 }
 0x59f   :  { %1343 = vmatpush1.bf16.msra.mxu0 %v2691_v47  ;;  %1384 = vmatpush1.bf16.msra.mxu1 %v2694_v51 }
 0x5a0   :  { %1344 = vmatprep.subr.bf16.mxu0 %v2697_v52  ;;  %1385 = vmatprep.subr.bf16.mxu1 %v2700_v8 }
 0x5a3   :  { %1345 = vmatpush1.bf16.msra.mxu0 %v2703_v9  ;;  %1386 = vmatpush1.bf16.msra.mxu1 %v2706_v10 }
 0x5a4   :  { %1346 = vmatprep.subr.bf16.mxu0 %v2709_v11  ;;  %1387 = vmatprep.subr.bf16.mxu1 %v2712_v12 }
 0x5a7   :  { %1347 = vmatpush1.bf16.msra.mxu0 %v2715_v13  ;;  %1388 = vmatpush1.bf16.msra.mxu1 %v2718_v15 }
 0x5a8   :  { %1348 = vmatprep.subr.bf16.mxu0 %v2772_v57  ;;  %1389 = vmatprep.subr.bf16.mxu1 %v2775_v61 }
 0x5ab   :  { %1349 = vmatpush1.bf16.msra.mxu0 %v2778_v62  ;;  %1390 = vmatpush1.bf16.msra.mxu1 %v2781_v50 }
 0x5ac   :  { %1350 = vmatprep.subr.bf16.mxu0 %v2784_v4  ;;  %1391 = vmatprep.subr.bf16.mxu1 %v2787_v46 }
 0x5af   :  { %1351 = vmatpush1.bf16.msra.mxu0 %v2790_v25  ;;  %1392 = vmatpush1.bf16.msra.mxu1 %v2793_v26 }
 0x5b0   :  { %1352 = vmatprep.subr.bf16.mxu0 %v2796_v27  ;;  %1393 = vmatprep.subr.bf16.mxu1 %v2799_v28 }
 0x5b3   :  { %1353 = vmatpush1.bf16.msra.mxu0 %v2802_v29  ;;  %1394 = vmatpush1.bf16.msra.mxu1 %v2805_v30 }
 0x5b4   :  { %1354 = vmatprep.subr.bf16.mxu0 %v2808_v31  ;;  %1395 = vmatprep.subr.bf16.mxu1 %v2811_v32 }
 0x5b7   :  { %1355 = vmatpush1.bf16.msra.mxu0 %v2814_v33  ;;  %1396 = vmatpush1.bf16.msra.mxu1 %v2817_v35 }
 0x5b8   :  { %1470 = vmatprep.subr.bf16.mxu0 %v2737_v23  ;;  %1511 = vmatprep.subr.bf16.mxu1 %v2740_v24 }
 0x66d   :  { %v1244_v37 = vpop.f32.mrb[36].mxu0  ;;  %v1285_v38 = vpop.f32.mrb[36].mxu1 }
 0x66e   :  { %v1292_v40 = vadd.f32 %v1244_v37, %v2977_v39  ;;  %v1294_v16 = vadd.f32 %v1285_v38, %v2978_v42  ;;  %v1246_v17 = vpop.f32.mrb[37].mxu0  ;;  %v1287_v18 = vpop.f32.mrb[37].mxu1 }
 0x66f   :  { %v1293_v20 = vadd.f32 %v1246_v17, %v2979_v19  ;;  %v1295_v22 = vadd.f32 %v1287_v18, %v2980_v21  ;;  %v1248_v59 = vpop.f32.mrb[38].mxu0  ;;  %v1289_v63 = vpop.f32.mrb[38].mxu1 }
 0x670   :  { %v1710_v1 = vmul.f32 -1.442695, %v1292_v40  ;;  %v1249_v6 = vpop.f32.mrb[39].mxu0  ;;  %v1290_v7 = vpop.f32.mrb[39].mxu1 }
 0x671   :  { %v1711_v23 = vmul.f32 -1.442695, %v1293_v20  ;;  %v1712_v24 = vmul.f32 -1.442695, %v1295_v22 }
 0x672   :  { %1879 = vpow2.f32 %v1710_v1 }
 0x673   :  { %1881 = vpow2.f32 %v1711_v23 }
 0x674   :  { %1883 = vpow2.f32 %v1712_v24  ;;  %v2985_v24 = vld [vmem:[#allocation41_spill] sm:$0xff] }
 0x675   :  { %1885 = vtanh.f32 %v1294_v16 }
 0x67c   :  { %v1880_v3 = vpop.eup %1879 }
 0x67d   :  { %v1882_v5 = vpop.eup %1881  ;;  %v1299_v0 = vadd.f32 1.0, %v1880_v3 }
 0x67e   :  { %v1305_v14 = vadd.f32 1.0, %v1882_v5  ;;  %v1884_v53 = vpop.eup %1883  ;;  %v2986_v5 = vld [vmem:[#allocation42_spill] sm:$0xff] }
 0x67f   :  { %1887 = vrcp.f32 %v1299_v0  ;;  %v1886_v2 = vpop.eup %1885  ;;  %v1312_v44 = vadd.f32 1.0, %v1884_v53 }
 0x680   :  { %1889 = vrcp.f32 %v1305_v14 }
 0x681   :  { %1891 = vrcp.f32 %v1312_v44 }
 0x689   :  { %v1888_v55 = vpop.eup %1887 }
 0x68a   :  { %v1890_v58 = vpop.eup %1889  ;;  %v1316_v41 = vmul.f32 %v1888_v55, %v1886_v2  ;;  %v2987_v2 = vld [vmem:[#allocation43_spill] sm:$0xff] }
 0x68b   :  { %v1315_v56 = vmul.f32 %v1890_v58, %v2749_v43  ;;  %v1892_v39 = vpop.eup %1891  ;;  %v2988_v58 = vld [vmem:[#allocation44_spill] sm:$0xff] }
 0x68d   :  { %v1317_v37 = vadd.f32 %v1316_v41, %v1315_v56 }
 0x68f   :  { %1893 = vtanh.f32 %v1317_v37  ;;  %v2828_v38 = vsel %vm1327_vm15, %v1317_v37, %v2749_v43 }
 0x699   :  { %v1894_v40 = vpop.eup %1893 }
 0x69a   :  { %v1319_v42 = vmul.f32 %v1894_v40, %v1892_v39 }
 0x69c   :  { %v1328_v16 = vsel %vm1327_vm15, %v1319_v42, 0.0  ;;  %v2831_v17 = vsel %vm1327_vm15, %v1319_v42, %v2752_v54 }
 0x69d   :  { %v1329_v18 = vpack.c.bf16 %v1328_v16, %v1328_v16  ;;  %v1339_v19 = vpack.c.bf16 %v2831_v17, %v2831_v17 }
 0x69f   :  { %1331 = vst [vmem:[#allocation14 + $0x14] sm:$0xf] %v1329_v18  ;;  %1373 = vmatmul.mubr.bf16.vlgmr.msra.gmra.mrb[40].mxu0 %v1339_v19  ;;  %1414 = vmatmul.mubr.bf16.vlgmr.msra.gmra.mrb[40].mxu1 %v1339_v19 }
 0x6a0   :  { %1471 = vmatpush1.bf16.msra.mxu0 %v2677_v36  ;;  %1512 = vmatpush1.bf16.msra.mxu1 %v2680_v34  ;;  %v2981_v34 = vld [vmem:[#allocation37_spill] sm:$0xff] }
 0x6a1   :  { %1472 = vmatprep.subr.bf16.mxu0 %v2683_v45  ;;  %1513 = vmatprep.subr.bf16.mxu1 %v2686_v48  ;;  %v2982_v48 = vld [vmem:[#allocation38_spill] sm:$0xff] }
 0x6a2   :  { %1502 = vmatprep.mubr.bf16.mxu0 %v2966_v49  ;;  %1543 = vmatprep.mubr.bf16.mxu1 %v2966_v49 }
 0x6a4   :  { %1473 = vmatpush1.bf16.msra.mxu0 %v2691_v47  ;;  %1514 = vmatpush1.bf16.msra.mxu1 %v2694_v51 }
 0x6a5   :  { %1474 = vmatprep.subr.bf16.mxu0 %v2697_v52  ;;  %1515 = vmatprep.subr.bf16.mxu1 %v2700_v8  ;;  %v2983_v8 = vld [vmem:[#allocation39_spill] sm:$0xff] }
 0x6a8   :  { %1475 = vmatpush1.bf16.msra.mxu0 %v2703_v9  ;;  %1516 = vmatpush1.bf16.msra.mxu1 %v2706_v10  ;;  %v2984_v10 = vld [vmem:[#allocation40_spill] sm:$0xff] }
 0x6a9   :  { %1476 = vmatprep.subr.bf16.mxu0 %v2709_v11  ;;  %1517 = vmatprep.subr.bf16.mxu1 %v2712_v12 }
 0x6ac   :  { %1477 = vmatpush1.bf16.msra.mxu0 %v2715_v13  ;;  %1518 = vmatpush1.bf16.msra.mxu1 %v2718_v15 }
 0x6ad   :  { %1478 = vmatprep.subr.bf16.mxu0 %v2772_v57  ;;  %1519 = vmatprep.subr.bf16.mxu1 %v2775_v61 }
 0x6b0   :  { %1479 = vmatpush1.bf16.msra.mxu0 %v2778_v62  ;;  %1520 = vmatpush1.bf16.msra.mxu1 %v2781_v50 }
 0x6b1   :  { %1480 = vmatprep.subr.bf16.mxu0 %v2784_v4  ;;  %1521 = vmatprep.subr.bf16.mxu1 %v2787_v46 }
 0x6b4   :  { %1481 = vmatpush1.bf16.msra.mxu0 %v2790_v25  ;;  %1522 = vmatpush1.bf16.msra.mxu1 %v2793_v26 }
 0x6b5   :  { %1482 = vmatprep.subr.bf16.mxu0 %v2796_v27  ;;  %1523 = vmatprep.subr.bf16.mxu1 %v2799_v28 }
 0x6b8   :  { %1483 = vmatpush1.bf16.msra.mxu0 %v2802_v29  ;;  %1524 = vmatpush1.bf16.msra.mxu1 %v2805_v30 }
 0x6b9   :  { %1484 = vmatprep.subr.bf16.mxu0 %v2808_v31  ;;  %1525 = vmatprep.subr.bf16.mxu1 %v2811_v32  ;;  %v1456_v31 = vpop.permute.xlu0 %1455 }
 0x6ba   :  { %vm1457_vm0 = vcmp.eq.s32.totalorder %v1456_v31, 1 }
 0x6bc   :  { %1485 = vmatpush1.bf16.msra.mxu0 %v2814_v33  ;;  %1526 = vmatpush1.bf16.msra.mxu1 %v2817_v35 }
 0x772   :  { %v1374_v49 = vpop.f32.mrb[40].mxu0  ;;  %v1415_v36 = vpop.f32.mrb[40].mxu1 }
 0x773   :  { %v1422_v45 = vadd.f32 %v1374_v49, %v2981_v34  ;;  %v1424_v47 = vadd.f32 %v1415_v36, %v2982_v48  ;;  %v1376_v51 = vpop.f32.mrb[41].mxu0  ;;  %v1417_v52 = vpop.f32.mrb[41].mxu1 }
 0x774   :  { %v1423_v9 = vadd.f32 %v1376_v51, %v2983_v8  ;;  %v1425_v11 = vadd.f32 %v1417_v52, %v2984_v10  ;;  %v1378_v12 = vpop.f32.mrb[42].mxu0  ;;  %v1419_v13 = vpop.f32.mrb[42].mxu1 }
 0x775   :  { %v1713_v15 = vmul.f32 -1.442695, %v1422_v45  ;;  %v1379_v43 = vpop.f32.mrb[43].mxu0  ;;  %v1420_v54 = vpop.f32.mrb[43].mxu1 }
 0x776   :  { %v1714_v57 = vmul.f32 -1.442695, %v1423_v9  ;;  %v1715_v61 = vmul.f32 -1.442695, %v1425_v11 }
 0x777   :  { %1895 = vpow2.f32 %v1713_v15 }
 0x778   :  { %1897 = vpow2.f32 %v1714_v57 }
 0x779   :  { %1899 = vpow2.f32 %v1715_v61 }
 0x77a   :  { %1901 = vtanh.f32 %v1424_v47  ;;  %v1586_v47 = vpop.permute.xlu1 %1585 }
 0x77b   :  { %vm1587_vm1 = vcmp.eq.s32.totalorder %v1586_v47, 1 }
 0x781   :  { %v1896_v62 = vpop.eup %1895 }
 0x782   :  { %v1898_v50 = vpop.eup %1897  ;;  %v1429_v4 = vadd.f32 1.0, %v1896_v62 }
 0x783   :  { %v1435_v46 = vadd.f32 1.0, %v1898_v50  ;;  %v1900_v25 = vpop.eup %1899 }
 0x784   :  { %1903 = vrcp.f32 %v1429_v4  ;;  %v1902_v26 = vpop.eup %1901  ;;  %v1442_v30 = vadd.f32 1.0, %v1900_v25 }
 0x785   :  { %1905 = vrcp.f32 %v1435_v46 }
 0x786   :  { %1907 = vrcp.f32 %v1442_v30 }
 0x78e   :  { %v1904_v27 = vpop.eup %1903 }
 0x78f   :  { %v1906_v28 = vpop.eup %1905  ;;  %v1446_v29 = vmul.f32 %v1904_v27, %v1902_v26 }
 0x790   :  { %v1445_v32 = vmul.f32 %v1906_v28, %v2828_v38  ;;  %v1908_v20 = vpop.eup %1907 }
 0x792   :  { %v1447_v33 = vadd.f32 %v1446_v29, %v1445_v32 }
 0x794   :  { %1909 = vtanh.f32 %v1447_v33  ;;  %v1463_v35 = vsel %vm1457_vm0, %v1447_v33, %v2828_v38 }
 0x79e   :  { %v1910_v21 = vpop.eup %1909 }
 0x79f   :  { %v1449_v22 = vmul.f32 %v1910_v21, %v1908_v20 }
 0x7a1   :  { %v1458_v59 = vsel %vm1457_vm0, %v1449_v22, 0.0  ;;  %v1462_v63 = vsel %vm1457_vm0, %v1449_v22, %v2831_v17 }
 0x7a2   :  { %v1459_v1 = vpack.c.bf16 %v1458_v59, %v1458_v59  ;;  %v1469_v6 = vpack.c.bf16 %v1462_v63, %v1462_v63 }
 0x7a4   :  { %1461 = vst [vmem:[#allocation14 + $0x18] sm:$0xf] %v1459_v1  ;;  %1503 = vmatmul.mubr.bf16.vlgmr.msra.gmra.mrb[44].mxu0 %v1469_v6  ;;  %1544 = vmatmul.mubr.bf16.vlgmr.msra.gmra.mrb[44].mxu1 %v1469_v6 }
 0x877   :  { %v1504_v7 = vpop.f32.mrb[44].mxu0  ;;  %v1545_v23 = vpop.f32.mrb[44].mxu1 }
 0x878   :  { %v1552_v3 = vadd.f32 %v1504_v7, %v2985_v24  ;;  %v1554_v0 = vadd.f32 %v1545_v23, %v2986_v5  ;;  %v1506_v14 = vpop.f32.mrb[45].mxu0  ;;  %v1547_v53 = vpop.f32.mrb[45].mxu1 }
 0x879   :  { %v1553_v55 = vadd.f32 %v1506_v14, %v2987_v2  ;;  %v1555_v41 = vadd.f32 %v1547_v53, %v2988_v58  ;;  %v1508_v44 = vpop.f32.mrb[46].mxu0  ;;  %v1549_v56 = vpop.f32.mrb[46].mxu1 }
 0x87a   :  { %v1716_v60 = vmul.f32 -1.442695, %v1552_v3  ;;  %v1509_v37 = vpop.f32.mrb[47].mxu0  ;;  %v1550_v38 = vpop.f32.mrb[47].mxu1 }
 0x87b   :  { %v1717_v39 = vmul.f32 -1.442695, %v1553_v55  ;;  %v1718_v40 = vmul.f32 -1.442695, %v1555_v41 }
 0x87c   :  { %1911 = vpow2.f32 %v1716_v60 }
 0x87d   :  { %1913 = vpow2.f32 %v1717_v39 }
 0x87e   :  { %1915 = vpow2.f32 %v1718_v40 }
 0x87f   :  { %1917 = vtanh.f32 %v1554_v0 }
 0x886   :  { %v1912_v42 = vpop.eup %1911 }
 0x887   :  { %v1914_v16 = vpop.eup %1913  ;;  %v1559_v17 = vadd.f32 1.0, %v1912_v42 }
 0x888   :  { %v1565_v18 = vadd.f32 1.0, %v1914_v16  ;;  %v1916_v19 = vpop.eup %1915 }
 0x889   :  { %1919 = vrcp.f32 %v1559_v17  ;;  %v1918_v49 = vpop.eup %1917  ;;  %v1572_v48 = vadd.f32 1.0, %v1916_v19 }
 0x88a   :  { %1921 = vrcp.f32 %v1565_v18 }
 0x88b   :  { %1923 = vrcp.f32 %v1572_v48 }
 0x893   :  { %v1920_v36 = vpop.eup %1919 }
 0x894   :  { %v1922_v34 = vpop.eup %1921  ;;  %v1576_v45 = vmul.f32 %v1920_v36, %v1918_v49 }
 0x895   :  { %v1575_v51 = vmul.f32 %v1922_v34, %v1463_v35  ;;  %v1924_v9 = vpop.eup %1923 }
 0x897   :  { %v1577_v52 = vadd.f32 %v1576_v45, %v1575_v51 }
 0x899   :  { %1925 = vtanh.f32 %v1577_v52  ;;  %v1593_v8 = vsel %vm1587_vm1, %v1577_v52, %v1463_v35 }
 0x89a   :  { %1600 = vst [vmem:[#allocation17] sm:$0xff] %v1593_v8 }
 0x8a3   :  { %v1926_v10 = vpop.eup %1925 }
 0x8a4   :  { %v1579_v11 = vmul.f32 %v1926_v10, %v1924_v9 }
 0x8a6   :  { %v1588_v12 = vsel %vm1587_vm1, %v1579_v11, 0.0  ;;  %v1592_v13 = vsel %vm1587_vm1, %v1579_v11, %v1462_v63 }
 0x8a7   :  { %v1589_v15 = vpack.c.bf16 %v1588_v12, %v1588_v12  ;;  %1599 = vst [vmem:[#allocation15] sm:$0xff] %v1592_v13 }
 0x8a8   :  { %2080 = shalt.err (!%p2077_p2)
}
 0x8a9   :  { %s2081_s1 = scalar_lea.hbm %s2940_s6, 128 }
 0x8aa   :  { %p2082_p3 = scmp.ne.s32.totalorder %s2940_s6, %s2081_s1  ;;  %p2085_p4 = scmp.lt.u32.totalorder %s2081_s1, %s2940_s6 }
 0x8ac   :  { %p2087_p5 = pnand %p2085_p4, %p2082_p3 }
 0x8ae   :  { %2090 = shalt.err (!%p2087_p5)
}
 0x8af   :  { %1622 = dma.vmem_to_hbm [thread:$0]  %s1620_s27, 128, %s2940_s6, [#allocation16]   ;;  %1591 = vst [vmem:[#allocation14 + $0x1c] sm:$0xf] %v1589_v15 }
 0x8b0   :  { %s2091_s9 = scalar_lea.vmem %s2881_s20, 128  ;;  %p2096_p7 = scmp.lt.s32.totalorder %s2881_s20, %s2881_s20 }
 0x8b1   :  { %p2092_p6 = scmp.ne.s32.totalorder %s2881_s20, %s2091_s9  ;;  %p2097_p8 = scmp.lt.s32.totalorder %s2091_s9, %s2091_s9 }
 0x8b3   :  { %p2098_p9 = por %p2097_p8, %p2096_p7 }
 0x8b5   :  { %p2099_p10 = pnand %p2098_p9, %p2092_p6 }
 0x8b7   :  { %2102 = shalt.err (!%p2099_p10)
}
 0x8b8   :  { %s2103_s14 = scalar_lea.hbm %s2941_s7, 128 }
 0x8b9   :  { %p2104_p11 = scmp.ne.s32.totalorder %s2941_s7, %s2103_s14  ;;  %p2107_p12 = scmp.lt.u32.totalorder %s2103_s14, %s2941_s7 }
 0x8bb   :  { %p2109_p13 = pnand %p2107_p12, %p2104_p11 }
 0x8bd   :  { %2112 = shalt.err (!%p2109_p13)
}
 0x8be   :  { %1632 = dma.vmem_to_hbm [thread:$0]  %s2881_s20, 128, %s2941_s7, [#allocation16]  }
 0x8bf   :  { %s2113_s25 = scalar_lea.vmem %s2883_s22, 512  ;;  %p2118_p1 = scmp.lt.s32.totalorder %s2883_s22, %s2883_s22 }
 0x8c0   :  { %p2114_p0 = scmp.ne.s32.totalorder %s2883_s22, %s2113_s25  ;;  %p2119_p2 = scmp.lt.s32.totalorder %s2113_s25, %s2113_s25 }
 0x8c2   :  { %p2120_p3 = por %p2119_p2, %p2118_p1 }
 0x8c4   :  { %p2121_p4 = pnand %p2120_p3, %p2114_p0 }
 0x8c6   :  { %2124 = shalt.err (!%p2121_p4)
}
 0x8c7   :  { %s2125_s19 = scalar_lea.hbm %s2939_s5, 512 }
 0x8c8   :  { %p2126_p5 = scmp.ne.s32.totalorder %s2939_s5, %s2125_s19  ;;  %p2129_p6 = scmp.lt.u32.totalorder %s2125_s19, %s2939_s5 }
 0x8ca   :  { %p2131_p7 = pnand %p2129_p6, %p2126_p5 }
 0x8cc   :  { %2134 = shalt.err (!%p2131_p7)
}
 0x8cd   :  { %1612 = dma.vmem_to_hbm [thread:$0]  %s2883_s22, 512, %s2939_s5, [#allocation7], %s2146_s11, %s2146_s11, %s2147_s12  }
 0x8ce   :  { %2141 = dma.done.wait [#allocation7], 512  }
 0x8cf   :  { %2142 = vsyncadd [#allocation7], 4294966784 }
 0x8d0   :  { %2143 = dma.done.wait [#allocation16], 256  }
 0x8d1   :  { %2144 = vsyncadd [#allocation16], 4294967040 }
 0x8d2   :  { %1642 = vsyncpa [#allocation6], 1 }
 0x8d3   :  { %1643 = vsyncpa [#allocation9], 1 }
 0x8d4   :  { %1644 = vsyncpa [#allocation12], 1 }
 0x8d5   :  { %1645 = vsyncpa [#allocation7], 1 }
 0x8d6   :  { %1646 = vsyncpa [#allocation16], 1 }

</bundles_post_ra>
